<compile_context>
chip_gen: v6e
topology: v6e:2x2x1
jax: 0.10.0
libtpu: 0.0.40
codegen_flags: <defaults>
</compile_context>

<pallas_src>
import math

import jax
import jax.numpy as jnp
from jax.experimental import pallas as pl
from jax.experimental.pallas import tpu as pltpu

# ---------------------------------------------------------------------------
# Logical and lane-padded dimensions (from GNNNet.__init__ defaults)
# ---------------------------------------------------------------------------
F_MOL, F_PRO = 78, 54
F_MOL2, F_MOL4 = F_MOL * 2, F_MOL * 4          # 156, 312
F_PRO2, F_PRO4 = F_PRO * 2, F_PRO * 4          # 108, 216

PF_MOL, PF_MOL2, PF_MOL4 = 128, 256, 384       # padded molecule feature dims
PF_PRO, PF_PRO2, PF_PRO4 = 128, 128, 256       # padded protein feature dims

OUT_DIM = 128                                  # output_dim (already aligned)
HID_G = 1024                                   # fc_g1 hidden
HID1, HID2 = 1024, 512                         # head fc1 / fc2
N_OUTPUT = 1
OUT_PAD = 128                                  # final output padded to 128 lanes


# ---------------------------------------------------------------------------
# Fused Pallas kernel: the whole GNNNet forward, activations VMEM-resident
# ---------------------------------------------------------------------------
def _gnn_fused_kernel(
    mol_adj, mol_x, mol_pool,
    pro_adj, pro_x, pro_pool,
    mc1w, mc1b, mc2w, mc2b, mc3w, mc3b, mg1w, mg1b, mg2w, mg2b,
    pc1w, pc1b, pc2w, pc2b, pc3w, pc3b, pg1w, pg1b, pg2w, pg2b,
    f1aw, f1bw, f1b, f2w, f2b, ow, ob,
    o_ref,
):
    f32 = jnp.float32
    bf16 = jnp.bfloat16

    def mm(act, w_ref):
        # bf16 x bf16 MXU matmul with f32 accumulation.
        return jnp.dot(act.astype(bf16), w_ref[...], preferred_element_type=f32)

    def gcn_relu(adj_ref, act, w_ref, b_ref):
        xw = mm(act, w_ref)                                            # (N, Fout) f32
        agg = jnp.dot(adj_ref[...], xw, preferred_element_type=f32)    # A_hat @ XW
        return jnp.maximum(agg + b_ref[...], 0.0)

    def linear(act, w_ref, b_ref, relu):
        y = mm(act, w_ref) + b_ref[...]
        return jnp.maximum(y, 0.0) if relu else y

    # ---------------- molecule branch ----------------
    x = gcn_relu(mol_adj, mol_x[...], mc1w, mc1b)
    x = gcn_relu(mol_adj, x, mc2w, mc2b)
    x = gcn_relu(mol_adj, x, mc3w, mc3b)
    x = jnp.dot(mol_pool[...], x, preferred_element_type=f32)          # gep (mean pool)
    x = linear(x, mg1w, mg1b, relu=True)                               # dropout == id
    x = linear(x, mg2w, mg2b, relu=False)

    # ---------------- protein branch ----------------
    xt = gcn_relu(pro_adj, pro_x[...], pc1w, pc1b)
    xt = gcn_relu(pro_adj, xt, pc2w, pc2b)
    xt = gcn_relu(pro_adj, xt, pc3w, pc3b)
    xt = jnp.dot(pro_pool[...], xt, preferred_element_type=f32)        # gep
    xt = linear(xt, pg1w, pg1b, relu=True)
    xt = linear(xt, pg2w, pg2b, relu=False)

    # ------------- combined head (concat fused into split fc1) -------------
    h = jnp.maximum(mm(x, f1aw) + mm(xt, f1bw) + f1b[...], 0.0)        # fc1 + relu
    h = linear(h, f2w, f2b, relu=True)                                 # fc2 + relu
    o = linear(h, ow, ob, relu=False)                                  # out (col 0 valid)
    o_ref[...] = o.astype(o_ref.dtype)


# ---------------------------------------------------------------------------
# pallas_call wrapper
# ---------------------------------------------------------------------------
def _full_spec(shape):
    n = len(shape)
    return pl.BlockSpec(tuple(shape), lambda i, n=n: (0,) * n)


def _pad_last(x, target):
    return jnp.pad(x, ((0, 0), (0, target - x.shape[1])))


def _cost_numbers(inputs, out_shape, n_mol, n_pro, b):
    bytes_accessed = int(sum(int(a.size) * a.dtype.itemsize for a in inputs))
    bytes_accessed += int(math.prod(out_shape.shape)) * out_shape.dtype.itemsize

    def mmf(m, k, n):
        return 2 * m * k * n

    flops = 0
    # molecule branch
    flops += mmf(n_mol, PF_MOL, PF_MOL) + mmf(n_mol, n_mol, PF_MOL)
    flops += mmf(n_mol, PF_MOL, PF_MOL2) + mmf(n_mol, n_mol, PF_MOL2)
    flops += mmf(n_mol, PF_MOL2, PF_MOL4) + mmf(n_mol, n_mol, PF_MOL4)
    flops += mmf(b, n_mol, PF_MOL4)
    flops += mmf(b, PF_MOL4, HID_G) + mmf(b, HID_G, OUT_DIM)
    # protein branch
    flops += mmf(n_pro, PF_PRO, PF_PRO) + mmf(n_pro, n_pro, PF_PRO)
    flops += mmf(n_pro, PF_PRO, PF_PRO2) + mmf(n_pro, n_pro, PF_PRO2)
    flops += mmf(n_pro, PF_PRO2, PF_PRO4) + mmf(n_pro, n_pro, PF_PRO4)
    flops += mmf(b, n_pro, PF_PRO4)
    flops += mmf(b, PF_PRO4, HID_G) + mmf(b, HID_G, OUT_DIM)
    # head
    flops += 2 * mmf(b, OUT_DIM, HID1) + mmf(b, HID1, HID2) + mmf(b, HID2, OUT_PAD)
    return flops, bytes_accessed


def gnn_net_forward(params, mol_x, mol_adj, mol_pool, pro_x, pro_adj, pro_pool):
    """Mirrors GNNNet.forward; dropout == identity at inference."""
    b = mol_pool.shape[0]
    n_mol, n_pro = mol_adj.shape[0], pro_adj.shape[0]

    inputs = (
        mol_adj.astype(jnp.float32),
        _pad_last(mol_x.astype(jnp.float32), PF_MOL),
        mol_pool.astype(jnp.float32),
        pro_adj.astype(jnp.float32),
        _pad_last(pro_x.astype(jnp.float32), PF_PRO),
        pro_pool.astype(jnp.float32),
        *params["mol_conv1"], *params["mol_conv2"], *params["mol_conv3"],
        *params["mol_fc_g1"], *params["mol_fc_g2"],
        *params["pro_conv1"], *params["pro_conv2"], *params["pro_conv3"],
        *params["pro_fc_g1"], *params["pro_fc_g2"],
        params["fc1_wa"], params["fc1_wb"], params["fc1_b"],
        *params["fc2"], *params["out"],
    )

    out_shape = jax.ShapeDtypeStruct((b, OUT_PAD), jnp.float32)
    flops, bytes_accessed = _cost_numbers(inputs, out_shape, n_mol, n_pro, b)

    out = pl.pallas_call(
        _gnn_fused_kernel,
        out_shape=out_shape,
        grid=(1,),
        in_specs=[_full_spec(a.shape) for a in inputs],
        out_specs=pl.BlockSpec((b, OUT_PAD), lambda i: (0, 0)),
        compiler_params=pltpu.CompilerParams(
            dimension_semantics=("arbitrary",),
            vmem_limit_bytes=32 * 1024 * 1024,
        ),
        cost_estimate=pl.CostEstimate(
            flops=flops, transcendentals=0, bytes_accessed=bytes_accessed),
    )(*inputs)
    return out[:, :N_OUTPUT]


# ---------------------------------------------------------------------------
# Graph preprocessing glue (plain JAX)
# ---------------------------------------------------------------------------
def normalized_adjacency(edge_index, num_nodes):
    """Dense GCN-normalized adjacency A_hat = D^-1/2 (A + I) D^-1/2."""
    src, dst = edge_index
    a = jnp.zeros((num_nodes, num_nodes), jnp.float32)
    a = a.at[dst, src].add(1.0)
    a = a.at[src, dst].add(1.0)
    a = jnp.minimum(a, 1.0)                              # de-duplicate edges
    eye = jnp.eye(num_nodes, dtype=jnp.float32)
    a = a * (1.0 - eye) + eye                            # self-loop weight exactly 1
    deg = a.sum(axis=1)
    d_inv_sqrt = jnp.where(deg > 0, 1.0 / jnp.sqrt(deg), 0.0)
    return d_inv_sqrt[:, None] * a * d_inv_sqrt[None, :]


def mean_pool_matrix(batch, num_graphs):
    onehot = (batch[None, :] == jnp.arange(num_graphs)[:, None]).astype(jnp.float32)
    counts = onehot.sum(axis=1, keepdims=True)
    return onehot / jnp.maximum(counts, 1.0)


# ---------------------------------------------------------------------------
# Parameters (deterministic synthetic init; padded, weights in bf16)
# ---------------------------------------------------------------------------
def _init_linear_padded(key, fan_in, fan_out, pad_in, pad_out):
    kw, kb = jax.random.split(key)
    bound = 1.0 / math.sqrt(fan_in)
    w = jax.random.uniform(kw, (fan_in, fan_out), jnp.float32, -bound, bound)
    b = jax.random.uniform(kb, (fan_out,), jnp.float32, -bound, bound)
    wp = jnp.zeros((pad_in, pad_out), jnp.float32).at[:fan_in, :fan_out].set(w)
    bp = jnp.zeros((1, pad_out), jnp.float32).at[0, :fan_out].set(b)
    return wp.astype(jnp.bfloat16), bp        # bf16 weight, f32 bias


def init_params(key):
    keys = jax.random.split(key, 13)
    p = {}
    p["mol_conv1"] = _init_linear_padded(keys[0], F_MOL, F_MOL, PF_MOL, PF_MOL)
    p["mol_conv2"] = _init_linear_padded(keys[1], F_MOL, F_MOL2, PF_MOL, PF_MOL2)
    p["mol_conv3"] = _init_linear_padded(keys[2], F_MOL2, F_MOL4, PF_MOL2, PF_MOL4)
    p["mol_fc_g1"] = _init_linear_padded(keys[3], F_MOL4, HID_G, PF_MOL4, HID_G)
    p["mol_fc_g2"] = _init_linear_padded(keys[4], HID_G, OUT_DIM, HID_G, OUT_DIM)
    p["pro_conv1"] = _init_linear_padded(keys[5], F_PRO, F_PRO, PF_PRO, PF_PRO)
    p["pro_conv2"] = _init_linear_padded(keys[6], F_PRO, F_PRO2, PF_PRO, PF_PRO2)
    p["pro_conv3"] = _init_linear_padded(keys[7], F_PRO2, F_PRO4, PF_PRO2, PF_PRO4)
    p["pro_fc_g1"] = _init_linear_padded(keys[8], F_PRO4, HID_G, PF_PRO4, HID_G)
    p["pro_fc_g2"] = _init_linear_padded(keys[9], HID_G, OUT_DIM, HID_G, OUT_DIM)
    # fc1 on concat(x, xt): split the (256, 1024) weight into two 128-row halves
    w_fc1, b_fc1 = _init_linear_padded(keys[10], 2 * OUT_DIM, HID1, 2 * OUT_DIM, HID1)
    p["fc1_wa"], p["fc1_wb"], p["fc1_b"] = w_fc1[:OUT_DIM], w_fc1[OUT_DIM:], b_fc1
    p["fc2"] = _init_linear_padded(keys[11], HID1, HID2, HID1, HID2)
    p["out"] = _init_linear_padded(keys[12], HID2, N_OUTPUT, HID2, OUT_PAD)
    return p


# ---------------------------------------------------------------------------
# Demo
# ---------------------------------------------------------------------------
if __name__ == "__main__":
    key = jax.random.PRNGKey(0)
    k_par, k_mx, k_px = jax.random.split(key, 3)

    N_GRAPHS = 2          # batch of 2 drug-protein pairs
    N_MOL_NODES = 16      # 2 molecule graphs x 8 nodes
    N_PRO_NODES = 20      # 2 protein graphs x 10 nodes

    params = init_params(k_par)

    # Molecule graphs: ring within each graph of 8 nodes.
    mol_x = jax.random.normal(k_mx, (N_MOL_NODES, F_MOL), jnp.float32)
    mol_src, mol_dst = [], []
    for g in range(N_GRAPHS):
        base, sz = g * 8, 8
        for i in range(sz):
            mol_src.append(base + i)
            mol_dst.append(base + (i + 1) % sz)
    mol_edge_index = jnp.array([mol_src, mol_dst], jnp.int32)
    mol_batch = jnp.repeat(jnp.arange(N_GRAPHS, dtype=jnp.int32), 8)

    # Protein graphs: ring within each graph of 10 nodes.
    pro_x = jax.random.normal(k_px, (N_PRO_NODES, F_PRO), jnp.float32)
    pro_src, pro_dst = [], []
    for g in range(N_GRAPHS):
        base, sz = g * 10, 10
        for i in range(sz):
            pro_src.append(base + i)
            pro_dst.append(base + (i + 1) % sz)
    pro_edge_index = jnp.array([pro_src, pro_dst], jnp.int32)
    pro_batch = jnp.repeat(jnp.arange(N_GRAPHS, dtype=jnp.int32), 10)

    # Dense normalized adjacency + mean-pool matrices (glue).
    mol_adj = normalized_adjacency(mol_edge_index, N_MOL_NODES)
    pro_adj = normalized_adjacency(pro_edge_index, N_PRO_NODES)
    mol_pool = mean_pool_matrix(mol_batch, N_GRAPHS)
    pro_pool = mean_pool_matrix(pro_batch, N_GRAPHS)

    fwd = jax.jit(gnn_net_forward)
    out = fwd(params, mol_x, mol_adj, mol_pool, pro_x, pro_adj, pro_pool)
    out = jax.block_until_ready(out)

    assert out.shape == (N_GRAPHS, N_OUTPUT), out.shape
    assert bool(jnp.all(jnp.isfinite(out)))
    print("KERNEL_OK")
</pallas_src>

<mosaic_0001>
module attributes {stable_mosaic.version = 11 : i64} {
  func.func @_gnn_fused_kernel(%arg0: i32, %arg1: memref<16x16xf32, #tpu.memory_space<vmem>>, %arg2: memref<16x128xf32, #tpu.memory_space<vmem>>, %arg3: memref<2x16xf32, #tpu.memory_space<vmem>>, %arg4: memref<20x20xf32, #tpu.memory_space<vmem>>, %arg5: memref<20x128xf32, #tpu.memory_space<vmem>>, %arg6: memref<2x20xf32, #tpu.memory_space<vmem>>, %arg7: memref<128x128xbf16, #tpu.memory_space<vmem>>, %arg8: memref<1x128xf32, #tpu.memory_space<vmem>>, %arg9: memref<128x256xbf16, #tpu.memory_space<vmem>>, %arg10: memref<1x256xf32, #tpu.memory_space<vmem>>, %arg11: memref<256x384xbf16, #tpu.memory_space<vmem>>, %arg12: memref<1x384xf32, #tpu.memory_space<vmem>>, %arg13: memref<384x1024xbf16, #tpu.memory_space<vmem>>, %arg14: memref<1x1024xf32, #tpu.memory_space<vmem>>, %arg15: memref<1024x128xbf16, #tpu.memory_space<vmem>>, %arg16: memref<1x128xf32, #tpu.memory_space<vmem>>, %arg17: memref<128x128xbf16, #tpu.memory_space<vmem>>, %arg18: memref<1x128xf32, #tpu.memory_space<vmem>>, %arg19: memref<128x128xbf16, #tpu.memory_space<vmem>>, %arg20: memref<1x128xf32, #tpu.memory_space<vmem>>, %arg21: memref<128x256xbf16, #tpu.memory_space<vmem>>, %arg22: memref<1x256xf32, #tpu.memory_space<vmem>>, %arg23: memref<256x1024xbf16, #tpu.memory_space<vmem>>, %arg24: memref<1x1024xf32, #tpu.memory_space<vmem>>, %arg25: memref<1024x128xbf16, #tpu.memory_space<vmem>>, %arg26: memref<1x128xf32, #tpu.memory_space<vmem>>, %arg27: memref<128x1024xbf16, #tpu.memory_space<vmem>>, %arg28: memref<128x1024xbf16, #tpu.memory_space<vmem>>, %arg29: memref<1x1024xf32, #tpu.memory_space<vmem>>, %arg30: memref<1024x512xbf16, #tpu.memory_space<vmem>>, %arg31: memref<1x512xf32, #tpu.memory_space<vmem>>, %arg32: memref<512x128xbf16, #tpu.memory_space<vmem>>, %arg33: memref<1x128xf32, #tpu.memory_space<vmem>>, %arg34: memref<2x128xf32, #tpu.memory_space<vmem>>) attributes {dimension_semantics = [#tpu.dimension_semantics<arbitrary>], iteration_bounds = array<i64: 1>, scalar_prefetch = 0 : i64, scratch_operands = 0 : i64, tpu.core_type = #tpu.core_type<tc>, window_params = [{pipeline_mode = #tpu.pipeline_mode<synchronous>, transform_indices = @transform_0, window_bounds = array<i64: 16, 16>}, {pipeline_mode = #tpu.pipeline_mode<synchronous>, transform_indices = @transform_1, window_bounds = array<i64: 16, 128>}, {pipeline_mode = #tpu.pipeline_mode<synchronous>, transform_indices = @transform_2, window_bounds = array<i64: 2, 16>}, {pipeline_mode = #tpu.pipeline_mode<synchronous>, transform_indices = @transform_3, window_bounds = array<i64: 20, 20>}, {pipeline_mode = #tpu.pipeline_mode<synchronous>, transform_indices = @transform_4, window_bounds = array<i64: 20, 128>}, {pipeline_mode = #tpu.pipeline_mode<synchronous>, transform_indices = @transform_5, window_bounds = array<i64: 2, 20>}, {pipeline_mode = #tpu.pipeline_mode<synchronous>, transform_indices = @transform_6, window_bounds = array<i64: 128, 128>}, {pipeline_mode = #tpu.pipeline_mode<synchronous>, transform_indices = @transform_7, window_bounds = array<i64: 1, 128>}, {pipeline_mode = #tpu.pipeline_mode<synchronous>, transform_indices = @transform_8, window_bounds = array<i64: 128, 256>}, {pipeline_mode = #tpu.pipeline_mode<synchronous>, transform_indices = @transform_9, window_bounds = array<i64: 1, 256>}, {pipeline_mode = #tpu.pipeline_mode<synchronous>, transform_indices = @transform_10, window_bounds = array<i64: 256, 384>}, {pipeline_mode = #tpu.pipeline_mode<synchronous>, transform_indices = @transform_11, window_bounds = array<i64: 1, 384>}, {pipeline_mode = #tpu.pipeline_mode<synchronous>, transform_indices = @transform_12, window_bounds = array<i64: 384, 1024>}, {pipeline_mode = #tpu.pipeline_mode<synchronous>, transform_indices = @transform_13, window_bounds = array<i64: 1, 1024>}, {pipeline_mode = #tpu.pipeline_mode<synchronous>, transform_indices = @transform_14, window_bounds = array<i64: 1024, 128>}, {pipeline_mode = #tpu.pipeline_mode<synchronous>, transform_indices = @transform_15, window_bounds = array<i64: 1, 128>}, {pipeline_mode = #tpu.pipeline_mode<synchronous>, transform_indices = @transform_16, window_bounds = array<i64: 128, 128>}, {pipeline_mode = #tpu.pipeline_mode<synchronous>, transform_indices = @transform_17, window_bounds = array<i64: 1, 128>}, {pipeline_mode = #tpu.pipeline_mode<synchronous>, transform_indices = @transform_18, window_bounds = array<i64: 128, 128>}, {pipeline_mode = #tpu.pipeline_mode<synchronous>, transform_indices = @transform_19, window_bounds = array<i64: 1, 128>}, {pipeline_mode = #tpu.pipeline_mode<synchronous>, transform_indices = @transform_20, window_bounds = array<i64: 128, 256>}, {pipeline_mode = #tpu.pipeline_mode<synchronous>, transform_indices = @transform_21, window_bounds = array<i64: 1, 256>}, {pipeline_mode = #tpu.pipeline_mode<synchronous>, transform_indices = @transform_22, window_bounds = array<i64: 256, 1024>}, {pipeline_mode = #tpu.pipeline_mode<synchronous>, transform_indices = @transform_23, window_bounds = array<i64: 1, 1024>}, {pipeline_mode = #tpu.pipeline_mode<synchronous>, transform_indices = @transform_24, window_bounds = array<i64: 1024, 128>}, {pipeline_mode = #tpu.pipeline_mode<synchronous>, transform_indices = @transform_25, window_bounds = array<i64: 1, 128>}, {pipeline_mode = #tpu.pipeline_mode<synchronous>, transform_indices = @transform_26, window_bounds = array<i64: 128, 1024>}, {pipeline_mode = #tpu.pipeline_mode<synchronous>, transform_indices = @transform_27, window_bounds = array<i64: 128, 1024>}, {pipeline_mode = #tpu.pipeline_mode<synchronous>, transform_indices = @transform_28, window_bounds = array<i64: 1, 1024>}, {pipeline_mode = #tpu.pipeline_mode<synchronous>, transform_indices = @transform_29, window_bounds = array<i64: 1024, 512>}, {pipeline_mode = #tpu.pipeline_mode<synchronous>, transform_indices = @transform_30, window_bounds = array<i64: 1, 512>}, {pipeline_mode = #tpu.pipeline_mode<synchronous>, transform_indices = @transform_31, window_bounds = array<i64: 512, 128>}, {pipeline_mode = #tpu.pipeline_mode<synchronous>, transform_indices = @transform_32, window_bounds = array<i64: 1, 128>}, {pipeline_mode = #tpu.pipeline_mode<synchronous>, transform_indices = @transform_33, window_bounds = array<i64: 2, 128>}]} {
    %c0 = arith.constant 0 : index
    %c0_0 = arith.constant 0 : index
    %0 = vector.load %arg2[%c0, %c0_0] : memref<16x128xf32, #tpu.memory_space<vmem>>, vector<16x128xf32>
    %1 = arith.truncf %0 : vector<16x128xf32> to vector<16x128xbf16>
    %c0_1 = arith.constant 0 : index
    %c0_2 = arith.constant 0 : index
    %2 = vector.load %arg7[%c0_1, %c0_2] : memref<128x128xbf16, #tpu.memory_space<vmem>>, vector<128x128xbf16>
    %cst = arith.constant dense<0.000000e+00> : vector<16x128xf32>
    %3 = tpu.matmul %1, %2, %cst {dimension_numbers = #tpu.dot_dimension_numbers<[1], [0], [0], [1], [0, 0, 1, 1], [], []>} : vector<16x128xbf16>, vector<128x128xbf16>, vector<16x128xf32> -> vector<16x128xf32>
    %c0_3 = arith.constant 0 : index
    %c0_4 = arith.constant 0 : index
    %4 = vector.load %arg1[%c0_3, %c0_4] : memref<16x16xf32, #tpu.memory_space<vmem>>, vector<16x16xf32>
    %cst_5 = arith.constant dense<0.000000e+00> : vector<16x128xf32>
    %5 = tpu.matmul %4, %3, %cst_5 {dimension_numbers = #tpu.dot_dimension_numbers<[1], [0], [0], [1], [0, 0, 1, 1], [], []>} : vector<16x16xf32>, vector<16x128xf32>, vector<16x128xf32> -> vector<16x128xf32>
    %c0_6 = arith.constant 0 : index
    %c0_7 = arith.constant 0 : index
    %6 = vector.load %arg8[%c0_6, %c0_7] : memref<1x128xf32, #tpu.memory_space<vmem>>, vector<1x128xf32>
    %7 = vector.broadcast %6 : vector<1x128xf32> to vector<16x128xf32>
    %8 = arith.addf %5, %7 : vector<16x128xf32>
    %cst_8 = arith.constant 0.000000e+00 : f32
    %9 = vector.broadcast %cst_8 : f32 to vector<16x128xf32>
    %10 = arith.maximumf %8, %9 : vector<16x128xf32>
    %11 = arith.truncf %10 : vector<16x128xf32> to vector<16x128xbf16>
    %c0_9 = arith.constant 0 : index
    %c0_10 = arith.constant 0 : index
    %12 = vector.load %arg9[%c0_9, %c0_10] : memref<128x256xbf16, #tpu.memory_space<vmem>>, vector<128x256xbf16>
    %cst_11 = arith.constant dense<0.000000e+00> : vector<16x256xf32>
    %13 = tpu.matmul %11, %12, %cst_11 {dimension_numbers = #tpu.dot_dimension_numbers<[1], [0], [0], [1], [0, 0, 1, 1], [], []>} : vector<16x128xbf16>, vector<128x256xbf16>, vector<16x256xf32> -> vector<16x256xf32>
    %c0_12 = arith.constant 0 : index
    %c0_13 = arith.constant 0 : index
    %14 = vector.load %arg1[%c0_12, %c0_13] : memref<16x16xf32, #tpu.memory_space<vmem>>, vector<16x16xf32>
    %cst_14 = arith.constant dense<0.000000e+00> : vector<16x256xf32>
    %15 = tpu.matmul %14, %13, %cst_14 {dimension_numbers = #tpu.dot_dimension_numbers<[1], [0], [0], [1], [0, 0, 1, 1], [], []>} : vector<16x16xf32>, vector<16x256xf32>, vector<16x256xf32> -> vector<16x256xf32>
    %c0_15 = arith.constant 0 : index
    %c0_16 = arith.constant 0 : index
    %16 = vector.load %arg10[%c0_15, %c0_16] : memref<1x256xf32, #tpu.memory_space<vmem>>, vector<1x256xf32>
    %17 = vector.broadcast %16 : vector<1x256xf32> to vector<16x256xf32>
    %18 = arith.addf %15, %17 : vector<16x256xf32>
    %cst_17 = arith.constant 0.000000e+00 : f32
    %19 = vector.broadcast %cst_17 : f32 to vector<16x256xf32>
    %20 = arith.maximumf %18, %19 : vector<16x256xf32>
    %21 = arith.truncf %20 : vector<16x256xf32> to vector<16x256xbf16>
    %c0_18 = arith.constant 0 : index
    %c0_19 = arith.constant 0 : index
    %22 = vector.load %arg11[%c0_18, %c0_19] : memref<256x384xbf16, #tpu.memory_space<vmem>>, vector<256x384xbf16>
    %cst_20 = arith.constant dense<0.000000e+00> : vector<16x384xf32>
    %23 = tpu.matmul %21, %22, %cst_20 {dimension_numbers = #tpu.dot_dimension_numbers<[1], [0], [0], [1], [0, 0, 1, 1], [], []>} : vector<16x256xbf16>, vector<256x384xbf16>, vector<16x384xf32> -> vector<16x384xf32>
    %c0_21 = arith.constant 0 : index
    %c0_22 = arith.constant 0 : index
    %24 = vector.load %arg1[%c0_21, %c0_22] : memref<16x16xf32, #tpu.memory_space<vmem>>, vector<16x16xf32>
    %cst_23 = arith.constant dense<0.000000e+00> : vector<16x384xf32>
    %25 = tpu.matmul %24, %23, %cst_23 {dimension_numbers = #tpu.dot_dimension_numbers<[1], [0], [0], [1], [0, 0, 1, 1], [], []>} : vector<16x16xf32>, vector<16x384xf32>, vector<16x384xf32> -> vector<16x384xf32>
    %c0_24 = arith.constant 0 : index
    %c0_25 = arith.constant 0 : index
    %26 = vector.load %arg12[%c0_24, %c0_25] : memref<1x384xf32, #tpu.memory_space<vmem>>, vector<1x384xf32>
    %27 = vector.broadcast %26 : vector<1x384xf32> to vector<16x384xf32>
    %28 = arith.addf %25, %27 : vector<16x384xf32>
    %cst_26 = arith.constant 0.000000e+00 : f32
    %29 = vector.broadcast %cst_26 : f32 to vector<16x384xf32>
    %30 = arith.maximumf %28, %29 : vector<16x384xf32>
    %c0_27 = arith.constant 0 : index
    %c0_28 = arith.constant 0 : index
    %31 = vector.load %arg3[%c0_27, %c0_28] : memref<2x16xf32, #tpu.memory_space<vmem>>, vector<2x16xf32>
    %cst_29 = arith.constant dense<0.000000e+00> : vector<2x384xf32>
    %32 = tpu.matmul %31, %30, %cst_29 {dimension_numbers = #tpu.dot_dimension_numbers<[1], [0], [0], [1], [0, 0, 1, 1], [], []>} : vector<2x16xf32>, vector<16x384xf32>, vector<2x384xf32> -> vector<2x384xf32>
    %33 = arith.truncf %32 : vector<2x384xf32> to vector<2x384xbf16>
    %c0_30 = arith.constant 0 : index
    %c0_31 = arith.constant 0 : index
    %34 = vector.load %arg13[%c0_30, %c0_31] : memref<384x1024xbf16, #tpu.memory_space<vmem>>, vector<384x1024xbf16>
    %cst_32 = arith.constant dense<0.000000e+00> : vector<2x1024xf32>
    %35 = tpu.matmul %33, %34, %cst_32 {dimension_numbers = #tpu.dot_dimension_numbers<[1], [0], [0], [1], [0, 0, 1, 1], [], []>} : vector<2x384xbf16>, vector<384x1024xbf16>, vector<2x1024xf32> -> vector<2x1024xf32>
    %c0_33 = arith.constant 0 : index
    %c0_34 = arith.constant 0 : index
    %36 = vector.load %arg14[%c0_33, %c0_34] : memref<1x1024xf32, #tpu.memory_space<vmem>>, vector<1x1024xf32>
    %37 = vector.broadcast %36 : vector<1x1024xf32> to vector<2x1024xf32>
    %38 = arith.addf %35, %37 : vector<2x1024xf32>
    %cst_35 = arith.constant 0.000000e+00 : f32
    %39 = vector.broadcast %cst_35 : f32 to vector<2x1024xf32>
    %40 = arith.maximumf %38, %39 : vector<2x1024xf32>
    %41 = arith.truncf %40 : vector<2x1024xf32> to vector<2x1024xbf16>
    %c0_36 = arith.constant 0 : index
    %c0_37 = arith.constant 0 : index
    %42 = vector.load %arg15[%c0_36, %c0_37] : memref<1024x128xbf16, #tpu.memory_space<vmem>>, vector<1024x128xbf16>
    %cst_38 = arith.constant dense<0.000000e+00> : vector<2x128xf32>
    %43 = tpu.matmul %41, %42, %cst_38 {dimension_numbers = #tpu.dot_dimension_numbers<[1], [0], [0], [1], [0, 0, 1, 1], [], []>} : vector<2x1024xbf16>, vector<1024x128xbf16>, vector<2x128xf32> -> vector<2x128xf32>
    %c0_39 = arith.constant 0 : index
    %c0_40 = arith.constant 0 : index
    %44 = vector.load %arg16[%c0_39, %c0_40] : memref<1x128xf32, #tpu.memory_space<vmem>>, vector<1x128xf32>
    %45 = vector.broadcast %44 : vector<1x128xf32> to vector<2x128xf32>
    %46 = arith.addf %43, %45 : vector<2x128xf32>
    %c0_41 = arith.constant 0 : index
    %c0_42 = arith.constant 0 : index
    %47 = vector.load %arg5[%c0_41, %c0_42] : memref<20x128xf32, #tpu.memory_space<vmem>>, vector<20x128xf32>
    %48 = arith.truncf %47 : vector<20x128xf32> to vector<20x128xbf16>
    %c0_43 = arith.constant 0 : index
    %c0_44 = arith.constant 0 : index
    %49 = vector.load %arg17[%c0_43, %c0_44] : memref<128x128xbf16, #tpu.memory_space<vmem>>, vector<128x128xbf16>
    %cst_45 = arith.constant dense<0.000000e+00> : vector<20x128xf32>
    %50 = tpu.matmul %48, %49, %cst_45 {dimension_numbers = #tpu.dot_dimension_numbers<[1], [0], [0], [1], [0, 0, 1, 1], [], []>} : vector<20x128xbf16>, vector<128x128xbf16>, vector<20x128xf32> -> vector<20x128xf32>
    %c0_46 = arith.constant 0 : index
    %c0_47 = arith.constant 0 : index
    %51 = vector.load %arg4[%c0_46, %c0_47] : memref<20x20xf32, #tpu.memory_space<vmem>>, vector<20x20xf32>
    %cst_48 = arith.constant dense<0.000000e+00> : vector<20x128xf32>
    %52 = tpu.matmul %51, %50, %cst_48 {dimension_numbers = #tpu.dot_dimension_numbers<[1], [0], [0], [1], [0, 0, 1, 1], [], []>} : vector<20x20xf32>, vector<20x128xf32>, vector<20x128xf32> -> vector<20x128xf32>
    %c0_49 = arith.constant 0 : index
    %c0_50 = arith.constant 0 : index
    %53 = vector.load %arg18[%c0_49, %c0_50] : memref<1x128xf32, #tpu.memory_space<vmem>>, vector<1x128xf32>
    %54 = vector.broadcast %53 : vector<1x128xf32> to vector<20x128xf32>
    %55 = arith.addf %52, %54 : vector<20x128xf32>
    %cst_51 = arith.constant 0.000000e+00 : f32
    %56 = vector.broadcast %cst_51 : f32 to vector<20x128xf32>
    %57 = arith.maximumf %55, %56 : vector<20x128xf32>
    %58 = arith.truncf %57 : vector<20x128xf32> to vector<20x128xbf16>
    %c0_52 = arith.constant 0 : index
    %c0_53 = arith.constant 0 : index
    %59 = vector.load %arg19[%c0_52, %c0_53] : memref<128x128xbf16, #tpu.memory_space<vmem>>, vector<128x128xbf16>
    %cst_54 = arith.constant dense<0.000000e+00> : vector<20x128xf32>
    %60 = tpu.matmul %58, %59, %cst_54 {dimension_numbers = #tpu.dot_dimension_numbers<[1], [0], [0], [1], [0, 0, 1, 1], [], []>} : vector<20x128xbf16>, vector<128x128xbf16>, vector<20x128xf32> -> vector<20x128xf32>
    %c0_55 = arith.constant 0 : index
    %c0_56 = arith.constant 0 : index
    %61 = vector.load %arg4[%c0_55, %c0_56] : memref<20x20xf32, #tpu.memory_space<vmem>>, vector<20x20xf32>
    %cst_57 = arith.constant dense<0.000000e+00> : vector<20x128xf32>
    %62 = tpu.matmul %61, %60, %cst_57 {dimension_numbers = #tpu.dot_dimension_numbers<[1], [0], [0], [1], [0, 0, 1, 1], [], []>} : vector<20x20xf32>, vector<20x128xf32>, vector<20x128xf32> -> vector<20x128xf32>
    %c0_58 = arith.constant 0 : index
    %c0_59 = arith.constant 0 : index
    %63 = vector.load %arg20[%c0_58, %c0_59] : memref<1x128xf32, #tpu.memory_space<vmem>>, vector<1x128xf32>
    %64 = vector.broadcast %63 : vector<1x128xf32> to vector<20x128xf32>
    %65 = arith.addf %62, %64 : vector<20x128xf32>
    %cst_60 = arith.constant 0.000000e+00 : f32
    %66 = vector.broadcast %cst_60 : f32 to vector<20x128xf32>
    %67 = arith.maximumf %65, %66 : vector<20x128xf32>
    %68 = arith.truncf %67 : vector<20x128xf32> to vector<20x128xbf16>
    %c0_61 = arith.constant 0 : index
    %c0_62 = arith.constant 0 : index
    %69 = vector.load %arg21[%c0_61, %c0_62] : memref<128x256xbf16, #tpu.memory_space<vmem>>, vector<128x256xbf16>
    %cst_63 = arith.constant dense<0.000000e+00> : vector<20x256xf32>
    %70 = tpu.matmul %68, %69, %cst_63 {dimension_numbers = #tpu.dot_dimension_numbers<[1], [0], [0], [1], [0, 0, 1, 1], [], []>} : vector<20x128xbf16>, vector<128x256xbf16>, vector<20x256xf32> -> vector<20x256xf32>
    %c0_64 = arith.constant 0 : index
    %c0_65 = arith.constant 0 : index
    %71 = vector.load %arg4[%c0_64, %c0_65] : memref<20x20xf32, #tpu.memory_space<vmem>>, vector<20x20xf32>
    %cst_66 = arith.constant dense<0.000000e+00> : vector<20x256xf32>
    %72 = tpu.matmul %71, %70, %cst_66 {dimension_numbers = #tpu.dot_dimension_numbers<[1], [0], [0], [1], [0, 0, 1, 1], [], []>} : vector<20x20xf32>, vector<20x256xf32>, vector<20x256xf32> -> vector<20x256xf32>
    %c0_67 = arith.constant 0 : index
    %c0_68 = arith.constant 0 : index
    %73 = vector.load %arg22[%c0_67, %c0_68] : memref<1x256xf32, #tpu.memory_space<vmem>>, vector<1x256xf32>
    %74 = vector.broadcast %73 : vector<1x256xf32> to vector<20x256xf32>
    %75 = arith.addf %72, %74 : vector<20x256xf32>
    %cst_69 = arith.constant 0.000000e+00 : f32
    %76 = vector.broadcast %cst_69 : f32 to vector<20x256xf32>
    %77 = arith.maximumf %75, %76 : vector<20x256xf32>
    %c0_70 = arith.constant 0 : index
    %c0_71 = arith.constant 0 : index
    %78 = vector.load %arg6[%c0_70, %c0_71] : memref<2x20xf32, #tpu.memory_space<vmem>>, vector<2x20xf32>
    %cst_72 = arith.constant dense<0.000000e+00> : vector<2x256xf32>
    %79 = tpu.matmul %78, %77, %cst_72 {dimension_numbers = #tpu.dot_dimension_numbers<[1], [0], [0], [1], [0, 0, 1, 1], [], []>} : vector<2x20xf32>, vector<20x256xf32>, vector<2x256xf32> -> vector<2x256xf32>
    %80 = arith.truncf %79 : vector<2x256xf32> to vector<2x256xbf16>
    %c0_73 = arith.constant 0 : index
    %c0_74 = arith.constant 0 : index
    %81 = vector.load %arg23[%c0_73, %c0_74] : memref<256x1024xbf16, #tpu.memory_space<vmem>>, vector<256x1024xbf16>
    %cst_75 = arith.constant dense<0.000000e+00> : vector<2x1024xf32>
    %82 = tpu.matmul %80, %81, %cst_75 {dimension_numbers = #tpu.dot_dimension_numbers<[1], [0], [0], [1], [0, 0, 1, 1], [], []>} : vector<2x256xbf16>, vector<256x1024xbf16>, vector<2x1024xf32> -> vector<2x1024xf32>
    %c0_76 = arith.constant 0 : index
    %c0_77 = arith.constant 0 : index
    %83 = vector.load %arg24[%c0_76, %c0_77] : memref<1x1024xf32, #tpu.memory_space<vmem>>, vector<1x1024xf32>
    %84 = vector.broadcast %83 : vector<1x1024xf32> to vector<2x1024xf32>
    %85 = arith.addf %82, %84 : vector<2x1024xf32>
    %cst_78 = arith.constant 0.000000e+00 : f32
    %86 = vector.broadcast %cst_78 : f32 to vector<2x1024xf32>
    %87 = arith.maximumf %85, %86 : vector<2x1024xf32>
    %88 = arith.truncf %87 : vector<2x1024xf32> to vector<2x1024xbf16>
    %c0_79 = arith.constant 0 : index
    %c0_80 = arith.constant 0 : index
    %89 = vector.load %arg25[%c0_79, %c0_80] : memref<1024x128xbf16, #tpu.memory_space<vmem>>, vector<1024x128xbf16>
    %cst_81 = arith.constant dense<0.000000e+00> : vector<2x128xf32>
    %90 = tpu.matmul %88, %89, %cst_81 {dimension_numbers = #tpu.dot_dimension_numbers<[1], [0], [0], [1], [0, 0, 1, 1], [], []>} : vector<2x1024xbf16>, vector<1024x128xbf16>, vector<2x128xf32> -> vector<2x128xf32>
    %c0_82 = arith.constant 0 : index
    %c0_83 = arith.constant 0 : index
    %91 = vector.load %arg26[%c0_82, %c0_83] : memref<1x128xf32, #tpu.memory_space<vmem>>, vector<1x128xf32>
    %92 = vector.broadcast %91 : vector<1x128xf32> to vector<2x128xf32>
    %93 = arith.addf %90, %92 : vector<2x128xf32>
    %94 = arith.truncf %46 : vector<2x128xf32> to vector<2x128xbf16>
    %c0_84 = arith.constant 0 : index
    %c0_85 = arith.constant 0 : index
    %95 = vector.load %arg27[%c0_84, %c0_85] : memref<128x1024xbf16, #tpu.memory_space<vmem>>, vector<128x1024xbf16>
    %cst_86 = arith.constant dense<0.000000e+00> : vector<2x1024xf32>
    %96 = tpu.matmul %94, %95, %cst_86 {dimension_numbers = #tpu.dot_dimension_numbers<[1], [0], [0], [1], [0, 0, 1, 1], [], []>} : vector<2x128xbf16>, vector<128x1024xbf16>, vector<2x1024xf32> -> vector<2x1024xf32>
    %97 = arith.truncf %93 : vector<2x128xf32> to vector<2x128xbf16>
    %c0_87 = arith.constant 0 : index
    %c0_88 = arith.constant 0 : index
    %98 = vector.load %arg28[%c0_87, %c0_88] : memref<128x1024xbf16, #tpu.memory_space<vmem>>, vector<128x1024xbf16>
    %cst_89 = arith.constant dense<0.000000e+00> : vector<2x1024xf32>
    %99 = tpu.matmul %97, %98, %cst_89 {dimension_numbers = #tpu.dot_dimension_numbers<[1], [0], [0], [1], [0, 0, 1, 1], [], []>} : vector<2x128xbf16>, vector<128x1024xbf16>, vector<2x1024xf32> -> vector<2x1024xf32>
    %100 = arith.addf %96, %99 : vector<2x1024xf32>
    %c0_90 = arith.constant 0 : index
    %c0_91 = arith.constant 0 : index
    %101 = vector.load %arg29[%c0_90, %c0_91] : memref<1x1024xf32, #tpu.memory_space<vmem>>, vector<1x1024xf32>
    %102 = vector.broadcast %101 : vector<1x1024xf32> to vector<2x1024xf32>
    %103 = arith.addf %100, %102 : vector<2x1024xf32>
    %cst_92 = arith.constant 0.000000e+00 : f32
    %104 = vector.broadcast %cst_92 : f32 to vector<2x1024xf32>
    %105 = arith.maximumf %103, %104 : vector<2x1024xf32>
    %106 = arith.truncf %105 : vector<2x1024xf32> to vector<2x1024xbf16>
    %c0_93 = arith.constant 0 : index
    %c0_94 = arith.constant 0 : index
    %107 = vector.load %arg30[%c0_93, %c0_94] : memref<1024x512xbf16, #tpu.memory_space<vmem>>, vector<1024x512xbf16>
    %cst_95 = arith.constant dense<0.000000e+00> : vector<2x512xf32>
    %108 = tpu.matmul %106, %107, %cst_95 {dimension_numbers = #tpu.dot_dimension_numbers<[1], [0], [0], [1], [0, 0, 1, 1], [], []>} : vector<2x1024xbf16>, vector<1024x512xbf16>, vector<2x512xf32> -> vector<2x512xf32>
    %c0_96 = arith.constant 0 : index
    %c0_97 = arith.constant 0 : index
    %109 = vector.load %arg31[%c0_96, %c0_97] : memref<1x512xf32, #tpu.memory_space<vmem>>, vector<1x512xf32>
    %110 = vector.broadcast %109 : vector<1x512xf32> to vector<2x512xf32>
    %111 = arith.addf %108, %110 : vector<2x512xf32>
    %cst_98 = arith.constant 0.000000e+00 : f32
    %112 = vector.broadcast %cst_98 : f32 to vector<2x512xf32>
    %113 = arith.maximumf %111, %112 : vector<2x512xf32>
    %114 = arith.truncf %113 : vector<2x512xf32> to vector<2x512xbf16>
    %c0_99 = arith.constant 0 : index
    %c0_100 = arith.constant 0 : index
    %115 = vector.load %arg32[%c0_99, %c0_100] : memref<512x128xbf16, #tpu.memory_space<vmem>>, vector<512x128xbf16>
    %cst_101 = arith.constant dense<0.000000e+00> : vector<2x128xf32>
    %116 = tpu.matmul %114, %115, %cst_101 {dimension_numbers = #tpu.dot_dimension_numbers<[1], [0], [0], [1], [0, 0, 1, 1], [], []>} : vector<2x512xbf16>, vector<512x128xbf16>, vector<2x128xf32> -> vector<2x128xf32>
    %c0_102 = arith.constant 0 : index
    %c0_103 = arith.constant 0 : index
    %117 = vector.load %arg33[%c0_102, %c0_103] : memref<1x128xf32, #tpu.memory_space<vmem>>, vector<1x128xf32>
    %118 = vector.broadcast %117 : vector<1x128xf32> to vector<2x128xf32>
    %119 = arith.addf %116, %118 : vector<2x128xf32>
    %c0_104 = arith.constant 0 : index
    %c0_105 = arith.constant 0 : index
    %120 = vector.load %arg34[%c0_104, %c0_105] : memref<2x128xf32, #tpu.memory_space<vmem>>, vector<2x128xf32>
    tpu.vector_store %arg34[%c0_104, %c0_105], %119 {strides = array<i32>} : memref<2x128xf32, #tpu.memory_space<vmem>>, vector<2x128xf32>,
    return
  }
  func.func @transform_0(%arg0: i32) -> (i32, i32) {
    %c0_i32 = arith.constant 0 : i32
    %c0_i32_0 = arith.constant 0 : i32
    %c0_i32_1 = arith.constant 0 : i32
    return %c0_i32, %c0_i32_0 : i32, i32
  }
  func.func @transform_1(%arg0: i32) -> (i32, i32) {
    %c0_i32 = arith.constant 0 : i32
    %c0_i32_0 = arith.constant 0 : i32
    %c0_i32_1 = arith.constant 0 : i32
    return %c0_i32, %c0_i32_0 : i32, i32
  }
  func.func @transform_2(%arg0: i32) -> (i32, i32) {
    %c0_i32 = arith.constant 0 : i32
    %c0_i32_0 = arith.constant 0 : i32
    %c0_i32_1 = arith.constant 0 : i32
    return %c0_i32, %c0_i32_0 : i32, i32
  }
  func.func @transform_3(%arg0: i32) -> (i32, i32) {
    %c0_i32 = arith.constant 0 : i32
    %c0_i32_0 = arith.constant 0 : i32
    %c0_i32_1 = arith.constant 0 : i32
    return %c0_i32, %c0_i32_0 : i32, i32
  }
  func.func @transform_4(%arg0: i32) -> (i32, i32) {
    %c0_i32 = arith.constant 0 : i32
    %c0_i32_0 = arith.constant 0 : i32
    %c0_i32_1 = arith.constant 0 : i32
    return %c0_i32, %c0_i32_0 : i32, i32
  }
  func.func @transform_5(%arg0: i32) -> (i32, i32) {
    %c0_i32 = arith.constant 0 : i32
    %c0_i32_0 = arith.constant 0 : i32
    %c0_i32_1 = arith.constant 0 : i32
    return %c0_i32, %c0_i32_0 : i32, i32
  }
  func.func @transform_6(%arg0: i32) -> (i32, i32) {
    %c0_i32 = arith.constant 0 : i32
    %c0_i32_0 = arith.constant 0 : i32
    %c0_i32_1 = arith.constant 0 : i32
    return %c0_i32, %c0_i32_0 : i32, i32
  }
  func.func @transform_7(%arg0: i32) -> (i32, i32) {
    %c0_i32 = arith.constant 0 : i32
    %c0_i32_0 = arith.constant 0 : i32
    %c0_i32_1 = arith.constant 0 : i32
    return %c0_i32, %c0_i32_0 : i32, i32
  }
  func.func @transform_8(%arg0: i32) -> (i32, i32) {
    %c0_i32 = arith.constant 0 : i32
    %c0_i32_0 = arith.constant 0 : i32
    %c0_i32_1 = arith.constant 0 : i32
    return %c0_i32, %c0_i32_0 : i32, i32
  }
  func.func @transform_9(%arg0: i32) -> (i32, i32) {
    %c0_i32 = arith.constant 0 : i32
    %c0_i32_0 = arith.constant 0 : i32
    %c0_i32_1 = arith.constant 0 : i32
    return %c0_i32, %c0_i32_0 : i32, i32
  }
  func.func @transform_10(%arg0: i32) -> (i32, i32) {
    %c0_i32 = arith.constant 0 : i32
    %c0_i32_0 = arith.constant 0 : i32
    %c0_i32_1 = arith.constant 0 : i32
    return %c0_i32, %c0_i32_0 : i32, i32
  }
  func.func @transform_11(%arg0: i32) -> (i32, i32) {
    %c0_i32 = arith.constant 0 : i32
    %c0_i32_0 = arith.constant 0 : i32
    %c0_i32_1 = arith.constant 0 : i32
    return %c0_i32, %c0_i32_0 : i32, i32
  }
  func.func @transform_12(%arg0: i32) -> (i32, i32) {
    %c0_i32 = arith.constant 0 : i32
    %c0_i32_0 = arith.constant 0 : i32
    %c0_i32_1 = arith.constant 0 : i32
    return %c0_i32, %c0_i32_0 : i32, i32
  }
  func.func @transform_13(%arg0: i32) -> (i32, i32) {
    %c0_i32 = arith.constant 0 : i32
    %c0_i32_0 = arith.constant 0 : i32
    %c0_i32_1 = arith.constant 0 : i32
    return %c0_i32, %c0_i32_0 : i32, i32
  }
  func.func @transform_14(%arg0: i32) -> (i32, i32) {
    %c0_i32 = arith.constant 0 : i32
    %c0_i32_0 = arith.constant 0 : i32
    %c0_i32_1 = arith.constant 0 : i32
    return %c0_i32, %c0_i32_0 : i32, i32
  }
  func.func @transform_15(%arg0: i32) -> (i32, i32) {
    %c0_i32 = arith.constant 0 : i32
    %c0_i32_0 = arith.constant 0 : i32
    %c0_i32_1 = arith.constant 0 : i32
    return %c0_i32, %c0_i32_0 : i32, i32
  }
  func.func @transform_16(%arg0: i32) -> (i32, i32) {
    %c0_i32 = arith.constant 0 : i32
    %c0_i32_0 = arith.constant 0 : i32
    %c0_i32_1 = arith.constant 0 : i32
    return %c0_i32, %c0_i32_0 : i32, i32
  }
  func.func @transform_17(%arg0: i32) -> (i32, i32) {
    %c0_i32 = arith.constant 0 : i32
    %c0_i32_0 = arith.constant 0 : i32
    %c0_i32_1 = arith.constant 0 : i32
    return %c0_i32, %c0_i32_0 : i32, i32
  }
  func.func @transform_18(%arg0: i32) -> (i32, i32) {
    %c0_i32 = arith.constant 0 : i32
    %c0_i32_0 = arith.constant 0 : i32
    %c0_i32_1 = arith.constant 0 : i32
    return %c0_i32, %c0_i32_0 : i32, i32
  }
  func.func @transform_19(%arg0: i32) -> (i32, i32) {
    %c0_i32 = arith.constant 0 : i32
    %c0_i32_0 = arith.constant 0 : i32
    %c0_i32_1 = arith.constant 0 : i32
    return %c0_i32, %c0_i32_0 : i32, i32
  }
  func.func @transform_20(%arg0: i32) -> (i32, i32) {
    %c0_i32 = arith.constant 0 : i32
    %c0_i32_0 = arith.constant 0 : i32
    %c0_i32_1 = arith.constant 0 : i32
    return %c0_i32, %c0_i32_0 : i32, i32
  }
  func.func @transform_21(%arg0: i32) -> (i32, i32) {
    %c0_i32 = arith.constant 0 : i32
    %c0_i32_0 = arith.constant 0 : i32
    %c0_i32_1 = arith.constant 0 : i32
    return %c0_i32, %c0_i32_0 : i32, i32
  }
  func.func @transform_22(%arg0: i32) -> (i32, i32) {
    %c0_i32 = arith.constant 0 : i32
    %c0_i32_0 = arith.constant 0 : i32
    %c0_i32_1 = arith.constant 0 : i32
    return %c0_i32, %c0_i32_0 : i32, i32
  }
  func.func @transform_23(%arg0: i32) -> (i32, i32) {
    %c0_i32 = arith.constant 0 : i32
    %c0_i32_0 = arith.constant 0 : i32
    %c0_i32_1 = arith.constant 0 : i32
    return %c0_i32, %c0_i32_0 : i32, i32
  }
  func.func @transform_24(%arg0: i32) -> (i32, i32) {
    %c0_i32 = arith.constant 0 : i32
    %c0_i32_0 = arith.constant 0 : i32
    %c0_i32_1 = arith.constant 0 : i32
    return %c0_i32, %c0_i32_0 : i32, i32
  }
  func.func @transform_25(%arg0: i32) -> (i32, i32) {
    %c0_i32 = arith.constant 0 : i32
    %c0_i32_0 = arith.constant 0 : i32
    %c0_i32_1 = arith.constant 0 : i32
    return %c0_i32, %c0_i32_0 : i32, i32
  }
  func.func @transform_26(%arg0: i32) -> (i32, i32) {
    %c0_i32 = arith.constant 0 : i32
    %c0_i32_0 = arith.constant 0 : i32
    %c0_i32_1 = arith.constant 0 : i32
    return %c0_i32, %c0_i32_0 : i32, i32
  }
  func.func @transform_27(%arg0: i32) -> (i32, i32) {
    %c0_i32 = arith.constant 0 : i32
    %c0_i32_0 = arith.constant 0 : i32
    %c0_i32_1 = arith.constant 0 : i32
    return %c0_i32, %c0_i32_0 : i32, i32
  }
  func.func @transform_28(%arg0: i32) -> (i32, i32) {
    %c0_i32 = arith.constant 0 : i32
    %c0_i32_0 = arith.constant 0 : i32
    %c0_i32_1 = arith.constant 0 : i32
    return %c0_i32, %c0_i32_0 : i32, i32
  }
  func.func @transform_29(%arg0: i32) -> (i32, i32) {
    %c0_i32 = arith.constant 0 : i32
    %c0_i32_0 = arith.constant 0 : i32
    %c0_i32_1 = arith.constant 0 : i32
    return %c0_i32, %c0_i32_0 : i32, i32
  }
  func.func @transform_30(%arg0: i32) -> (i32, i32) {
    %c0_i32 = arith.constant 0 : i32
    %c0_i32_0 = arith.constant 0 : i32
    %c0_i32_1 = arith.constant 0 : i32
    return %c0_i32, %c0_i32_0 : i32, i32
  }
  func.func @transform_31(%arg0: i32) -> (i32, i32) {
    %c0_i32 = arith.constant 0 : i32
    %c0_i32_0 = arith.constant 0 : i32
    %c0_i32_1 = arith.constant 0 : i32
    return %c0_i32, %c0_i32_0 : i32, i32
  }
  func.func @transform_32(%arg0: i32) -> (i32, i32) {
    %c0_i32 = arith.constant 0 : i32
    %c0_i32_0 = arith.constant 0 : i32
    %c0_i32_1 = arith.constant 0 : i32
    return %c0_i32, %c0_i32_0 : i32, i32
  }
  func.func @transform_33(%arg0: i32) -> (i32, i32) {
    %c0_i32 = arith.constant 0 : i32
    %c0_i32_0 = arith.constant 0 : i32
    %c0_i32_1 = arith.constant 0 : i32
    return %c0_i32, %c0_i32_0 : i32, i32
  }
}

</mosaic_0001>

<bundles_post_ra>
// kernel: gnn_net_forward.1
= control target key start
LH: loop header
LB: loop body
LE: loop exit
PB: predicated region body
PF: predicated region fallthrough
CT: control target
= control target key end

     0   :  { %s12407_s6 = smov 1   ;;  %s12408_s10 = smov 2   ;;  %s13027_s0 = inlined_call_operand.smem [shape: u32[34], index: -1, kind: input, shape index: {}] }
   0x1   :  { %s12486_s5 = sld [smem:[%s13027_s0]]   ;;  %s12409_s14 = smov 3  }
   0x2   :  { %s12491_s9 = sld [smem:[%s13027_s0 + %s12407_s6]]   ;;  %s12410_s18 = smov 4  }
   0x3   :  { %s12496_s13 = sld [smem:[%s13027_s0 + %s12408_s10]]   ;;  %s12411_s22 = smov 5  }
   0x4   :  { %s12501_s17 = sld [smem:[%s13027_s0 + %s12409_s14]]   ;;  %s12412_s26 = smov 6  }
   0x5   :  { %s12506_s21 = sld [smem:[%s13027_s0 + %s12410_s18]]   ;;  %s12413_s30 = smov 7  }
   0x6   :  { %s12511_s25 = sld [smem:[%s13027_s0 + %s12411_s22]]   ;;  %s12414_s4 = smov 8  }
   0x7   :  { %13033 = sst [smem:[#allocation53_spill]] %s12486_s5  ;;  %s12415_s10 = smov 9  }
   0x8   :  { %13034 = sst [smem:[#allocation54_spill]] %s12491_s9  ;;  %s12416_s15 = smov 10  }
   0x9   :  { %13035 = sst [smem:[#allocation55_spill]] %s12496_s13  ;;  %s12417_s20 = smov 11  }
   0xa   :  { %13036 = sst [smem:[#allocation56_spill]] %s12501_s17  ;;  %s12419_s1 = smov 13  }
   0xb   :  { %13037 = sst [smem:[#allocation57_spill]] %s12506_s21  ;;  %s12420_s7 = smov 14  }
   0xc   :  { %13038 = sst [smem:[#allocation58_spill]] %s12511_s25  ;;  %s12422_s22 = smov 16  }
   0xd   :  { %s12516_s29 = sld [smem:[%s13027_s0 + %s12412_s26]]   ;;  %s12418_s26 = smov 12  }
   0xe   :  { %s12521_s3 = sld [smem:[%s13027_s0 + %s12413_s30]]   ;;  %s12423_s28 = smov 17  }
   0xf   :  { %s12526_s8 = sld [smem:[%s13027_s0 + %s12414_s4]]  }
  0x10   :  { %s12531_s14 = sld [smem:[%s13027_s0 + %s12415_s10]]  }
  0x11   :  { %s12536_s19 = sld [smem:[%s13027_s0 + %s12416_s15]]   ;;  %s12421_s15 = smov 15  }
  0x12   :  { %s12541_s24 = sld [smem:[%s13027_s0 + %s12417_s20]]  }
  0x13   :  { %13039 = sst [smem:[#allocation59_spill]] %s12516_s29 }
  0x14   :  { %13040 = sst [smem:[#allocation60_spill]] %s12521_s3 }
  0x15   :  { %s12546_s30 = sld [smem:[%s13027_s0 + %s12418_s26]]  }
  0x16   :  { %s12551_s6 = sld [smem:[%s13027_s0 + %s12419_s1]]  }
  0x17   :  { %s12556_s12 = sld [smem:[%s13027_s0 + %s12420_s7]]   ;;  %s12424_s7 = smov 18  }
  0x18   :  { %s12561_s20 = sld [smem:[%s13027_s0 + %s12421_s15]]   ;;  %s12425_s15 = smov 19  }
  0x19   :  { %s12566_s27 = sld [smem:[%s13027_s0 + %s12422_s22]]   ;;  %s12426_s22 = smov 20  }
  0x1a   :  { %s12571_s4 = sld [smem:[%s13027_s0 + %s12423_s28]]   ;;  %s12427_s28 = smov 21  }
  0x1b   :  { %s12576_s25 = sld [smem:[%s13027_s0 + %s12424_s7]]   ;;  %s12428_s7 = smov 22  }
  0x1c   :  { %s12581_s17 = sld [smem:[%s13027_s0 + %s12425_s15]]   ;;  %s12429_s15 = smov 23  }
  0x1d   :  { %13041 = sst [smem:[#allocation61_spill]] %s12556_s12 }
  0x1e   :  { %s12586_s21 = sld [smem:[%s13027_s0 + %s12426_s22]]   ;;  %s12430_s22 = smov 24  }
  0x1f   :  { %13042 = sst [smem:[#allocation62_spill]] %s12566_s27 }
  0x20   :  { %s12591_s13 = sld [smem:[%s13027_s0 + %s12427_s28]]   ;;  %s12431_s28 = smov 25  }
  0x21   :  { %13043 = sst [smem:[#allocation63_spill]] %s12576_s25 }
  0x22   :  { %s12596_s3 = sld [smem:[%s13027_s0 + %s12428_s7]]   ;;  %s12432_s7 = smov 26  }
  0x23   :  { %s12601_s5 = sld [smem:[%s13027_s0 + %s12429_s15]]   ;;  %s12433_s15 = smov 27  }
  0x24   :  { %13044 = sst [smem:[#allocation64_spill]] %s12586_s21 }
  0x25   :  { %s12606_s9 = sld [smem:[%s13027_s0 + %s12430_s22]]   ;;  %s12434_s22 = smov 28  }
  0x26   :  { %s12611_s29 = sld [smem:[%s13027_s0 + %s12431_s28]]   ;;  %s12435_s28 = smov 29  }
  0x27   :  { %s12621_s21 = sld [smem:[%s13027_s0 + %s12433_s15]]   ;;  %s12437_s15 = smov 31  }
  0x28   :  { %13045 = sst [smem:[#allocation65_spill]] %s12596_s3 }
  0x29   :  { %s12616_s3 = sld [smem:[%s13027_s0 + %s12432_s7]]   ;;  %s12436_s7 = smov 30  }
  0x2a   :  { %s12631_s25 = sld [smem:[%s13027_s0 + %s12435_s28]]   ;;  %s12439_s28 = smov 33  }
  0x2b   :  { %13046 = sst [smem:[#allocation66_spill]] %s12606_s9 }
  0x2c   :  { %s12626_s9 = sld [smem:[%s13027_s0 + %s12434_s22]]   ;;  %s12438_s22 = smov 32  }
  0x2d   :  { %s12641_s27 = sld [smem:[%s13027_s0 + %s12437_s15]]  }
  0x2e   :  { %s12651_s12 = sld [smem:[%s13027_s0 + %s12439_s28]]  }
  0x2f   :  { %13047 = sst [smem:[#allocation67_spill]] %s12616_s3 }
  0x30   :  { %s12636_s3 = sld [smem:[%s13027_s0 + %s12436_s7]]  }
  0x32   :  { %13048 = sst [smem:[#allocation68_spill]] %s12626_s9 }
  0x33   :  { %s12646_s9 = sld [smem:[%s13027_s0 + %s12438_s22]]  }
  0x34   :  { %72 = vsyncpa [#allocation3], 0 }
  0x35   :  { %73 = vsyncpa [#allocation5], 0 }
  0x36   :  { %74 = vsyncpa [#allocation8], 0 }
  0x37   :  { %75 = vsyncpa [#allocation11], 0 }
  0x38   :  { %76 = vsyncpa [#allocation14], 0 }
  0x39   :  { %77 = vsyncpa [#allocation17], 0 }
  0x3a   :  { %78 = vsyncpa [#allocation20], 0 }
  0x3b   :  { %79 = vsyncpa [#allocation23], 0 }
  0x3c   :  { %80 = vsyncpa [#allocation26], 0 }
  0x3d   :  { %81 = vsyncpa [#allocation29], 0 }
  0x3e   :  { %82 = vsyncpa [#allocation32], 0 }
  0x3f   :  { %83 = vsyncpa [#allocation35], 0 }
  0x40   :  { %84 = vsyncpa [#allocation38], 0  ;;  %s12440_s7 = smov [#allocation4]   ;;  %s12441_s11 = smov [#allocation7]  }
  0x41   :  { %s119_s10 = sshll.u32 %s12440_s7, 4  ;;  %s141_s15 = sshll.u32 %s12441_s11, 4  ;;  %s120_s10 = int_to_ptr.vmem [resolvable:$true] %s119_s10  ;;  %s142_s15 = int_to_ptr.vmem [resolvable:$true] %s141_s15 }
  0x42   :  { %s11889_s0 = scalar_lea.vmem %s120_s10, 32  ;;  %p11894_p1 = scmp.lt.s32.totalorder %s120_s10, %s120_s10 }
  0x43   :  { %p11890_p0 = scmp.ne.s32.totalorder %s120_s10, %s11889_s0  ;;  %p11895_p2 = scmp.lt.s32.totalorder %s11889_s0, %s11889_s0 }
  0x45   :  { %p11896_p3 = por %p11895_p2, %p11894_p1 }
  0x47   :  { %p11897_p4 = pnand %p11896_p3, %p11890_p0 }
  0x49   :  { %11900 = shalt.err (!%p11897_p4)
}
  0x4a   :  { %122 = dma.hbm_to_vmem [thread:$0]  %s12531_s14, 32, %s120_s10, [#allocation5]  }
  0x4b   :  { %s11909_s16 = scalar_lea.vmem %s142_s15, 48  ;;  %s11913_s18 = scalar_lea.vmem %s142_s15, 64 }
  0x4c   :  { %p11910_p5 = scmp.ne.s32.totalorder %s142_s15, %s11909_s16  ;;  %p11914_p6 = scmp.lt.s32.totalorder %s142_s15, %s142_s15 }
  0x4d   :  { %p11915_p7 = scmp.lt.s32.totalorder %s11913_s18, %s11909_s16 }
  0x4f   :  { %p11916_p8 = por %p11915_p7, %p11914_p6 }
  0x51   :  { %p11917_p9 = pnand %p11916_p8, %p11910_p5 }
  0x53   :  { %11920 = shalt.err (!%p11917_p9)
}
  0x54   :  { %144 = dma.hbm_to_vmem [thread:$0]  %s12541_s24, 48, %s142_s15, [#allocation8]  }
  0x55   :  { %s12442_s22 = smov [#allocation10]   ;;  %s12443_s26 = smov [#allocation13]  }
  0x56   :  { %s163_s23 = sshll.u32 %s12442_s22, 4  ;;  %s185_s28 = sshll.u32 %s12443_s26, 4  ;;  %s164_s23 = int_to_ptr.vmem [resolvable:$true] %s163_s23  ;;  %s186_s28 = int_to_ptr.vmem [resolvable:$true] %s185_s28 }
  0x57   :  { %s11929_s1 = scalar_lea.vmem %s164_s23, 128  ;;  %p11934_p11 = scmp.lt.s32.totalorder %s164_s23, %s164_s23 }
  0x58   :  { %p11930_p10 = scmp.ne.s32.totalorder %s164_s23, %s11929_s1  ;;  %p11935_p12 = scmp.lt.s32.totalorder %s11929_s1, %s11929_s1 }
  0x5a   :  { %p11936_p13 = por %p11935_p12, %p11934_p11 }
  0x5c   :  { %p11937_p0 = pnand %p11936_p13, %p11930_p10 }
  0x5e   :  { %11940 = shalt.err (!%p11937_p0)
}
  0x5f   :  { %166 = dma.hbm_to_vmem [thread:$0]  %s12551_s6, 128, %s164_s23, [#allocation11]  }
  0x60   :  { %s11949_s14 = scalar_lea.vmem %s186_s28, 16  ;;  %s11953_s2 = scalar_lea.vmem %s186_s28, 32 }
  0x61   :  { %p11950_p1 = scmp.ne.s32.totalorder %s186_s28, %s11949_s14  ;;  %p11954_p2 = scmp.lt.s32.totalorder %s186_s28, %s186_s28 }
  0x62   :  { %p11955_p3 = scmp.lt.s32.totalorder %s11953_s2, %s11949_s14 }
  0x64   :  { %p11956_p4 = por %p11955_p3, %p11954_p2 }
  0x66   :  { %p11957_p5 = pnand %p11956_p4, %p11950_p1 }
  0x68   :  { %11960 = shalt.err (!%p11957_p5)
}
  0x69   :  { %188 = dma.hbm_to_vmem [thread:$0]  %s12561_s20, 16, %s186_s28, [#allocation14]  }
  0x6a   :  { %s12444_s24 = smov [#allocation16]   ;;  %s12445_s10 = smov [#allocation19]  }
  0x6b   :  { %s207_s7 = sshll.u32 %s12444_s24, 4  ;;  %s229_s11 = sshll.u32 %s12445_s10, 4  ;;  %s208_s7 = int_to_ptr.vmem [resolvable:$true] %s207_s7  ;;  %s230_s11 = int_to_ptr.vmem [resolvable:$true] %s229_s11 }
  0x6c   :  { %s11969_s15 = scalar_lea.vmem %s208_s7, 16  ;;  %s11973_s0 = scalar_lea.vmem %s208_s7, 32 }
  0x6d   :  { %p11970_p6 = scmp.ne.s32.totalorder %s208_s7, %s11969_s15  ;;  %p11974_p7 = scmp.lt.s32.totalorder %s208_s7, %s208_s7 }
  0x6e   :  { %p11975_p8 = scmp.lt.s32.totalorder %s11973_s0, %s11969_s15 }
  0x70   :  { %p11976_p9 = por %p11975_p8, %p11974_p7 }
  0x72   :  { %p11977_p10 = pnand %p11976_p9, %p11970_p6 }
  0x74   :  { %11980 = shalt.err (!%p11977_p10)
}
  0x75   :  { %210 = dma.hbm_to_vmem [thread:$0]  %s12571_s4, 16, %s208_s7, [#allocation17]  }
  0x76   :  { %s11989_s6 = scalar_lea.vmem %s230_s11, 16  ;;  %s11993_s16 = scalar_lea.vmem %s230_s11, 32 }
  0x77   :  { %p11990_p11 = scmp.ne.s32.totalorder %s230_s11, %s11989_s6  ;;  %p11994_p12 = scmp.lt.s32.totalorder %s230_s11, %s230_s11 }
  0x78   :  { %p11995_p13 = scmp.lt.s32.totalorder %s11993_s16, %s11989_s6 }
  0x7a   :  { %p11996_p0 = por %p11995_p13, %p11994_p12 }
  0x7c   :  { %p11997_p1 = pnand %p11996_p0, %p11990_p11 }
  0x7e   :  { %12000 = shalt.err (!%p11997_p1)
}
  0x7f   :  { %232 = dma.hbm_to_vmem [thread:$0]  %s12581_s17, 16, %s230_s11, [#allocation20]  }
  0x80   :  { %s12446_s20 = smov [#allocation22]   ;;  %s12447_s22 = smov [#allocation25]  }
  0x81   :  { %s251_s18 = sshll.u32 %s12446_s20, 4  ;;  %s273_s23 = sshll.u32 %s12447_s22, 4  ;;  %s252_s18 = int_to_ptr.vmem [resolvable:$true] %s251_s18  ;;  %s274_s23 = int_to_ptr.vmem [resolvable:$true] %s273_s23 }
  0x82   :  { %s12009_s26 = scalar_lea.vmem %s252_s18, 32  ;;  %p12014_p3 = scmp.lt.s32.totalorder %s252_s18, %s252_s18 }
  0x83   :  { %p12010_p2 = scmp.ne.s32.totalorder %s252_s18, %s12009_s26  ;;  %p12015_p4 = scmp.lt.s32.totalorder %s12009_s26, %s12009_s26 }
  0x85   :  { %p12016_p5 = por %p12015_p4, %p12014_p3 }
  0x87   :  { %p12017_p6 = pnand %p12016_p5, %p12010_p2 }
  0x89   :  { %12020 = shalt.err (!%p12017_p6)
}
  0x8a   :  { %254 = dma.hbm_to_vmem [thread:$0]  %s12591_s13, 32, %s252_s18, [#allocation23]  }
  0x8b   :  { %s12029_s4 = scalar_lea.vmem %s274_s23, 128  ;;  %p12034_p8 = scmp.lt.s32.totalorder %s274_s23, %s274_s23 }
  0x8c   :  { %p12030_p7 = scmp.ne.s32.totalorder %s274_s23, %s12029_s4  ;;  %p12035_p9 = scmp.lt.s32.totalorder %s12029_s4, %s12029_s4 }
  0x8e   :  { %p12036_p10 = por %p12035_p9, %p12034_p8 }
  0x90   :  { %p12037_p11 = pnand %p12036_p10, %p12030_p7 }
  0x92   :  { %12040 = shalt.err (!%p12037_p11)
}
  0x93   :  { %276 = dma.hbm_to_vmem [thread:$0]  %s12601_s5, 128, %s274_s23, [#allocation26]  }
  0x94   :  { %s12448_s17 = smov [#allocation28]  }
  0x95   :  { %s295_s28 = sshll.u32 %s12448_s17, 4  ;;  %s296_s28 = int_to_ptr.vmem [resolvable:$true] %s295_s28 }
  0x96   :  { %s12049_s1 = scalar_lea.vmem %s296_s28, 16  ;;  %s12053_s14 = scalar_lea.vmem %s296_s28, 32 }
  0x97   :  { %p12050_p12 = scmp.ne.s32.totalorder %s296_s28, %s12049_s1  ;;  %p12054_p13 = scmp.lt.s32.totalorder %s296_s28, %s296_s28 }
  0x98   :  { %p12055_p0 = scmp.lt.s32.totalorder %s12053_s14, %s12049_s1 }
  0x9a   :  { %p12056_p1 = por %p12055_p0, %p12054_p13 }
  0x9c   :  { %p12057_p2 = pnand %p12056_p1, %p12050_p12 }
  0x9e   :  { %12060 = shalt.err (!%p12057_p2)
}
  0x9f   :  { %298 = dma.hbm_to_vmem [thread:$0]  %s12611_s29, 16, %s296_s28, [#allocation29]  }
  0xa0   :  { %s12449_s13 = smov [#allocation31]   ;;  %s12450_s24 = smov [#allocation34]  }
  0xa1   :  { %s316_s2 = sshll.u32 %s12449_s13, 4  ;;  %s338_s7 = sshll.u32 %s12450_s24, 4  ;;  %s317_s2 = int_to_ptr.vmem [resolvable:$true] %s316_s2  ;;  %s339_s7 = int_to_ptr.vmem [resolvable:$true] %s338_s7 }
  0xa2   :  { %s12069_s10 = scalar_lea.vmem %s317_s2, 8192  ;;  %p12074_p4 = scmp.lt.s32.totalorder %s317_s2, %s317_s2 }
  0xa3   :  { %p12070_p3 = scmp.ne.s32.totalorder %s317_s2, %s12069_s10  ;;  %p12075_p5 = scmp.lt.s32.totalorder %s12069_s10, %s12069_s10 }
  0xa5   :  { %p12076_p6 = por %p12075_p5, %p12074_p4 }
  0xa7   :  { %p12077_p7 = pnand %p12076_p6, %p12070_p3 }
  0xa9   :  { %12080 = shalt.err (!%p12077_p7)
}
  0xaa   :  { %s12451_s5 = smov 512   ;;  %s12452_s11 = smov 32  }
  0xab   :  { %322 = dma.hbm_to_vmem [thread:$0]  %s12621_s21, 8192, %s317_s2, [#allocation32], %s12451_s5, %s12451_s5, %s12452_s11  }
  0xac   :  { %s12089_s29 = scalar_lea.vmem %s339_s7, 32768  ;;  %p12094_p9 = scmp.lt.s32.totalorder %s339_s7, %s339_s7 }
  0xad   :  { %p12090_p8 = scmp.ne.s32.totalorder %s339_s7, %s12089_s29  ;;  %p12095_p10 = scmp.lt.s32.totalorder %s12089_s29, %s12089_s29 }
  0xaf   :  { %p12096_p11 = por %p12095_p10, %p12094_p9 }
  0xb1   :  { %p12097_p12 = pnand %p12096_p11, %p12090_p8 }
  0xb3   :  { %12100 = shalt.err (!%p12097_p12)
}
  0xb4   :  { %s12453_s15 = smov 256   ;;  %s12454_s0 = smov 16  }
  0xb5   :  { %344 = dma.hbm_to_vmem [thread:$0]  %s12631_s25, 32768, %s339_s7, [#allocation35], %s12453_s15, %s12453_s15, %s12454_s0  }
  0xb6   :  { %s12455_s6 = smov [#allocation37]   ;;  %s12456_s20 = smov [#allocation2]  }
  0xb7   :  { %s360_s16 = sshll.u32 %s12455_s6, 4  ;;  %s106_s18 = sshll.u32 %s12456_s20, 4  ;;  %s361_s16 = int_to_ptr.vmem [resolvable:$true] %s360_s16  ;;  %s107_s18 = int_to_ptr.vmem [resolvable:$true] %s106_s18 }
  0xb8   :  { %s12109_s22 = scalar_lea.vmem %s361_s16, 4096  ;;  %p12114_p0 = scmp.lt.s32.totalorder %s361_s16, %s361_s16 }
  0xb9   :  { %p12110_p13 = scmp.ne.s32.totalorder %s361_s16, %s12109_s22  ;;  %p12115_p1 = scmp.lt.s32.totalorder %s12109_s22, %s12109_s22 }
  0xbb   :  { %p12116_p2 = por %p12115_p1, %p12114_p0 }
  0xbd   :  { %p12117_p3 = pnand %p12116_p2, %p12110_p13 }
  0xbf   :  { %12120 = shalt.err (!%p12117_p3)
}
  0xc0   :  { %s12457_s21 = smov 64   ;;  %s12458_s23 = smov 4  }
  0xc1   :  { %366 = dma.hbm_to_vmem [thread:$0]  %s12641_s27, 4096, %s361_s16, [#allocation38], %s12457_s21, %s12457_s21, %s12458_s23  }
  0xc2   :  { %s12129_s25 = scalar_lea.vmem %s107_s18, 2048  ;;  %p12134_p5 = scmp.lt.s32.totalorder %s107_s18, %s107_s18 }
  0xc3   :  { %p12130_p4 = scmp.ne.s32.totalorder %s107_s18, %s12129_s25  ;;  %p12135_p6 = scmp.lt.s32.totalorder %s12129_s25, %s12129_s25 }
  0xc5   :  { %p12136_p7 = por %p12135_p6, %p12134_p5 }
  0xc7   :  { %p12137_p8 = pnand %p12136_p7, %p12130_p4 }
  0xc9   :  { %12140 = shalt.err (!%p12137_p8)
}
  0xca   :  { %s12459_s26 = smov 128   ;;  %s12460_s4 = smov 8  }
  0xcb   :  { %112 = dma.hbm_to_vmem [thread:$0]  %s12526_s8, 2048, %s107_s18, [#allocation3], %s12459_s26, %s12459_s26, %s12460_s4  }
  0xcc   :  { %s12461_s17 = smov [#allocation6]  }
  0xcd   :  { %s128_s28 = sshll.u32 %s12461_s17, 4  ;;  %s129_s28 = int_to_ptr.vmem [resolvable:$true] %s128_s28 }
  0xce   :  { %s12149_s1 = scalar_lea.vmem %s129_s28, 6144  ;;  %p12154_p10 = scmp.lt.s32.totalorder %s129_s28, %s129_s28 }
  0xcf   :  { %p12150_p9 = scmp.ne.s32.totalorder %s129_s28, %s12149_s1  ;;  %p12155_p11 = scmp.lt.s32.totalorder %s12149_s1, %s12149_s1 }
  0xd1   :  { %p12156_p12 = por %p12155_p11, %p12154_p10 }
  0xd3   :  { %p12157_p13 = pnand %p12156_p12, %p12150_p9 }
  0xd5   :  { %12160 = shalt.err (!%p12157_p13)
}
  0xd6   :  { %s12462_s27 = smov 192   ;;  %s12463_s14 = smov 12  }
  0xd7   :  { %134 = dma.hbm_to_vmem [thread:$0]  %s12536_s19, 6144, %s129_s28, [#allocation5], %s12462_s27, %s12462_s27, %s12463_s14  }
  0xd8   :  { %s12464_s13 = smov [#allocation9]   ;;  %s12465_s24 = smov [#allocation12]  }
  0xd9   :  { %s150_s2 = sshll.u32 %s12464_s13, 4  ;;  %s172_s7 = sshll.u32 %s12465_s24, 4  ;;  %s151_s2 = int_to_ptr.vmem [resolvable:$true] %s150_s2  ;;  %s173_s7 = int_to_ptr.vmem [resolvable:$true] %s172_s7 }
  0xda   :  { %s12169_s8 = scalar_lea.vmem %s151_s2, 24576  ;;  %p12174_p1 = scmp.lt.s32.totalorder %s151_s2, %s151_s2 }
  0xdb   :  { %p12170_p0 = scmp.ne.s32.totalorder %s151_s2, %s12169_s8  ;;  %p12175_p2 = scmp.lt.s32.totalorder %s12169_s8, %s12169_s8 }
  0xdd   :  { %p12176_p3 = por %p12175_p2, %p12174_p1 }
  0xdf   :  { %p12177_p4 = pnand %p12176_p3, %p12170_p0 }
  0xe1   :  { %12180 = shalt.err (!%p12177_p4)
}
  0xe2   :  { %156 = dma.hbm_to_vmem [thread:$0]  %s12546_s30, 24576, %s151_s2, [#allocation8], %s12451_s5, %s12451_s5, %s12452_s11  }
  0xe3   :  { %s12189_s10 = scalar_lea.vmem %s173_s7, 8192  ;;  %p12194_p6 = scmp.lt.s32.totalorder %s173_s7, %s173_s7 }
  0xe4   :  { %p12190_p5 = scmp.ne.s32.totalorder %s173_s7, %s12189_s10  ;;  %p12195_p7 = scmp.lt.s32.totalorder %s12189_s10, %s12189_s10 }
  0xe6   :  { %p12196_p8 = por %p12195_p7, %p12194_p6 }
  0xe8   :  { %p12197_p9 = pnand %p12196_p8, %p12190_p5 }
  0xea   :  { %12200 = shalt.err (!%p12197_p9)
}
  0xeb   :  { %s13049_s19 = sld [smem:[#allocation61_spill]]  ;;  %s12466_s29 = smov [#allocation15]  }
  0xec   :  { %s194_s15 = sshll.u32 %s12466_s29, 4  ;;  %s12467_s0 = smov [#allocation18]   ;;  %s195_s15 = int_to_ptr.vmem [resolvable:$true] %s194_s15 }
  0xed   :  { %s216_s6 = sshll.u32 %s12467_s0, 4  ;;  %s12209_s16 = scalar_lea.vmem %s195_s15, 1024  ;;  %s217_s6 = int_to_ptr.vmem [resolvable:$true] %s216_s6 }
  0xee   :  { %p12210_p10 = scmp.ne.s32.totalorder %s195_s15, %s12209_s16  ;;  %p12214_p11 = scmp.lt.s32.totalorder %s195_s15, %s195_s15 }
  0xef   :  { %p12215_p12 = scmp.lt.s32.totalorder %s12209_s16, %s12209_s16 }
  0xf1   :  { %178 = dma.hbm_to_vmem [thread:$0]  %s13049_s19, 8192, %s173_s7, [#allocation11], %s12457_s21, %s12457_s21, %s12458_s23  }
  0xf2   :  { %p12216_p13 = por %p12215_p12, %p12214_p11 }
  0xf4   :  { %p12217_p0 = pnand %p12216_p13, %p12210_p10 }
  0xf6   :  { %12220 = shalt.err (!%p12217_p0)
}
  0xf7   :  { %s13050_s30 = sld [smem:[#allocation62_spill]]  ;;  %s12229_s20 = scalar_lea.vmem %s217_s6, 1024 }
  0xf8   :  { %p12230_p1 = scmp.ne.s32.totalorder %s217_s6, %s12229_s20  ;;  %p12234_p2 = scmp.lt.s32.totalorder %s217_s6, %s217_s6 }
  0xf9   :  { %p12235_p3 = scmp.lt.s32.totalorder %s12229_s20, %s12229_s20 }
  0xfb   :  { %p12236_p4 = por %p12235_p3, %p12234_p2 }
  0xfd   :  { %200 = dma.hbm_to_vmem [thread:$0]  %s13050_s30, 1024, %s195_s15, [#allocation14], %s12457_s21, %s12457_s21, %s12458_s23  }
  0xfe   :  { %p12237_p5 = pnand %p12236_p4, %p12230_p1 }
 0x100   :  { %12240 = shalt.err (!%p12237_p5)
}
 0x101   :  { %s13051_s18 = sld [smem:[#allocation63_spill]]  ;;  %s12468_s22 = smov [#allocation21]  }
 0x102   :  { %s238_s25 = sshll.u32 %s12468_s22, 4  ;;  %s12469_s17 = smov [#allocation24]   ;;  %s239_s25 = int_to_ptr.vmem [resolvable:$true] %s238_s25 }
 0x103   :  { %s260_s28 = sshll.u32 %s12469_s17, 4  ;;  %s12249_s1 = scalar_lea.vmem %s239_s25, 2048  ;;  %s261_s28 = int_to_ptr.vmem [resolvable:$true] %s260_s28 }
 0x104   :  { %p12250_p6 = scmp.ne.s32.totalorder %s239_s25, %s12249_s1  ;;  %p12254_p7 = scmp.lt.s32.totalorder %s239_s25, %s239_s25 }
 0x105   :  { %p12255_p8 = scmp.lt.s32.totalorder %s12249_s1, %s12249_s1 }
 0x107   :  { %222 = dma.hbm_to_vmem [thread:$0]  %s13051_s18, 1024, %s217_s6, [#allocation17], %s12457_s21, %s12457_s21, %s12458_s23  }
 0x108   :  { %p12256_p9 = por %p12255_p8, %p12254_p7 }
 0x10a   :  { %p12257_p10 = pnand %p12256_p9, %p12250_p6 }
 0x10c   :  { %12260 = shalt.err (!%p12257_p10)
}
 0x10d   :  { %s13052_s27 = sld [smem:[#allocation64_spill]]  ;;  %s12269_s14 = scalar_lea.vmem %s261_s28, 16384 }
 0x10e   :  { %p12270_p11 = scmp.ne.s32.totalorder %s261_s28, %s12269_s14  ;;  %p12274_p12 = scmp.lt.s32.totalorder %s261_s28, %s261_s28 }
 0x10f   :  { %p12275_p13 = scmp.lt.s32.totalorder %s12269_s14, %s12269_s14 }
 0x111   :  { %p12276_p0 = por %p12275_p13, %p12274_p12 }
 0x113   :  { %244 = dma.hbm_to_vmem [thread:$0]  %s13052_s27, 2048, %s239_s25, [#allocation20], %s12459_s26, %s12459_s26, %s12460_s4  }
 0x114   :  { %p12277_p1 = pnand %p12276_p0, %p12270_p11 }
 0x116   :  { %12280 = shalt.err (!%p12277_p1)
}
 0x117   :  { %s13053_s13 = sld [smem:[#allocation65_spill]]  ;;  %s12470_s2 = smov [#allocation27]  }
 0x118   :  { %s282_s24 = sshll.u32 %s12470_s2, 4  ;;  %s12471_s7 = smov [#allocation30]   ;;  %s283_s24 = int_to_ptr.vmem [resolvable:$true] %s282_s24 }
 0x119   :  { %s304_s8 = sshll.u32 %s12471_s7, 4  ;;  %s12289_s10 = scalar_lea.vmem %s283_s24, 8192  ;;  %s305_s8 = int_to_ptr.vmem [resolvable:$true] %s304_s8 }
 0x11a   :  { %p12290_p2 = scmp.ne.s32.totalorder %s283_s24, %s12289_s10  ;;  %p12294_p3 = scmp.lt.s32.totalorder %s283_s24, %s283_s24 }
 0x11b   :  { %p12295_p4 = scmp.lt.s32.totalorder %s12289_s10, %s12289_s10 }
 0x11d   :  { %266 = dma.hbm_to_vmem [thread:$0]  %s13053_s13, 16384, %s261_s28, [#allocation23], %s12451_s5, %s12451_s5, %s12452_s11  }
 0x11e   :  { %p12296_p5 = por %p12295_p4, %p12294_p3 }
 0x120   :  { %p12297_p6 = pnand %p12296_p5, %p12290_p2 }
 0x122   :  { %12300 = shalt.err (!%p12297_p6)
}
 0x123   :  { %s13054_s26 = sld [smem:[#allocation66_spill]]  ;;  %s12309_s4 = scalar_lea.vmem %s305_s8, 8192 }
 0x124   :  { %p12310_p7 = scmp.ne.s32.totalorder %s305_s8, %s12309_s4  ;;  %p12314_p8 = scmp.lt.s32.totalorder %s305_s8, %s305_s8 }
 0x125   :  { %p12315_p9 = scmp.lt.s32.totalorder %s12309_s4, %s12309_s4 }
 0x127   :  { %p12316_p10 = por %p12315_p9, %p12314_p8 }
 0x129   :  { %288 = dma.hbm_to_vmem [thread:$0]  %s13054_s26, 8192, %s283_s24, [#allocation26], %s12457_s21, %s12457_s21, %s12458_s23  }
 0x12a   :  { %p12317_p11 = pnand %p12316_p10, %p12310_p7 }
 0x12c   :  { %12320 = shalt.err (!%p12317_p11)
}
 0x12d   :  { %s13055_s19 = sld [smem:[#allocation67_spill]]  ;;  %s12472_s29 = smov [#allocation33]  }
 0x12e   :  { %s329_s15 = sshll.u32 %s12472_s29, 4  ;;  %s12473_s0 = smov [#allocation36]   ;;  %s330_s15 = int_to_ptr.vmem [resolvable:$true] %s329_s15 }
 0x12f   :  { %s351_s6 = sshll.u32 %s12473_s0, 4  ;;  %s12329_s16 = scalar_lea.vmem %s330_s15, 128  ;;  %s352_s6 = int_to_ptr.vmem [resolvable:$true] %s351_s6 }
 0x130   :  { %p12330_p12 = scmp.ne.s32.totalorder %s330_s15, %s12329_s16  ;;  %p12334_p13 = scmp.lt.s32.totalorder %s330_s15, %s330_s15 }
 0x131   :  { %p12335_p0 = scmp.lt.s32.totalorder %s12329_s16, %s12329_s16 }
 0x133   :  { %310 = dma.hbm_to_vmem [thread:$0]  %s13055_s19, 8192, %s305_s8, [#allocation29], %s12451_s5, %s12451_s5, %s12452_s11  }
 0x134   :  { %p12336_p1 = por %p12335_p0, %p12334_p13 }
 0x136   :  { %p12337_p2 = pnand %p12336_p1, %p12330_p12 }
 0x138   :  { %12340 = shalt.err (!%p12337_p2)
}
 0x139   :  { %s13056_s21 = sld [smem:[#allocation68_spill]]  ;;  %s12349_s23 = scalar_lea.vmem %s352_s6, 64 }
 0x13a   :  { %p12350_p3 = scmp.ne.s32.totalorder %s352_s6, %s12349_s23  ;;  %p12354_p4 = scmp.lt.s32.totalorder %s352_s6, %s352_s6 }
 0x13b   :  { %p12355_p5 = scmp.lt.s32.totalorder %s12349_s23, %s12349_s23 }
 0x13d   :  { %p12356_p6 = por %p12355_p5, %p12354_p4 }
 0x13f   :  { %332 = dma.hbm_to_vmem [thread:$0]  %s13056_s21, 128, %s330_s15, [#allocation32]  }
 0x140   :  { %p12357_p7 = pnand %p12356_p6, %p12350_p3 }
 0x142   :  { %12360 = shalt.err (!%p12357_p7)
}
 0x143   :  { %354 = dma.hbm_to_vmem [thread:$0]  %s12636_s3, 64, %s352_s6, [#allocation35]  }
 0x144   :  { %s12474_s5 = smov [#allocation39]  }
 0x145   :  { %s373_s11 = sshll.u32 %s12474_s5, 4  ;;  %s374_s11 = int_to_ptr.vmem [resolvable:$true] %s373_s11 }
 0x146   :  { %s12369_s30 = scalar_lea.vmem %s374_s11, 16  ;;  %s12373_s20 = scalar_lea.vmem %s374_s11, 32 }
 0x147   :  { %p12370_p8 = scmp.ne.s32.totalorder %s374_s11, %s12369_s30  ;;  %p12374_p9 = scmp.lt.s32.totalorder %s374_s11, %s374_s11 }
 0x148   :  { %p12375_p10 = scmp.lt.s32.totalorder %s12373_s20, %s12369_s30 }
 0x14a   :  { %p12376_p11 = por %p12375_p10, %p12374_p9 }
 0x14c   :  { %p12377_p12 = pnand %p12376_p11, %p12370_p8 }
 0x14e   :  { %12380 = shalt.err (!%p12377_p12)
}
 0x14f   :  { %376 = dma.hbm_to_vmem [thread:$0]  %s12646_s9, 16, %s374_s11, [#allocation38]  }
 0x150   :  { %12381 = dma.done.wait [#allocation3], 2048  }
 0x151   :  { %12382 = vsyncadd [#allocation3], 4294965248 }
 0x152   :  { %12383 = dma.done.wait [#allocation5], 6176  }
 0x153   :  { %12384 = vsyncadd [#allocation5], 4294961120 }
 0x154   :  { %12385 = dma.done.wait [#allocation8], 24624  }
 0x155   :  { %12386 = vsyncadd [#allocation8], 4294942672 }
 0x156   :  { %12387 = dma.done.wait [#allocation11], 8320  }
 0x157   :  { %12388 = vsyncadd [#allocation11], 4294958976 }
 0x158   :  { %12389 = dma.done.wait [#allocation14], 1040  }
 0x159   :  { %12390 = vsyncadd [#allocation14], 4294966256 }
 0x15a   :  { %12391 = dma.done.wait [#allocation17], 1040  }
 0x15b   :  { %12392 = vsyncadd [#allocation17], 4294966256 }
 0x15c   :  { %12393 = dma.done.wait [#allocation20], 2064  }
 0x15d   :  { %12394 = vsyncadd [#allocation20], 4294965232 }
 0x15e   :  { %12395 = dma.done.wait [#allocation23], 16416  }
 0x15f   :  { %12396 = vsyncadd [#allocation23], 4294950880 }
 0x160   :  { %12397 = dma.done.wait [#allocation26], 8320  }
 0x161   :  { %12398 = vsyncadd [#allocation26], 4294958976 }
 0x162   :  { %12399 = dma.done.wait [#allocation29], 8208  }
 0x163   :  { %12400 = vsyncadd [#allocation29], 4294959088 }
 0x164   :  { %12401 = dma.done.wait [#allocation32], 8320  }
 0x165   :  { %12402 = vsyncadd [#allocation32], 4294958976 }
 0x166   :  { %12403 = dma.done.wait [#allocation35], 32832  }
 0x167   :  { %12404 = vsyncadd [#allocation35], 4294934464 }
 0x168   :  { %12405 = dma.done.wait [#allocation38], 4112  }
 0x169   :  { %12406 = vsyncadd [#allocation38], 4294963184  ;;  %s13057_s9 = sld [smem:[#allocation59_spill]]  ;;  %v12475_v0 = vmov 0.0   ;;  %vm12476_vm0 = vmmov 0   ;;  %vm570_vm1 = vcmask 130048  }
 0x16a   :  { %11018 = vmatprep.subr.bf16.mxu0 %v12475_v0  ;;  %11034 = vmatprep.mubr.msk.bf16.mxu0 %vm12476_vm0, %v12475_v0  ;;  %s13058_s3 = sld [smem:[#allocation54_spill]]  ;;  %v11210_v15 = vld [vmem:[#allocation2 + $0x74] ss:$8 sps:$4 sm:$0xff]   ;;  %v11208_v18 = vld [vmem:[#allocation2 + $0x70] ss:$8 sps:$4 sm:$0xff]   ;;  %v12477_v34 = vmov 0  }
 0x16b   :  { %s13059_s18 = sld [smem:[#allocation53_spill]]  ;;  %v11213_v19 = vld [vmem:[#allocation2 + $0x64] ss:$8 sps:$4 sm:$0xff]   ;;  %v11211_v21 = vld [vmem:[#allocation2 + $0x60] ss:$8 sps:$4 sm:$0xff]   ;;  %vm3970_vm2 = vcmask 1043456  }
 0x16c   :  { %v11216_v22 = vld [vmem:[#allocation2 + $0x54] ss:$8 sps:$4 sm:$0xff]   ;;  %v11214_v23 = vld [vmem:[#allocation2 + $0x50] ss:$8 sps:$4 sm:$0xff]   ;;  %v11219_v24 = vld [vmem:[#allocation2 + $0x44] ss:$8 sps:$4 sm:$0xff]  }
 0x16d   :  { %v11217_v25 = vld [vmem:[#allocation2 + $0x40] ss:$8 sps:$4 sm:$0xff]   ;;  %v11222_v26 = vld [vmem:[#allocation2 + $0x34] ss:$8 sps:$4 sm:$0xff]   ;;  %v11220_v27 = vld [vmem:[#allocation2 + $0x30] ss:$8 sps:$4 sm:$0xff]  }
 0x16e   :  { %s13060_s22 = sld [smem:[#allocation60_spill]]  ;;  %v11225_v28 = vld [vmem:[#allocation2 + $0x24] ss:$8 sps:$4 sm:$0xff]   ;;  %v11223_v29 = vld [vmem:[#allocation2 + $0x20] ss:$8 sps:$4 sm:$0xff]   ;;  %vm3960_vm3 = vcmask 162816  }
 0x16f   :  { %v11200_v1 = vld [vmem:[%s13057_s9 + $0x38] sm:$0xff]   ;;  %v11201_v2 = vld [vmem:[%s13057_s9 + $0x30] sm:$0xff]   ;;  %v11202_v3 = vld [vmem:[%s13057_s9 + $0x28] sm:$0xff]   ;;  %s13061_s25 = sld [smem:[#allocation55_spill]] }
 0x170   :  { %11019 = vmatpush3.bf16.msra.mxu0 %v11200_v1  ;;  %v11203_v4 = vld [vmem:[%s13057_s9 + $0x20] sm:$0xff]   ;;  %v11204_v5 = vld [vmem:[%s13057_s9 + $0x18] sm:$0xff]   ;;  %v11205_v6 = vld [vmem:[%s13057_s9 + $0x10] sm:$0xff]   ;;  %s13062_s17 = sld [smem:[#allocation57_spill]] }
 0x171   :  { %11020 = vmatprep.subr.bf16.mxu0 %v12475_v0  ;;  %v11206_v7 = vld [vmem:[%s13057_s9 + $0x8] sm:$0xff]   ;;  %v11207_v8 = vld [vmem:[%s13057_s9] sm:$0xff]   ;;  %v11228_v30 = vld [vmem:[#allocation2 + $0x14] ss:$8 sps:$4 sm:$0xff]   ;;  %s13063_s28 = sld [smem:[#allocation56_spill]] }
 0x172   :  { %v453_v9 = vld [vmem:[%s13058_s3] sm:$0xff]  ;;  %v454_v10 = vld [vmem:[%s13058_s3 + $0x8] sm:$0xff]  ;;  %v11226_v31 = vld [vmem:[#allocation2 + $0x10] ss:$8 sps:$4 sm:$0xff]   ;;  %s13064_s1 = sld [smem:[#allocation58_spill]] }
 0x173   :  { %v455_v11 = vpack.c.bf16 %v454_v10, %v453_v9  ;;  %v561_v12 = vld [vmem:[%s13059_s18] sm:$0xff]  ;;  %v12735_v17 = vld [vmem:[%s13059_s18 + $0x8] sm:$0xff] }
 0x174   :  { %11021 = vmatpush3.bf16.msra.mxu0 %v11201_v2  ;;  %11042 = vmatprep.mubr.msk.f32.mxu1 %vm570_vm1, %v561_v12  ;;  %v11231_v32 = vld [vmem:[#allocation2 + $0x4] ss:$8 sps:$4 sm:$0xff]   ;;  %v11229_v33 = vld [vmem:[#allocation2] ss:$8 sps:$4 sm:$0xff]  }
 0x175   :  { %11022 = vmatprep.subr.bf16.mxu0 %v12475_v0  ;;  %v9732_v35 = vld [vmem:[%s13060_s22] ss:$0 sm:$0xff]  ;;  %v11232_v43 = vld [vmem:[#allocation6 + $0xa8] ss:$12 sps:$4 sm:$0xff]   ;;  %v11234_v44 = vld [vmem:[#allocation6 + $0xac] ss:$12 sps:$4 sm:$0xff]  }
 0x176   :  { %v11237_v45 = vld [vmem:[#allocation6 + $0x94] ss:$12 sps:$4 sm:$0xff]   ;;  %v11235_v46 = vld [vmem:[#allocation6 + $0x90] ss:$12 sps:$4 sm:$0xff]   ;;  %v11238_v48 = vld [vmem:[#allocation6 + $0x78] ss:$12 sps:$4 sm:$0xff]  }
 0x177   :  { %v11240_v47 = vld [vmem:[#allocation6 + $0x7c] ss:$12 sps:$4 sm:$0xff]   ;;  %v11243_v49 = vld [vmem:[#allocation6 + $0x64] ss:$12 sps:$4 sm:$0xff]   ;;  %v11241_v50 = vld [vmem:[#allocation6 + $0x60] ss:$12 sps:$4 sm:$0xff]  }
 0x178   :  { %11023 = vmatpush3.bf16.msra.mxu0 %v11202_v3  ;;  %v11246_v51 = vld [vmem:[#allocation6 + $0x4c] ss:$12 sps:$4 sm:$0xff]   ;;  %v11244_v52 = vld [vmem:[#allocation6 + $0x48] ss:$12 sps:$4 sm:$0xff]   ;;  %v11247_v54 = vld [vmem:[#allocation6 + $0x30] ss:$12 sps:$4 sm:$0xff]  }
 0x179   :  { %11024 = vmatprep.subr.bf16.mxu0 %v12475_v0  ;;  %v11249_v53 = vld [vmem:[#allocation6 + $0x34] ss:$12 sps:$4 sm:$0xff]   ;;  %v11252_v55 = vld [vmem:[#allocation6 + $0x1c] ss:$12 sps:$4 sm:$0xff]   ;;  %v11250_v56 = vld [vmem:[#allocation6 + $0x18] ss:$12 sps:$4 sm:$0xff]  }
 0x17a   :  { %v11255_v57 = vld [vmem:[#allocation6 + $0x4] ss:$12 sps:$4 sm:$0xff]   ;;  %v11253_v58 = vld [vmem:[#allocation6] ss:$12 sps:$4 sm:$0xff]   ;;  %v11256_v60 = vld [vmem:[#allocation6 + $0x168] ss:$12 sps:$4 sm:$0xff]  }
 0x17b   :  { %v11258_v59 = vld [vmem:[#allocation6 + $0x16c] ss:$12 sps:$4 sm:$0xff]   ;;  %v11263_v61 = vld [vmem:[#allocation6 + $0x154] ss:$12 sps:$4 sm:$0xff]   ;;  %v11261_v62 = vld [vmem:[#allocation6 + $0x150] ss:$12 sps:$4 sm:$0xff]  }
 0x17c   :  { %11025 = vmatpush3.bf16.msra.mxu0 %v11203_v4  ;;  %v11268_v63 = vld [vmem:[#allocation6 + $0x13c] ss:$12 sps:$4 sm:$0xff]   ;;  %v11266_v1 = vld [vmem:[#allocation6 + $0x138] ss:$12 sps:$4 sm:$0xff]   ;;  %v11271_v3 = vld [vmem:[#allocation6 + $0x120] ss:$12 sps:$4 sm:$0xff]  }
 0x17d   :  { %11026 = vmatprep.subr.bf16.mxu0 %v12475_v0  ;;  %v11273_v2 = vld [vmem:[#allocation6 + $0x124] ss:$12 sps:$4 sm:$0xff]   ;;  %v11278_v4 = vld [vmem:[#allocation6 + $0x10c] ss:$12 sps:$4 sm:$0xff]  }
 0x17e   :  { %v11259_v10 = vld [vmem:[#allocation6 + $0x170] ss:$12 sps:$4 sm:$0xff]   ;;  %v11264_v12 = vld [vmem:[#allocation6 + $0x158] ss:$12 sps:$4 sm:$0xff]  }
 0x180   :  { %11027 = vmatpush3.bf16.msra.mxu0 %v11204_v5  ;;  %v11276_v5 = vld [vmem:[#allocation6 + $0x108] ss:$12 sps:$4 sm:$0xff]  }
 0x181   :  { %11028 = vmatprep.subr.bf16.mxu0 %v12475_v0 }
 0x184   :  { %11029 = vmatpush3.bf16.msra.mxu0 %v11205_v6 }
 0x185   :  { %11030 = vmatprep.subr.bf16.mxu0 %v12475_v0 }
 0x188   :  { %11031 = vmatpush3.bf16.msra.mxu0 %v11206_v7 }
 0x189   :  { %11032 = vmatprep.subr.bf16.mxu0 %v12475_v0 }
 0x18c   :  { %11033 = vmatpush3.bf16.msra.mxu0 %v11207_v8 }
 0x18f   :  { %11035 = vmatmul.mubr.bf16.vlgmr.msra.gmra.mxu0 %v455_v11  ;;  %v11260_v11 = vld [vmem:[#allocation6 + $0xb0] ss:$12 sps:$4 sm:$0xff]  }
 0x190   :  { %870 = vmatprep.mubr.f32.mxu0 %v12475_v0 }
 0x24f   :  { %v554_v13 = vpop.f32.mrf.mxu0 }
 0x251   :  { %v11036_v14 = vpop.f32.mrf.mxu0 }
 0x252   :  { %v11265_v14 = vld [vmem:[#allocation6 + $0x98] ss:$12 sps:$4 sm:$0xff]  }
 0x253   :  { %v557_v16 = vpop.f32.mrf.mxu0 }
 0x254   :  { %11038 = vmatprep.subr.mxu1 %v557_v16 }
 0x255   :  { %v11037_v20 = vpop.f32.mrf.mxu0  ;;  %11039 = vmatpush3.msra.mxu1 %v557_v16  ;;  %v11270_v16 = vld [vmem:[#allocation6 + $0x80] ss:$12 sps:$4 sm:$0xff]  }
 0x256   :  { %11040 = vmatprep.subr.mxu1 %v554_v13  ;;  %v11279_v20 = vld [vmem:[#allocation6 + $0x110] ss:$12 sps:$4 sm:$0xff]  }
 0x257   :  { %11041 = vmatpush3.msra.mxu1 %v554_v13  ;;  %v12742_v13 = vld [vmem:[%s13059_s18] sm:$0xff] }
 0x258   :  { %11043 = vmatmul.mubr.msk.f32.vlgmr.msra.gmra.mxu1 %vm570_vm1, %v12735_v17  ;;  %751 = vmatprep.subr.bf16.mxu1 %v11210_v15  ;;  %v11269_v15 = vld [vmem:[#allocation6 + $0x140] ss:$12 sps:$4 sm:$0xff]  }
 0x259   :  { %752 = vmatpush1.bf16.msra.mxu1 %v11208_v18  ;;  %783 = vmatprep.mubr.bf16.mxu1 %v12477_v34  ;;  %v11274_v18 = vld [vmem:[#allocation6 + $0x128] ss:$12 sps:$4 sm:$0xff]  }
 0x25a   :  { %753 = vmatprep.subr.bf16.mxu1 %v11213_v19  ;;  %v11275_v19 = vld [vmem:[#allocation6 + $0x68] ss:$12 sps:$4 sm:$0xff]  }
 0x25d   :  { %754 = vmatpush1.bf16.msra.mxu1 %v11211_v21  ;;  %v11280_v21 = vld [vmem:[#allocation6 + $0x50] ss:$12 sps:$4 sm:$0xff]  }
 0x25e   :  { %755 = vmatprep.subr.bf16.mxu1 %v11216_v22  ;;  %v11283_v22 = vld [vmem:[#allocation6 + $0xf4] ss:$12 sps:$4 sm:$0xff]  }
 0x261   :  { %756 = vmatpush1.bf16.msra.mxu1 %v11214_v23  ;;  %v11284_v23 = vld [vmem:[#allocation6 + $0xf8] ss:$12 sps:$4 sm:$0xff]  }
 0x262   :  { %757 = vmatprep.subr.bf16.mxu1 %v11219_v24  ;;  %v11281_v24 = vld [vmem:[#allocation6 + $0xf0] ss:$12 sps:$4 sm:$0xff]  }
 0x265   :  { %758 = vmatpush1.bf16.msra.mxu1 %v11217_v25  ;;  %v11285_v25 = vld [vmem:[#allocation6 + $0x38] ss:$12 sps:$4 sm:$0xff]  }
 0x266   :  { %759 = vmatprep.subr.bf16.mxu1 %v11222_v26  ;;  %v11288_v26 = vld [vmem:[#allocation6 + $0xdc] ss:$12 sps:$4 sm:$0xff]  }
 0x269   :  { %760 = vmatpush1.bf16.msra.mxu1 %v11220_v27  ;;  %v11289_v27 = vld [vmem:[#allocation6 + $0xe0] ss:$12 sps:$4 sm:$0xff]  }
 0x26a   :  { %761 = vmatprep.subr.bf16.mxu1 %v11225_v28  ;;  %v11286_v28 = vld [vmem:[#allocation6 + $0xd8] ss:$12 sps:$4 sm:$0xff]  }
 0x26d   :  { %762 = vmatpush1.bf16.msra.mxu1 %v11223_v29  ;;  %v11290_v29 = vld [vmem:[#allocation6 + $0x20] ss:$12 sps:$4 sm:$0xff]  }
 0x26e   :  { %763 = vmatprep.subr.bf16.mxu1 %v11228_v30  ;;  %v11293_v30 = vld [vmem:[#allocation6 + $0xc4] ss:$12 sps:$4 sm:$0xff]  }
 0x271   :  { %764 = vmatpush1.bf16.msra.mxu1 %v11226_v31  ;;  %v11294_v31 = vld [vmem:[#allocation6 + $0xc8] ss:$12 sps:$4 sm:$0xff]  }
 0x272   :  { %765 = vmatprep.subr.bf16.mxu1 %v11231_v32  ;;  %v11291_v32 = vld [vmem:[#allocation6 + $0xc0] ss:$12 sps:$4 sm:$0xff]  }
 0x275   :  { %766 = vmatpush1.bf16.msra.mxu1 %v11229_v33  ;;  %v11295_v33 = vld [vmem:[#allocation6 + $0x8] ss:$12 sps:$4 sm:$0xff]  }
 0x276   :  { %1209 = vmatprep.subr.bf16.mxu1 %v11234_v44 }
 0x318   :  { %v11044_v36 = vpop.f32.mrf.mxu1 }
 0x319   :  { %v649_v37 = vadd.f32 %v11044_v36, %v9732_v35 }
 0x31a   :  { %v643_v38 = vpop.f32.mrf.mxu1 }
 0x31b   :  { %v644_v39 = vadd.f32 %v9732_v35, %v643_v38  ;;  %v653_v40 = vmax.f32 %v649_v37, 0.0  ;;  %v796_v35 = vlaneseq }
 0x31d   :  { %v652_v41 = vmax.f32 %v644_v39, 0.0  ;;  %v12749_v36 = vshrl.u32 %v796_v35, 7  ;;  %v794_v39 = vld [vmem:[#allocation4] sm:$0x3] }
 0x31f   :  { %v654_v42 = vpack.c.bf16 %v653_v40, %v652_v41  ;;  %v12752_v37 = vsub.s32 1, %v12749_v36  ;;  %v12755_v38 = vsub.s32 0, %v12749_v36 }
 0x321   :  { %784 = vmatmul.mubr.bf16.vlgmr.msra.gmra.mxu1 %v654_v42  ;;  %v803_v41 = vrot.slane %v794_v39, %v12752_v37  ;;  %v799_v42 = vrot.slane %v794_v39, %v12755_v38 }
 0x322   :  { %1210 = vmatpush1.bf16.msra.mxu1 %v11232_v43 }
 0x323   :  { %1211 = vmatprep.subr.bf16.mxu1 %v11237_v45 }
 0x326   :  { %1212 = vmatpush1.bf16.msra.mxu1 %v11235_v46 }
 0x327   :  { %1213 = vmatprep.subr.bf16.mxu1 %v11240_v47 }
 0x32a   :  { %1214 = vmatpush1.bf16.msra.mxu1 %v11238_v48 }
 0x32b   :  { %1215 = vmatprep.subr.bf16.mxu1 %v11243_v49 }
 0x32e   :  { %1216 = vmatpush1.bf16.msra.mxu1 %v11241_v50 }
 0x32f   :  { %1217 = vmatprep.subr.bf16.mxu1 %v11246_v51 }
 0x332   :  { %1218 = vmatpush1.bf16.msra.mxu1 %v11244_v52 }
 0x333   :  { %1219 = vmatprep.subr.bf16.mxu1 %v11249_v53 }
 0x336   :  { %1220 = vmatpush1.bf16.msra.mxu1 %v11247_v54 }
 0x337   :  { %1221 = vmatprep.subr.bf16.mxu1 %v11252_v55 }
 0x33a   :  { %1222 = vmatpush1.bf16.msra.mxu1 %v11250_v56 }
 0x33b   :  { %1223 = vmatprep.subr.bf16.mxu1 %v11255_v57 }
 0x33e   :  { %1224 = vmatpush1.bf16.msra.mxu1 %v11253_v58 }
 0x33f   :  { %1225 = vmatprep.subr.bf16.mxu1 %v11258_v59 }
 0x342   :  { %1226 = vmatpush2.bf16.msra.mxu1 %v11256_v60 }
 0x343   :  { %1227 = vmatprep.subr.bf16.mxu1 %v11263_v61 }
 0x346   :  { %1228 = vmatpush2.bf16.msra.mxu1 %v11261_v62 }
 0x347   :  { %1229 = vmatprep.subr.bf16.mxu1 %v11268_v63 }
 0x34a   :  { %1230 = vmatpush2.bf16.msra.mxu1 %v11266_v1 }
 0x34b   :  { %1231 = vmatprep.subr.bf16.mxu1 %v11273_v2 }
 0x34e   :  { %1232 = vmatpush2.bf16.msra.mxu1 %v11271_v3  ;;  %v1800_v3 = vld [vmem:[#allocation9 + $0x5c0] sm:$0xff] }
 0x34f   :  { %1233 = vmatprep.subr.bf16.mxu1 %v11278_v4  ;;  %v1804_v4 = vld [vmem:[#allocation9 + $0x5e0] sm:$0xff] }
 0x352   :  { %1234 = vmatpush2.bf16.msra.mxu1 %v11276_v5  ;;  %v9991_v5 = vcombine.low %v1800_v3, %v1804_v4 }
 0x353   :  { %1235 = vmatprep.subr.bf16.mxu1 %v11283_v22 }
 0x356   :  { %1236 = vmatpush2.bf16.msra.mxu1 %v11281_v24  ;;  %v1764_v24 = vld [vmem:[#allocation9 + $0x4a0] sm:$0xff] }
 0x357   :  { %1237 = vmatprep.subr.bf16.mxu1 %v11288_v26 }
 0x35a   :  { %1238 = vmatpush2.bf16.msra.mxu1 %v11286_v28  ;;  %v1756_v28 = vld [vmem:[#allocation9 + $0x460] sm:$0xff] }
 0x35b   :  { %1239 = vmatprep.subr.bf16.mxu1 %v11293_v30 }
 0x35e   :  { %1240 = vmatpush2.bf16.msra.mxu1 %v11291_v32  ;;  %v1293_v32 = vld [vmem:[#allocation7] sm:$0x7] }
 0x35f   :  { %v1302_v39 = vrot.slane %v1293_v32, %v12752_v37 }
 0x3e1   :  { %v785_v6 = vpop.f32.mrf.mxu1 }
 0x3e3   :  { %v787_v7 = vpop.f32.mrf.mxu1 }
 0x3e5   :  { %v789_v8 = vpop.f32.mrf.mxu1 }
 0x3e7   :  { %v791_v9 = vpop.f32.mrf.mxu1 }
 0x3e8   :  { %834 = vmatprep.subr.mxu0 %v791_v9 }
 0x3e9   :  { %835 = vmatpush1.msra.mxu0 %v789_v8  ;;  %v1796_v8 = vld [vmem:[#allocation9 + $0x5a0] sm:$0xff] }
 0x3ea   :  { %836 = vmatprep.subr.mxu0 %v787_v7  ;;  %v1792_v7 = vld [vmem:[#allocation9 + $0x580] sm:$0xff] }
 0x3eb   :  { %837 = vmatpush1.msra.mxu0 %v785_v6  ;;  %v9992_v6 = vcombine.high %v1800_v3, %v1804_v4  ;;  %v9983_v9 = vcombine.low %v1792_v7, %v1796_v8  ;;  %v1656_v3 = vld [vmem:[#allocation9 + $0x140] sm:$0xff] }
 0x3ec   :  { %9751 = vmatmul.mubr.msk.f32.vlgmr.msra.gmra.mxu0 %vm570_vm1, %v12742_v13  ;;  %10737 = vmatprep.subr.bf16.mxu0 %v11259_v10  ;;  %v9984_v10 = vcombine.high %v1792_v7, %v1796_v8  ;;  %v1660_v4 = vld [vmem:[#allocation9 + $0x160] sm:$0xff] }
 0x3ed   :  { %876 = vmatprep.mubr.f32.mxu0 %v12475_v0  ;;  %10738 = vmatpush3.bf16.msra.mxu0 %v11260_v11  ;;  %v1784_v11 = vld [vmem:[#allocation9 + $0x540] sm:$0xff] }
 0x3ee   :  { %10739 = vmatprep.subr.bf16.mxu0 %v11264_v12  ;;  %2851 = vmatprep.subr.bf16.mxu1 %v9992_v6  ;;  %v1788_v12 = vld [vmem:[#allocation9 + $0x560] sm:$0xff]  ;;  %v9848_v6 = vcombine.high %v1656_v3, %v1660_v4 }
 0x3ef   :  { %v1648_v7 = vld [vmem:[#allocation9 + $0x100] sm:$0xff] }
 0x3f0   :  { %9752 = vmatmul.mubr.msk.f32.gmra.mxu0 %vm570_vm1, %v12735_v17  ;;  %v1652_v8 = vld [vmem:[#allocation9 + $0x120] sm:$0xff] }
 0x3f1   :  { %10740 = vmatpush3.bf16.msra.mxu0 %v11265_v14  ;;  %v9976_v14 = vcombine.high %v1784_v11, %v1788_v12 }
 0x3f2   :  { %10741 = vmatprep.subr.bf16.mxu0 %v11269_v15  ;;  %v1780_v15 = vld [vmem:[#allocation9 + $0x520] sm:$0xff] }
 0x3f5   :  { %10742 = vmatpush3.bf16.msra.mxu0 %v11270_v16 }
 0x3f6   :  { %10743 = vmatprep.subr.bf16.mxu0 %v11274_v18 }
 0x3f9   :  { %10744 = vmatpush3.bf16.msra.mxu0 %v11275_v19  ;;  %v1768_v19 = vld [vmem:[#allocation9 + $0x4c0] sm:$0xff] }
 0x3fa   :  { %10745 = vmatprep.subr.bf16.mxu0 %v11279_v20  ;;  %v1772_v20 = vld [vmem:[#allocation9 + $0x4e0] sm:$0xff] }
 0x3fb   :  { %v9960_v22 = vcombine.high %v1768_v19, %v1772_v20 }
 0x3fd   :  { %10746 = vmatpush3.bf16.msra.mxu0 %v11280_v21  ;;  %v9959_v21 = vcombine.low %v1768_v19, %v1772_v20  ;;  %v1624_v19 = vld [vmem:[#allocation9 + $0x40] sm:$0xff] }
 0x3fe   :  { %10747 = vmatprep.subr.bf16.mxu0 %v11284_v23  ;;  %v1760_v23 = vld [vmem:[#allocation9 + $0x480] sm:$0xff] }
 0x3ff   :  { %v9952_v26 = vcombine.high %v1760_v23, %v1764_v24  ;;  %v1628_v20 = vld [vmem:[#allocation9 + $0x60] sm:$0xff] }
 0x401   :  { %10748 = vmatpush3.bf16.msra.mxu0 %v11285_v25  ;;  %v9951_v25 = vcombine.low %v1760_v23, %v1764_v24  ;;  %v1616_v23 = vld [vmem:[#allocation9] sm:$0xff] }
 0x402   :  { %10749 = vmatprep.subr.bf16.mxu0 %v11289_v27  ;;  %v1752_v27 = vld [vmem:[#allocation9 + $0x440] sm:$0xff] }
 0x403   :  { %v9944_v30 = vcombine.high %v1752_v27, %v1756_v28  ;;  %v1620_v24 = vld [vmem:[#allocation9 + $0x20] sm:$0xff] }
 0x405   :  { %10750 = vmatpush3.bf16.msra.mxu0 %v11290_v29  ;;  %v9943_v29 = vcombine.low %v1752_v27, %v1756_v28  ;;  %v1736_v27 = vld [vmem:[#allocation9 + $0x3c0] sm:$0xff] }
 0x406   :  { %10751 = vmatprep.subr.bf16.mxu0 %v11294_v31  ;;  %v1740_v28 = vld [vmem:[#allocation9 + $0x3e0] sm:$0xff] }
 0x409   :  { %10752 = vmatpush3.bf16.msra.mxu0 %v11295_v33  ;;  %v12772_v33 = vsub.s32 2, %v12749_v36 }
 0x4ac   :  { %v872_v40 = vpop.f32.mrf.mxu0 }
 0x4ad   :  { %v873_v47 = vadd.f32 %v872_v40, %v799_v42  ;;  %v1298_v40 = vrot.slane %v1293_v32, %v12755_v38 }
 0x4ae   :  { %v874_v43 = vpop.f32.mrf.mxu0 }
 0x4af   :  { %v875_v45 = vadd.f32 %v874_v43, %v803_v41  ;;  %v883_v53 = vmax.f32 %v873_v47, 0.0 }
 0x4b0   :  { %v878_v44 = vpop.f32.mrf.mxu0 }
 0x4b1   :  { %v879_v46 = vadd.f32 %v878_v44, %v799_v42  ;;  %v884_v51 = vmax.f32 %v875_v45, 0.0  ;;  %v1306_v42 = vrot.slane %v1293_v32, %v12772_v33  ;;  %v1732_v32 = vld [vmem:[#allocation9 + $0x3a0] sm:$0xff] }
 0x4b2   :  { %v880_v48 = vpop.f32.mrf.mxu0 }
 0x4b3   :  { %v881_v49 = vadd.f32 %v880_v48, %v803_v41  ;;  %v885_v50 = vmax.f32 %v879_v46, 0.0 }
 0x4b5   :  { %v886_v52 = vmax.f32 %v881_v49, 0.0  ;;  %v887_v55 = vpack.c.bf16 %v885_v50, %v883_v53 }
 0x4b7   :  { %v888_v54 = vpack.c.bf16 %v886_v52, %v884_v51 }
 0x4b9   :  { %1241 = vmatprep.mubr.bf16.mxu1 %v888_v54  ;;  %1284 = vmatprep.mubr.bf16.mxu0 %v888_v54 }
 0x4ba   :  { %1242 = vmatmul.mubr.bf16.vlgmr.msra.gmra.mxu1 %v887_v55  ;;  %1285 = vmatmul.mubr.bf16.vlgmr.msra.gmra.mxu0 %v887_v55 }
 0x4bb   :  { %1374 = vmatprep.mubr.f32.mxu0 %v12475_v0  ;;  %2883 = vmatprep.mubr.bf16.mxu1 %v12477_v34 }
 0x4bc   :  { %2852 = vmatpush1.bf16.msra.mxu1 %v9991_v5 }
 0x4bd   :  { %2853 = vmatprep.subr.bf16.mxu1 %v9984_v10  ;;  %v9840_v10 = vcombine.high %v1648_v7, %v1652_v8 }
 0x4c0   :  { %2854 = vmatpush1.bf16.msra.mxu1 %v9983_v9  ;;  %v9847_v9 = vcombine.low %v1656_v3, %v1660_v4 }
 0x4c1   :  { %2855 = vmatprep.subr.bf16.mxu1 %v9976_v14 }
 0x57a   :  { %v1243_v56 = vpop.f32.mrf.mxu1  ;;  %v10753_v57 = vpop.f32.mrf.mxu0 }
 0x57c   :  { %v1245_v58 = vpop.f32.mrf.mxu1  ;;  %v10754_v59 = vpop.f32.mrf.mxu0 }
 0x57d   :  { %v10755_v2 = vadd.f32 %v10754_v59, %v10753_v57  ;;  %v1468_v57 = vld [vmem:[%s13061_s25] sm:$0x3]  ;;  %v1676_v59 = vld [vmem:[#allocation9 + $0x1e0] sm:$0xff] }
 0x57e   :  { %v1247_v60 = vpop.f32.mrf.mxu1  ;;  %v10756_v61 = vpop.f32.mrf.mxu0 }
 0x580   :  { %v1249_v62 = vpop.f32.mrf.mxu1  ;;  %v10757_v63 = vpop.f32.mrf.mxu0 }
 0x581   :  { %1338 = vmatprep.subr.mxu0 %v1249_v62  ;;  %v10758_v1 = vadd.f32 %v10757_v63, %v10756_v61  ;;  %v1664_v61 = vld [vmem:[#allocation9 + $0x180] sm:$0xff] }
 0x582   :  { %1339 = vmatpush1.msra.mxu0 %v1247_v60  ;;  %v1668_v62 = vld [vmem:[#allocation9 + $0x1a0] sm:$0xff] }
 0x583   :  { %1340 = vmatprep.subr.mxu0 %v1245_v58  ;;  %v1672_v58 = vld [vmem:[#allocation9 + $0x1c0] sm:$0xff]  ;;  %v9855_v5 = vcombine.low %v1664_v61, %v1668_v62 }
 0x584   :  { %1341 = vmatpush1.msra.mxu0 %v1243_v56  ;;  %v9864_v63 = vcombine.high %v1672_v58, %v1676_v59 }
 0x585   :  { %9801 = vmatmul.mubr.msk.f32.vlgmr.msra.gmra.mxu0 %vm570_vm1, %v12742_v13  ;;  %11045 = vmatprep.subr.mxu0 %v10758_v1 }
 0x586   :  { %11046 = vmatpush3.msra.mxu0 %v10758_v1  ;;  %1380 = vmatprep.mubr.f32.mxu0 %v12475_v0  ;;  %v9863_v1 = vcombine.low %v1672_v58, %v1676_v59 }
 0x587   :  { %11047 = vmatprep.subr.mxu0 %v10755_v2 }
 0x588   :  { %11048 = vmatpush3.msra.mxu0 %v10755_v2  ;;  %v9856_v2 = vcombine.high %v1664_v61, %v1668_v62  ;;  %v1680_v61 = vld [vmem:[#allocation9 + $0x200] sm:$0xff] }
 0x589   :  { %9802 = vmatmul.mubr.msk.f32.gmra.mxu0 %vm570_vm1, %v12735_v17  ;;  %v1684_v62 = vld [vmem:[#allocation9 + $0x220] sm:$0xff] }
 0x58a   :  { %11049 = vmatprep.mubr.msk.f32.mxu0 %vm570_vm1, %v12742_v13  ;;  %v9975_v13 = vcombine.low %v1784_v11, %v1788_v12  ;;  %v1640_v11 = vld [vmem:[#allocation9 + $0xc0] sm:$0xff]  ;;  %v9871_v3 = vcombine.low %v1680_v61, %v1684_v62 }
 0x58b   :  { %v1644_v12 = vld [vmem:[#allocation9 + $0xe0] sm:$0xff] }
 0x58c   :  { %2856 = vmatpush1.bf16.msra.mxu1 %v9975_v13  ;;  %v9839_v13 = vcombine.low %v1648_v7, %v1652_v8  ;;  %v9832_v14 = vcombine.high %v1640_v11, %v1644_v12  ;;  %v1805_v7 = vld [vmem:[#allocation9 + $0x5e8] sm:$0xff] }
 0x58d   :  { %11050 = vmatmul.mubr.msk.f32.vlgmr.msra.gmra.mxu0 %vm570_vm1, %v12735_v17  ;;  %v1776_v17 = vld [vmem:[#allocation9 + $0x500] sm:$0xff] }
 0x58e   :  { %1536 = vmatprep.mubr.f32.mxu0 %v12475_v0  ;;  %v9967_v16 = vcombine.low %v1776_v17, %v1780_v15  ;;  %v9968_v18 = vcombine.high %v1776_v17, %v1780_v15  ;;  %v1632_v17 = vld [vmem:[#allocation9 + $0x80] sm:$0xff] }
 0x58f   :  { %v1636_v15 = vld [vmem:[#allocation9 + $0xa0] sm:$0xff] }
 0x590   :  { %2857 = vmatprep.subr.bf16.mxu1 %v9968_v18  ;;  %v9824_v18 = vcombine.high %v1632_v17, %v1636_v15 }
 0x591   :  { %2858 = vmatpush1.bf16.msra.mxu1 %v9967_v16  ;;  %v9831_v16 = vcombine.low %v1640_v11, %v1644_v12 }
 0x592   :  { %2859 = vmatprep.subr.bf16.mxu1 %v9960_v22  ;;  %v9816_v22 = vcombine.high %v1624_v19, %v1628_v20 }
 0x595   :  { %2860 = vmatpush1.bf16.msra.mxu1 %v9959_v21  ;;  %v9823_v21 = vcombine.low %v1632_v17, %v1636_v15  ;;  %v1793_v17 = vld [vmem:[#allocation9 + $0x588] sm:$0xff] }
 0x596   :  { %2861 = vmatprep.subr.bf16.mxu1 %v9952_v26  ;;  %v9808_v26 = vcombine.high %v1616_v23, %v1620_v24 }
 0x599   :  { %2862 = vmatpush1.bf16.msra.mxu1 %v9951_v25  ;;  %v9815_v25 = vcombine.low %v1624_v19, %v1628_v20  ;;  %v1669_v19 = vld [vmem:[#allocation9 + $0x1a8] sm:$0xff] }
 0x59a   :  { %2863 = vmatprep.subr.bf16.mxu1 %v9944_v30  ;;  %v9928_v30 = vcombine.high %v1736_v27, %v1740_v28 }
 0x59d   :  { %2864 = vmatpush1.bf16.msra.mxu1 %v9943_v29  ;;  %v9807_v29 = vcombine.low %v1616_v23, %v1620_v24 }
 0x645   :  { %v1376_v31 = vpop.f32.mrf.mxu0 }
 0x646   :  { %v1377_v47 = vadd.f32 %v1376_v31, %v1298_v40  ;;  %v1728_v31 = vld [vmem:[#allocation9 + $0x380] sm:$0xff] }
 0x647   :  { %v1378_v35 = vpop.f32.mrf.mxu0 }
 0x648   :  { %v1379_v45 = vadd.f32 %v1378_v35, %v1302_v39  ;;  %v1462_v55 = vmax.f32 %v1377_v47, 0.0  ;;  %v9927_v35 = vcombine.low %v1736_v27, %v1740_v28  ;;  %v1789_v27 = vld [vmem:[#allocation9 + $0x568] sm:$0xff] }
 0x649   :  { %v1382_v41 = vpop.f32.mrf.mxu0 }
 0x64a   :  { %v1383_v43 = vadd.f32 %v1382_v41, %v1298_v40  ;;  %v1463_v53 = vmax.f32 %v1379_v45, 0.0  ;;  %v1720_v40 = vld [vmem:[#allocation9 + $0x340] sm:$0xff] }
 0x64b   :  { %v1384_v44 = vpop.f32.mrf.mxu0  ;;  %v1724_v41 = vld [vmem:[#allocation9 + $0x360] sm:$0xff] }
 0x64c   :  { %v1385_v46 = vadd.f32 %v1384_v44, %v1302_v39  ;;  %v1465_v51 = vmax.f32 %v1383_v43, 0.0  ;;  %v9920_v39 = vcombine.high %v1728_v31, %v1732_v32  ;;  %v9912_v43 = vcombine.high %v1720_v40, %v1724_v41  ;;  %v1712_v44 = vld [vmem:[#allocation9 + $0x300] sm:$0xff] }
 0x64d   :  { %v11051_v48 = vpop.f32.mrf.mxu0  ;;  %v1716_v45 = vld [vmem:[#allocation9 + $0x320] sm:$0xff] }
 0x64e   :  { %v1466_v49 = vmax.f32 %v1385_v46, 0.0  ;;  %v1459_v50 = vadd.f32 %v11051_v48, %v1306_v42  ;;  %v9911_v46 = vcombine.low %v1720_v40, %v1724_v41  ;;  %v9904_v47 = vcombine.high %v1712_v44, %v1716_v45  ;;  %v1704_v48 = vld [vmem:[#allocation9 + $0x2c0] sm:$0xff]  ;;  %v1777_v40 = vld [vmem:[#allocation9 + $0x508] sm:$0xff] }
 0x64f   :  { %v1453_v52 = vpop.f32.mrf.mxu0  ;;  %v1781_v41 = vld [vmem:[#allocation9 + $0x528] sm:$0xff] }
 0x650   :  { %1500 = vmatprep.subr.mxu0 %v1466_v49  ;;  %v1454_v54 = vadd.f32 %v1453_v52, %v1306_v42  ;;  %v1467_v56 = vmax.f32 %v1459_v50, 0.0  ;;  %v9919_v42 = vcombine.low %v1728_v31, %v1732_v32  ;;  %v1708_v49 = vld [vmem:[#allocation9 + $0x2e0] sm:$0xff]  ;;  %v9903_v50 = vcombine.low %v1712_v44, %v1716_v45 }
 0x651   :  { %1501 = vmatpush1.msra.mxu0 %v1465_v51  ;;  %v9896_v51 = vcombine.high %v1704_v48, %v1708_v49  ;;  %v1696_v52 = vld [vmem:[#allocation9 + $0x280] sm:$0xff] }
 0x652   :  { %1502 = vmatprep.subr.mxu0 %v1463_v53  ;;  %v1464_v60 = vmax.f32 %v1454_v54, 0.0  ;;  %v1700_v53 = vld [vmem:[#allocation9 + $0x2a0] sm:$0xff]  ;;  %v9895_v54 = vcombine.low %v1704_v48, %v1708_v49  ;;  %v1769_v48 = vld [vmem:[#allocation9 + $0x4c8] sm:$0xff] }
 0x653   :  { %1503 = vmatpush1.msra.mxu0 %v1462_v55  ;;  %v9888_v55 = vcombine.high %v1696_v52, %v1700_v53  ;;  %v9887_v58 = vcombine.low %v1696_v52, %v1700_v53  ;;  %v1773_v49 = vld [vmem:[#allocation9 + $0x4e8] sm:$0xff]  ;;  %v9969_v52 = vcombine.low %v1777_v40, %v1781_v41 }
 0x654   :  { %9805 = vmatmul.mubr.msk.f32.vlgmr.msra.gmra.mxu0 %vm570_vm1, %v1468_v57  ;;  %11052 = vmatprep.subr.mxu0 %v12475_v0 }
 0x655   :  { %11053 = vmatpush3.msra.mxu0 %v1467_v56  ;;  %11056 = vmatprep.mubr.msk.f32.mxu0 %vm12476_vm0, %v12475_v0  ;;  %v1688_v56 = vld [vmem:[#allocation9 + $0x240] sm:$0xff] }
 0x656   :  { %11054 = vmatprep.subr.mxu0 %v12475_v0 }
 0x657   :  { %11055 = vmatpush3.msra.mxu0 %v1464_v60 }
 0x658   :  { %11057 = vmatmul.mubr.msk.f32.vlgmr.msra.gmra.mxu0 %vm570_vm1, %v1468_v57  ;;  %2810 = vmatprep.subr.bf16.mxu0 %v9864_v63  ;;  %v1692_v57 = vld [vmem:[#allocation9 + $0x260] sm:$0xff]  ;;  %v9872_v63 = vcombine.high %v1680_v61, %v1684_v62 }
 0x659   :  { %2811 = vmatpush1.bf16.msra.mxu0 %v9863_v1  ;;  %v9880_v59 = vcombine.high %v1688_v56, %v1692_v57  ;;  %v9879_v60 = vcombine.low %v1688_v56, %v1692_v57  ;;  %v1744_v1 = vld [vmem:[#allocation9 + $0x400] sm:$0xff]  ;;  %v1761_v56 = vld [vmem:[#allocation9 + $0x488] sm:$0xff] }
 0x65a   :  { %2812 = vmatprep.subr.bf16.mxu0 %v9856_v2  ;;  %v1748_v2 = vld [vmem:[#allocation9 + $0x420] sm:$0xff]  ;;  %v1765_v57 = vld [vmem:[#allocation9 + $0x4a8] sm:$0xff] }
 0x65b   :  { %v9936_v4 = vcombine.high %v1744_v1, %v1748_v2  ;;  %v9954_v62 = vcombine.high %v1761_v56, %v1765_v57 }
 0x65d   :  { %2813 = vmatpush1.bf16.msra.mxu0 %v9855_v5  ;;  %v9935_v5 = vcombine.low %v1744_v1, %v1748_v2  ;;  %2865 = vmatprep.subr.bf16.mxu1 %v9936_v4  ;;  %v1753_v1 = vld [vmem:[#allocation9 + $0x448] sm:$0xff] }
 0x65e   :  { %2814 = vmatprep.subr.bf16.mxu0 %v9848_v6  ;;  %v1801_v6 = vld [vmem:[#allocation9 + $0x5c8] sm:$0xff] }
 0x65f   :  { %2866 = vmatpush1.bf16.msra.mxu1 %v9935_v5  ;;  %v9994_v8 = vcombine.high %v1801_v6, %v1805_v7  ;;  %v9993_v11 = vcombine.low %v1801_v6, %v1805_v7  ;;  %v1757_v2 = vld [vmem:[#allocation9 + $0x468] sm:$0xff]  ;;  %v9953_v5 = vcombine.low %v1761_v56, %v1765_v57  ;;  %v1642_v57 = vld [vmem:[#allocation9 + $0xd0] sm:$0xff] }
 0x660   :  { %v1629_v4 = vld [vmem:[#allocation9 + $0x68] sm:$0xff]  ;;  %v9946_v7 = vcombine.high %v1753_v1, %v1757_v2 }
 0x661   :  { %2815 = vmatpush1.bf16.msra.mxu0 %v9847_v9  ;;  %v1673_v9 = vld [vmem:[#allocation9 + $0x1c8] sm:$0xff] }
 0x662   :  { %2816 = vmatprep.subr.bf16.mxu0 %v9840_v10  ;;  %v1677_v10 = vld [vmem:[#allocation9 + $0x1e8] sm:$0xff] }
 0x663   :  { %v9866_v12 = vcombine.high %v1673_v9, %v1677_v10 }
 0x665   :  { %2817 = vmatpush1.bf16.msra.mxu0 %v9839_v13  ;;  %v9865_v13 = vcombine.low %v1673_v9, %v1677_v10  ;;  %2892 = vmatprep.subr.bf16.mxu1 %v9866_v12  ;;  %v1745_v9 = vld [vmem:[#allocation9 + $0x408] sm:$0xff] }
 0x666   :  { %2818 = vmatprep.subr.bf16.mxu0 %v9832_v14  ;;  %v1749_v10 = vld [vmem:[#allocation9 + $0x428] sm:$0xff] }
 0x667   :  { %v1621_v12 = vld [vmem:[#allocation9 + $0x28] sm:$0xff] }
 0x669   :  { %2819 = vmatpush1.bf16.msra.mxu0 %v9831_v16  ;;  %v1797_v16 = vld [vmem:[#allocation9 + $0x5a8] sm:$0xff] }
 0x66a   :  { %2820 = vmatprep.subr.bf16.mxu0 %v9824_v18  ;;  %v1665_v18 = vld [vmem:[#allocation9 + $0x188] sm:$0xff]  ;;  %v9986_v24 = vcombine.high %v1793_v17, %v1797_v16  ;;  %v9985_v31 = vcombine.low %v1793_v17, %v1797_v16  ;;  %v9938_v17 = vcombine.high %v1745_v9, %v1749_v10  ;;  %v1674_v16 = vld [vmem:[#allocation9 + $0x1d0] sm:$0xff] }
 0x66b   :  { %v9857_v32 = vcombine.low %v1665_v18, %v1669_v19 }
 0x66d   :  { %2821 = vmatpush1.bf16.msra.mxu0 %v9823_v21 }
 0x66e   :  { %2822 = vmatprep.subr.bf16.mxu0 %v9816_v22 }
 0x671   :  { %2823 = vmatpush1.bf16.msra.mxu0 %v9815_v25  ;;  %v9858_v25 = vcombine.high %v1665_v18, %v1669_v19  ;;  %v1678_v18 = vld [vmem:[#allocation9 + $0x1f0] sm:$0xff]  ;;  %v1737_v19 = vld [vmem:[#allocation9 + $0x3c8] sm:$0xff] }
 0x672   :  { %2824 = vmatprep.subr.bf16.mxu0 %v9808_v26  ;;  %v1785_v26 = vld [vmem:[#allocation9 + $0x548] sm:$0xff] }
 0x673   :  { %v9977_v44 = vcombine.low %v1785_v26, %v1789_v27 }
 0x675   :  { %2825 = vmatpush1.bf16.msra.mxu0 %v9807_v29  ;;  %v1657_v29 = vld [vmem:[#allocation9 + $0x148] sm:$0xff] }
 0x676   :  { %2826 = vmatprep.subr.bf16.mxu0 %v9928_v30  ;;  %v1661_v30 = vld [vmem:[#allocation9 + $0x168] sm:$0xff] }
 0x677   :  { %v9849_v45 = vcombine.low %v1657_v29, %v1661_v30 }
 0x679   :  { %2827 = vmatpush2.bf16.msra.mxu0 %v9927_v35  ;;  %v9978_v35 = vcombine.high %v1785_v26, %v1789_v27  ;;  %v9868_v26 = vcombine.high %v1674_v16, %v1678_v18 }
 0x67a   :  { %2828 = vmatprep.subr.bf16.mxu0 %v9920_v39  ;;  %v9850_v39 = vcombine.high %v1657_v29, %v1661_v30  ;;  %v1670_v29 = vld [vmem:[#allocation9 + $0x1b0] sm:$0xff]  ;;  %v1729_v30 = vld [vmem:[#allocation9 + $0x388] sm:$0xff] }
 0x67d   :  { %2829 = vmatpush2.bf16.msra.mxu0 %v9919_v42  ;;  %v1649_v42 = vld [vmem:[#allocation9 + $0x108] sm:$0xff] }
 0x67e   :  { %2830 = vmatprep.subr.bf16.mxu0 %v9912_v43  ;;  %v1653_v43 = vld [vmem:[#allocation9 + $0x128] sm:$0xff] }
 0x67f   :  { %v9841_v53 = vcombine.low %v1649_v42, %v1653_v43 }
 0x681   :  { %2831 = vmatpush2.bf16.msra.mxu0 %v9911_v46  ;;  %v9970_v46 = vcombine.high %v1777_v40, %v1781_v41  ;;  %v1658_v41 = vld [vmem:[#allocation9 + $0x150] sm:$0xff] }
 0x682   :  { %2832 = vmatprep.subr.bf16.mxu0 %v9904_v47  ;;  %v9842_v47 = vcombine.high %v1649_v42, %v1653_v43  ;;  %v1662_v42 = vld [vmem:[#allocation9 + $0x170] sm:$0xff]  ;;  %v1721_v43 = vld [vmem:[#allocation9 + $0x348] sm:$0xff] }
 0x685   :  { %2833 = vmatpush2.bf16.msra.mxu0 %v9903_v50  ;;  %v1641_v50 = vld [vmem:[#allocation9 + $0xc8] sm:$0xff] }
 0x686   :  { %2834 = vmatprep.subr.bf16.mxu0 %v9896_v51  ;;  %v1645_v51 = vld [vmem:[#allocation9 + $0xe8] sm:$0xff] }
 0x687   :  { %v9833_v61 = vcombine.low %v1641_v50, %v1645_v51 }
 0x689   :  { %2835 = vmatpush2.bf16.msra.mxu0 %v9895_v54  ;;  %v9962_v54 = vcombine.high %v1769_v48, %v1773_v49 }
 0x68a   :  { %2836 = vmatprep.subr.bf16.mxu0 %v9888_v55  ;;  %v9834_v55 = vcombine.high %v1641_v50, %v1645_v51  ;;  %v1654_v50 = vld [vmem:[#allocation9 + $0x130] sm:$0xff]  ;;  %v1713_v51 = vld [vmem:[#allocation9 + $0x308] sm:$0xff] }
 0x68d   :  { %2837 = vmatpush2.bf16.msra.mxu0 %v9887_v58  ;;  %v1633_v58 = vld [vmem:[#allocation9 + $0x88] sm:$0xff] }
 0x68e   :  { %2838 = vmatprep.subr.bf16.mxu0 %v9880_v59  ;;  %v1637_v59 = vld [vmem:[#allocation9 + $0xa8] sm:$0xff] }
 0x68f   :  { %v9825_v6 = vcombine.low %v1633_v58, %v1637_v59 }
 0x691   :  { %2839 = vmatpush2.bf16.msra.mxu0 %v9879_v60  ;;  %v9961_v60 = vcombine.low %v1769_v48, %v1773_v49  ;;  %v1650_v49 = vld [vmem:[#allocation9 + $0x110] sm:$0xff] }
 0x692   :  { %2840 = vmatprep.subr.bf16.mxu0 %v9872_v63  ;;  %v9826_v63 = vcombine.high %v1633_v58, %v1637_v59  ;;  %v1646_v58 = vld [vmem:[#allocation9 + $0xf0] sm:$0xff]  ;;  %v1705_v59 = vld [vmem:[#allocation9 + $0x2c8] sm:$0xff] }
 0x695   :  { %2841 = vmatpush2.bf16.msra.mxu0 %v9871_v3  ;;  %v1625_v3 = vld [vmem:[#allocation9 + $0x48] sm:$0xff] }
 0x696   :  { %2933 = vmatprep.subr.bf16.mxu0 %v9994_v8  ;;  %v9818_v8 = vcombine.high %v1625_v3, %v1629_v4 }
 0x714   :  { %v1538_v14 = vpop.f32.mrf.mxu0 }
 0x715   :  { %v12786_v21 = vpack.c.bf16 %v1538_v14, %v1538_v14  ;;  %v9817_v14 = vcombine.low %v1625_v3, %v1629_v4  ;;  %v1638_v3 = vld [vmem:[#allocation9 + $0xb0] sm:$0xff]  ;;  %v1697_v4 = vld [vmem:[#allocation9 + $0x288] sm:$0xff] }
 0x716   :  { %v1540_v15 = vpop.f32.mrf.mxu0 }
 0x717   :  { %v12784_v20 = vpack.c.bf16 %v1540_v15, %v1540_v15 }
 0x718   :  { %v1609_v22 = vpop.f32.mrf.mxu0 }
 0x719   :  { %v12788_v23 = vpack.c.bf16 %v1609_v22, %v1609_v22  ;;  %2842 = vmatprep.mubr.bf16.mxu0 %v12784_v20  ;;  %v1741_v22 = vld [vmem:[#allocation9 + $0x3e8] sm:$0xff] }
 0x71a   :  { %v11058_v28 = vpop.f32.mrf.mxu0  ;;  %2843 = vmatmul.mubr.bf16.vlgmr.msra.gmra.mxu0 %v12786_v21  ;;  %v9930_v27 = vcombine.high %v1737_v19, %v1741_v22 }
 0x71b   :  { %2934 = vmatpush1.bf16.msra.mxu0 %v9993_v11  ;;  %2884 = vmatmul.mubr.bf16.vlgmr.msra.gmra.mxu1 %v12788_v23  ;;  %v1617_v11 = vld [vmem:[#allocation9 + $0x8] sm:$0xff]  ;;  %v1666_v28 = vld [vmem:[#allocation9 + $0x190] sm:$0xff] }
 0x71c   :  { %2893 = vmatpush1.bf16.msra.mxu1 %v9865_v13  ;;  %2924 = vmatprep.mubr.bf16.mxu1 %v12784_v20  ;;  %v9945_v13 = vcombine.low %v1753_v1, %v1757_v2  ;;  %v9810_v15 = vcombine.high %v1617_v11, %v1621_v12  ;;  %v1634_v2 = vld [vmem:[#allocation9 + $0x90] sm:$0xff] }
 0x71d   :  { %2935 = vmatprep.subr.bf16.mxu0 %v9986_v24  ;;  %2894 = vmatprep.subr.bf16.mxu1 %v9858_v25  ;;  %v9937_v24 = vcombine.low %v1745_v9, %v1749_v10  ;;  %v9809_v25 = vcombine.low %v1617_v11, %v1621_v12  ;;  %v1626_v10 = vld [vmem:[#allocation9 + $0x50] sm:$0xff]  ;;  %v1689_v12 = vld [vmem:[#allocation9 + $0x248] sm:$0xff] }
 0x71e   :  { %2965 = vmatprep.mubr.bf16.mxu0 %v12477_v34  ;;  %v1630_v11 = vld [vmem:[#allocation9 + $0x70] sm:$0xff] }
 0x71f   :  { %2936 = vmatpush1.bf16.msra.mxu0 %v9985_v31  ;;  %v1733_v31 = vld [vmem:[#allocation9 + $0x3a8] sm:$0xff] }
 0x720   :  { %2895 = vmatpush1.bf16.msra.mxu1 %v9857_v32  ;;  %2937 = vmatprep.subr.bf16.mxu0 %v9978_v35  ;;  %v9867_v32 = vcombine.low %v1674_v16, %v1678_v18  ;;  %v9929_v35 = vcombine.low %v1737_v19, %v1741_v22  ;;  %v9922_v40 = vcombine.high %v1729_v30, %v1733_v31  ;;  %v1618_v18 = vld [vmem:[#allocation9 + $0x10] sm:$0xff]  ;;  %v1681_v22 = vld [vmem:[#allocation9 + $0x208] sm:$0xff] }
 0x721   :  { %2896 = vmatprep.subr.bf16.mxu1 %v9850_v39  ;;  %v9860_v39 = vcombine.high %v1666_v28, %v1670_v29  ;;  %v1622_v19 = vld [vmem:[#allocation9 + $0x30] sm:$0xff] }
 0x723   :  { %2938 = vmatpush1.bf16.msra.mxu0 %v9977_v44  ;;  %v1725_v44 = vld [vmem:[#allocation9 + $0x368] sm:$0xff] }
 0x724   :  { %2897 = vmatpush1.bf16.msra.mxu1 %v9849_v45  ;;  %2939 = vmatprep.subr.bf16.mxu0 %v9970_v46  ;;  %v9859_v45 = vcombine.low %v1666_v28, %v1670_v29  ;;  %v9921_v46 = vcombine.low %v1729_v30, %v1733_v31  ;;  %v9914_v48 = vcombine.high %v1721_v43, %v1725_v44  ;;  %v1738_v29 = vld [vmem:[#allocation9 + $0x3d0] sm:$0xff] }
 0x725   :  { %2898 = vmatprep.subr.bf16.mxu1 %v9842_v47  ;;  %v9852_v47 = vcombine.high %v1658_v41, %v1662_v42  ;;  %v1742_v30 = vld [vmem:[#allocation9 + $0x3f0] sm:$0xff] }
 0x726   :  { %v1802_v31 = vld [vmem:[#allocation9 + $0x5d0] sm:$0xff] }
 0x727   :  { %2940 = vmatpush1.bf16.msra.mxu0 %v9969_v52  ;;  %v1717_v52 = vld [vmem:[#allocation9 + $0x328] sm:$0xff] }
 0x728   :  { %2899 = vmatpush1.bf16.msra.mxu1 %v9841_v53  ;;  %2941 = vmatprep.subr.bf16.mxu0 %v9962_v54  ;;  %v9851_v53 = vcombine.low %v1658_v41, %v1662_v42  ;;  %v9913_v54 = vcombine.low %v1721_v43, %v1725_v44  ;;  %v9906_v56 = vcombine.high %v1713_v51, %v1717_v52  ;;  %v1730_v42 = vld [vmem:[#allocation9 + $0x390] sm:$0xff] }
 0x729   :  { %2900 = vmatprep.subr.bf16.mxu1 %v9834_v55  ;;  %v9844_v55 = vcombine.high %v1650_v49, %v1654_v50  ;;  %v1734_v43 = vld [vmem:[#allocation9 + $0x3b0] sm:$0xff] }
 0x72a   :  { %v1794_v44 = vld [vmem:[#allocation9 + $0x590] sm:$0xff] }
 0x72b   :  { %2942 = vmatpush1.bf16.msra.mxu0 %v9961_v60  ;;  %v1709_v60 = vld [vmem:[#allocation9 + $0x2e8] sm:$0xff] }
 0x72c   :  { %2901 = vmatpush1.bf16.msra.mxu1 %v9833_v61  ;;  %2943 = vmatprep.subr.bf16.mxu0 %v9954_v62  ;;  %v9843_v61 = vcombine.low %v1650_v49, %v1654_v50  ;;  %v9905_v62 = vcombine.low %v1713_v51, %v1717_v52  ;;  %v9898_v1 = vcombine.high %v1705_v59, %v1709_v60  ;;  %v1722_v50 = vld [vmem:[#allocation9 + $0x350] sm:$0xff] }
 0x72d   :  { %2902 = vmatprep.subr.bf16.mxu1 %v9826_v63  ;;  %v9836_v63 = vcombine.high %v1642_v57, %v1646_v58  ;;  %v1726_v51 = vld [vmem:[#allocation9 + $0x370] sm:$0xff] }
 0x72e   :  { %v1786_v52 = vld [vmem:[#allocation9 + $0x550] sm:$0xff] }
 0x72f   :  { %2944 = vmatpush1.bf16.msra.mxu0 %v9953_v5  ;;  %v1701_v5 = vld [vmem:[#allocation9 + $0x2a8] sm:$0xff] }
 0x730   :  { %2903 = vmatpush1.bf16.msra.mxu1 %v9825_v6  ;;  %2945 = vmatprep.subr.bf16.mxu0 %v9946_v7  ;;  %v9835_v6 = vcombine.low %v1642_v57, %v1646_v58  ;;  %v9897_v7 = vcombine.low %v1705_v59, %v1709_v60  ;;  %v9890_v9 = vcombine.high %v1697_v4, %v1701_v5  ;;  %v1714_v58 = vld [vmem:[#allocation9 + $0x310] sm:$0xff] }
 0x731   :  { %2904 = vmatprep.subr.bf16.mxu1 %v9818_v8  ;;  %v9828_v8 = vcombine.high %v1634_v2, %v1638_v3  ;;  %v1718_v59 = vld [vmem:[#allocation9 + $0x330] sm:$0xff] }
 0x732   :  { %v1778_v60 = vld [vmem:[#allocation9 + $0x510] sm:$0xff] }
 0x733   :  { %2946 = vmatpush1.bf16.msra.mxu0 %v9945_v13  ;;  %v1693_v13 = vld [vmem:[#allocation9 + $0x268] sm:$0xff] }
 0x734   :  { %2905 = vmatpush1.bf16.msra.mxu1 %v9817_v14  ;;  %2947 = vmatprep.subr.bf16.mxu0 %v9938_v17  ;;  %v9827_v14 = vcombine.low %v1634_v2, %v1638_v3  ;;  %v9889_v17 = vcombine.low %v1697_v4, %v1701_v5  ;;  %v9882_v16 = vcombine.high %v1689_v12, %v1693_v13  ;;  %v1706_v3 = vld [vmem:[#allocation9 + $0x2d0] sm:$0xff] }
 0x735   :  { %2906 = vmatprep.subr.bf16.mxu1 %v9810_v15  ;;  %v9820_v15 = vcombine.high %v1626_v10, %v1630_v11  ;;  %v1710_v4 = vld [vmem:[#allocation9 + $0x2f0] sm:$0xff] }
 0x736   :  { %v1770_v5 = vld [vmem:[#allocation9 + $0x4d0] sm:$0xff] }
 0x737   :  { %2948 = vmatpush1.bf16.msra.mxu0 %v9937_v24  ;;  %v1685_v24 = vld [vmem:[#allocation9 + $0x228] sm:$0xff] }
 0x738   :  { %2907 = vmatpush1.bf16.msra.mxu1 %v9809_v25  ;;  %2974 = vmatprep.subr.bf16.mxu0 %v9868_v26  ;;  %v9819_v25 = vcombine.low %v1626_v10, %v1630_v11  ;;  %v9881_v26 = vcombine.low %v1689_v12, %v1693_v13  ;;  %v9874_v28 = vcombine.high %v1681_v22, %v1685_v24  ;;  %v1698_v11 = vld [vmem:[#allocation9 + $0x290] sm:$0xff] }
 0x739   :  { %2908 = vmatprep.subr.bf16.mxu1 %v9930_v27  ;;  %v9812_v27 = vcombine.high %v1618_v18, %v1622_v19  ;;  %v1702_v12 = vld [vmem:[#allocation9 + $0x2b0] sm:$0xff] }
 0x73a   :  { %2966 = vmatmul.mubr.bf16.vlgmr.msra.gmra.mxu0 %v12788_v23  ;;  %v1762_v13 = vld [vmem:[#allocation9 + $0x490] sm:$0xff] }
 0x73b   :  { %2975 = vmatpush1.bf16.msra.mxu0 %v9867_v32  ;;  %3006 = vmatprep.mubr.bf16.mxu0 %v12784_v20  ;;  %v1806_v32 = vld [vmem:[#allocation9 + $0x5f0] sm:$0xff] }
 0x73c   :  { %2909 = vmatpush2.bf16.msra.mxu1 %v9929_v35  ;;  %2976 = vmatprep.subr.bf16.mxu0 %v9860_v39  ;;  %v9811_v35 = vcombine.low %v1618_v18, %v1622_v19  ;;  %v9873_v39 = vcombine.low %v1681_v22, %v1685_v24  ;;  %v9996_v41 = vcombine.high %v1802_v31, %v1806_v32  ;;  %v1690_v19 = vld [vmem:[#allocation9 + $0x250] sm:$0xff] }
 0x73d   :  { %2910 = vmatprep.subr.bf16.mxu1 %v9922_v40  ;;  %v9932_v40 = vcombine.high %v1738_v29, %v1742_v30  ;;  %v1694_v22 = vld [vmem:[#allocation9 + $0x270] sm:$0xff] }
 0x73e   :  { %v1754_v24 = vld [vmem:[#allocation9 + $0x450] sm:$0xff] }
 0x73f   :  { %2977 = vmatpush1.bf16.msra.mxu0 %v9859_v45  ;;  %v1798_v45 = vld [vmem:[#allocation9 + $0x5b0] sm:$0xff] }
 0x740   :  { %2911 = vmatpush2.bf16.msra.mxu1 %v9921_v46  ;;  %2978 = vmatprep.subr.bf16.mxu0 %v9852_v47  ;;  %v9931_v46 = vcombine.low %v1738_v29, %v1742_v30  ;;  %v9995_v47 = vcombine.low %v1802_v31, %v1806_v32  ;;  %v9988_v49 = vcombine.high %v1794_v44, %v1798_v45  ;;  %v1682_v30 = vld [vmem:[#allocation9 + $0x210] sm:$0xff] }
 0x741   :  { %2912 = vmatprep.subr.bf16.mxu1 %v9914_v48  ;;  %v9924_v48 = vcombine.high %v1730_v42, %v1734_v43  ;;  %v1686_v31 = vld [vmem:[#allocation9 + $0x230] sm:$0xff] }
 0x742   :  { %v1746_v32 = vld [vmem:[#allocation9 + $0x410] sm:$0xff] }
 0x743   :  { %2979 = vmatpush1.bf16.msra.mxu0 %v9851_v53  ;;  %v1790_v53 = vld [vmem:[#allocation9 + $0x570] sm:$0xff] }
 0x744   :  { %2913 = vmatpush2.bf16.msra.mxu1 %v9913_v54  ;;  %2980 = vmatprep.subr.bf16.mxu0 %v9844_v55  ;;  %v9923_v54 = vcombine.low %v1730_v42, %v1734_v43  ;;  %v9987_v55 = vcombine.low %v1794_v44, %v1798_v45  ;;  %v9980_v57 = vcombine.high %v1786_v52, %v1790_v53  ;;  %v1803_v43 = vld [vmem:[#allocation9 + $0x5d8] sm:$0xff] }
 0x745   :  { %2914 = vmatprep.subr.bf16.mxu1 %v9906_v56  ;;  %v9916_v56 = vcombine.high %v1722_v50, %v1726_v51  ;;  %v1807_v44 = vld [vmem:[#allocation9 + $0x5f8] sm:$0xff] }
 0x746   :  { %v1675_v45 = vld [vmem:[#allocation9 + $0x1d8] sm:$0xff] }
 0x747   :  { %2981 = vmatpush1.bf16.msra.mxu0 %v9843_v61  ;;  %v1782_v61 = vld [vmem:[#allocation9 + $0x530] sm:$0xff] }
 0x748   :  { %2915 = vmatpush2.bf16.msra.mxu1 %v9905_v62  ;;  %2982 = vmatprep.subr.bf16.mxu0 %v9836_v63  ;;  %v9915_v62 = vcombine.low %v1722_v50, %v1726_v51  ;;  %v9979_v63 = vcombine.low %v1786_v52, %v1790_v53  ;;  %v9972_v2 = vcombine.high %v1778_v60, %v1782_v61  ;;  %v1795_v51 = vld [vmem:[#allocation9 + $0x598] sm:$0xff] }
 0x749   :  { %2916 = vmatprep.subr.bf16.mxu1 %v9898_v1  ;;  %v9908_v1 = vcombine.high %v1714_v58, %v1718_v59  ;;  %v1799_v52 = vld [vmem:[#allocation9 + $0x5b8] sm:$0xff] }
 0x74a   :  { %v1667_v53 = vld [vmem:[#allocation9 + $0x198] sm:$0xff] }
 0x74b   :  { %2983 = vmatpush1.bf16.msra.mxu0 %v9835_v6  ;;  %v1774_v6 = vld [vmem:[#allocation9 + $0x4f0] sm:$0xff] }
 0x74c   :  { %2917 = vmatpush2.bf16.msra.mxu1 %v9897_v7  ;;  %2984 = vmatprep.subr.bf16.mxu0 %v9828_v8  ;;  %v9907_v7 = vcombine.low %v1714_v58, %v1718_v59  ;;  %v9971_v8 = vcombine.low %v1778_v60, %v1782_v61  ;;  %v9964_v10 = vcombine.high %v1770_v5, %v1774_v6  ;;  %v1787_v59 = vld [vmem:[#allocation9 + $0x558] sm:$0xff] }
 0x74d   :  { %2918 = vmatprep.subr.bf16.mxu1 %v9890_v9  ;;  %v9900_v9 = vcombine.high %v1706_v3, %v1710_v4  ;;  %v1791_v60 = vld [vmem:[#allocation9 + $0x578] sm:$0xff] }
 0x74e   :  { %v1659_v61 = vld [vmem:[#allocation9 + $0x158] sm:$0xff] }
 0x74f   :  { %2985 = vmatpush1.bf16.msra.mxu0 %v9827_v14  ;;  %v1766_v14 = vld [vmem:[#allocation9 + $0x4b0] sm:$0xff] }
 0x750   :  { %2919 = vmatpush2.bf16.msra.mxu1 %v9889_v17  ;;  %2986 = vmatprep.subr.bf16.mxu0 %v9820_v15  ;;  %v9899_v17 = vcombine.low %v1706_v3, %v1710_v4  ;;  %v9963_v15 = vcombine.low %v1770_v5, %v1774_v6  ;;  %v9956_v18 = vcombine.high %v1762_v13, %v1766_v14  ;;  %v1779_v4 = vld [vmem:[#allocation9 + $0x518] sm:$0xff] }
 0x751   :  { %2920 = vmatprep.subr.bf16.mxu1 %v9882_v16  ;;  %v9892_v16 = vcombine.high %v1698_v11, %v1702_v12  ;;  %v1783_v5 = vld [vmem:[#allocation9 + $0x538] sm:$0xff] }
 0x752   :  { %v1651_v6 = vld [vmem:[#allocation9 + $0x118] sm:$0xff] }
 0x753   :  { %2987 = vmatpush1.bf16.msra.mxu0 %v9819_v25  ;;  %v1758_v25 = vld [vmem:[#allocation9 + $0x470] sm:$0xff] }
 0x754   :  { %2921 = vmatpush2.bf16.msra.mxu1 %v9881_v26  ;;  %2988 = vmatprep.subr.bf16.mxu0 %v9812_v27  ;;  %v9891_v26 = vcombine.low %v1698_v11, %v1702_v12  ;;  %v9955_v27 = vcombine.low %v1762_v13, %v1766_v14  ;;  %v9948_v29 = vcombine.high %v1754_v24, %v1758_v25  ;;  %v1775_v12 = vld [vmem:[#allocation9 + $0x4f8] sm:$0xff] }
 0x755   :  { %2922 = vmatprep.subr.bf16.mxu1 %v9874_v28  ;;  %v9884_v28 = vcombine.high %v1690_v19, %v1694_v22  ;;  %v1643_v13 = vld [vmem:[#allocation9 + $0xd8] sm:$0xff] }
 0x756   :  { %v1647_v14 = vld [vmem:[#allocation9 + $0xf8] sm:$0xff] }
 0x757   :  { %2989 = vmatpush1.bf16.msra.mxu0 %v9811_v35  ;;  %v1750_v35 = vld [vmem:[#allocation9 + $0x430] sm:$0xff] }
 0x758   :  { %2923 = vmatpush2.bf16.msra.mxu1 %v9873_v39  ;;  %2990 = vmatprep.subr.bf16.mxu0 %v9932_v40  ;;  %v9883_v39 = vcombine.low %v1690_v19, %v1694_v22  ;;  %v9947_v40 = vcombine.low %v1754_v24, %v1758_v25  ;;  %v9940_v42 = vcombine.high %v1746_v32, %v1750_v35  ;;  %v1763_v19 = vld [vmem:[#allocation9 + $0x498] sm:$0xff] }
 0x759   :  { %3015 = vmatprep.subr.bf16.mxu1 %v9996_v41  ;;  %v9876_v41 = vcombine.high %v1682_v30, %v1686_v31  ;;  %v1767_v22 = vld [vmem:[#allocation9 + $0x4b8] sm:$0xff] }
 0x75a   :  { %v1635_v24 = vld [vmem:[#allocation9 + $0x98] sm:$0xff] }
 0x75b   :  { %2925 = vmatmul.mubr.bf16.vlgmr.msra.gmra.mxu1 %v12786_v21  ;;  %2991 = vmatpush2.bf16.msra.mxu0 %v9931_v46  ;;  %v1679_v46 = vld [vmem:[#allocation9 + $0x1f8] sm:$0xff] }
 0x75c   :  { %3016 = vmatpush1.bf16.msra.mxu1 %v9995_v47  ;;  %2992 = vmatprep.subr.bf16.mxu0 %v9924_v48  ;;  %v9875_v47 = vcombine.low %v1682_v30, %v1686_v31  ;;  %v9939_v48 = vcombine.low %v1746_v32, %v1750_v35  ;;  %v9870_v50 = vcombine.high %v1675_v45, %v1679_v46  ;;  %v1639_v25 = vld [vmem:[#allocation9 + $0xb8] sm:$0xff] }
 0x75d   :  { %3017 = vmatprep.subr.bf16.mxu1 %v9988_v49  ;;  %3047 = vmatprep.mubr.bf16.mxu1 %v12477_v34  ;;  %v9998_v49 = vcombine.high %v1803_v43, %v1807_v44  ;;  %v1755_v30 = vld [vmem:[#allocation9 + $0x458] sm:$0xff] }
 0x75e   :  { %v1759_v31 = vld [vmem:[#allocation9 + $0x478] sm:$0xff] }
 0x75f   :  { %2993 = vmatpush2.bf16.msra.mxu0 %v9923_v54  ;;  %v1671_v54 = vld [vmem:[#allocation9 + $0x1b8] sm:$0xff] }
 0x760   :  { %3018 = vmatpush1.bf16.msra.mxu1 %v9987_v55  ;;  %2994 = vmatprep.subr.bf16.mxu0 %v9916_v56  ;;  %v9997_v55 = vcombine.low %v1803_v43, %v1807_v44  ;;  %v9869_v56 = vcombine.low %v1675_v45, %v1679_v46  ;;  %v9862_v58 = vcombine.high %v1667_v53, %v1671_v54  ;;  %v1627_v32 = vld [vmem:[#allocation9 + $0x58] sm:$0xff] }
 0x761   :  { %3019 = vmatprep.subr.bf16.mxu1 %v9980_v57  ;;  %v9990_v57 = vcombine.high %v1795_v51, %v1799_v52  ;;  %v1631_v35 = vld [vmem:[#allocation9 + $0x78] sm:$0xff] }
 0x762   :  { %v1747_v43 = vld [vmem:[#allocation9 + $0x418] sm:$0xff] }
 0x763   :  { %2995 = vmatpush2.bf16.msra.mxu0 %v9915_v62  ;;  %v1663_v62 = vld [vmem:[#allocation9 + $0x178] sm:$0xff] }
 0x764   :  { %3020 = vmatpush1.bf16.msra.mxu1 %v9979_v63  ;;  %2996 = vmatprep.subr.bf16.mxu0 %v9908_v1  ;;  %v9989_v63 = vcombine.low %v1795_v51, %v1799_v52  ;;  %v9861_v1 = vcombine.low %v1667_v53, %v1671_v54  ;;  %v9854_v3 = vcombine.high %v1659_v61, %v1663_v62  ;;  %v1751_v44 = vld [vmem:[#allocation9 + $0x438] sm:$0xff] }
 0x765   :  { %3021 = vmatprep.subr.bf16.mxu1 %v9972_v2  ;;  %v9982_v2 = vcombine.high %v1787_v59, %v1791_v60  ;;  %v1619_v45 = vld [vmem:[#allocation9 + $0x18] sm:$0xff]  ;;  %v9941_v53 = vcombine.low %v1747_v43, %v1751_v44 }
 0x766   :  { %v1623_v46 = vld [vmem:[#allocation9 + $0x38] sm:$0xff] }
 0x767   :  { %2997 = vmatpush2.bf16.msra.mxu0 %v9907_v7  ;;  %v1655_v7 = vld [vmem:[#allocation9 + $0x138] sm:$0xff]  ;;  %v9813_v54 = vcombine.low %v1619_v45, %v1623_v46 }
 0x768   :  { %3022 = vmatpush1.bf16.msra.mxu1 %v9971_v8  ;;  %2998 = vmatprep.subr.bf16.mxu0 %v9900_v9  ;;  %v9981_v8 = vcombine.low %v1787_v59, %v1791_v60  ;;  %v9853_v9 = vcombine.low %v1659_v61, %v1663_v62  ;;  %v9846_v11 = vcombine.high %v1651_v6, %v1655_v7  ;;  %v1739_v51 = vld [vmem:[#allocation9 + $0x3d8] sm:$0xff]  ;;  %v11297_v59 = vld [vmem:[#allocation12 + $0x38] sm:$0xff]  }
 0x769   :  { %3023 = vmatprep.subr.bf16.mxu1 %v9964_v10  ;;  %v9974_v10 = vcombine.high %v1779_v4, %v1783_v5  ;;  %v1743_v52 = vld [vmem:[#allocation9 + $0x3f8] sm:$0xff] }
 0x76a   :  { %v9933_v60 = vcombine.low %v1739_v51, %v1743_v52  ;;  %v11298_v61 = vld [vmem:[#allocation12 + $0x70] sm:$0xff]  }
 0x76b   :  { %2999 = vmatpush2.bf16.msra.mxu0 %v9899_v17  ;;  %v9973_v17 = vcombine.low %v1779_v4, %v1783_v5  ;;  %v11300_v4 = vld [vmem:[#allocation12 + $0x68] sm:$0xff]  }
 0x76c   :  { %3024 = vmatpush1.bf16.msra.mxu1 %v9963_v15  ;;  %3000 = vmatprep.subr.bf16.mxu0 %v9892_v16  ;;  %v9845_v15 = vcombine.low %v1651_v6, %v1655_v7  ;;  %v1715_v6 = vld [vmem:[#allocation9 + $0x318] sm:$0xff] }
 0x76d   :  { %3025 = vmatprep.subr.bf16.mxu1 %v9956_v18  ;;  %v9838_v18 = vcombine.high %v1643_v13, %v1647_v14  ;;  %v1719_v7 = vld [vmem:[#allocation9 + $0x338] sm:$0xff] }
 0x76f   :  { %3001 = vmatpush2.bf16.msra.mxu0 %v9891_v26 }
 0x770   :  { %3026 = vmatpush1.bf16.msra.mxu1 %v9955_v27  ;;  %3002 = vmatprep.subr.bf16.mxu0 %v9884_v28  ;;  %v9837_v27 = vcombine.low %v1643_v13, %v1647_v14  ;;  %v9958_v28 = vcombine.high %v1763_v19, %v1767_v22  ;;  %v9909_v13 = vcombine.low %v1715_v6, %v1719_v7  ;;  %v11304_v14 = vld [vmem:[#allocation12 + $0x58] sm:$0xff]  }
 0x771   :  { %3027 = vmatprep.subr.bf16.mxu1 %v9948_v29  ;;  %v9830_v29 = vcombine.high %v1635_v24, %v1639_v25 }
 0x773   :  { %3003 = vmatpush2.bf16.msra.mxu0 %v9883_v39  ;;  %v9957_v39 = vcombine.low %v1763_v19, %v1767_v22  ;;  %v11306_v22 = vld [vmem:[#allocation12 + $0x50] sm:$0xff]  }
 0x774   :  { %3028 = vmatpush1.bf16.msra.mxu1 %v9947_v40  ;;  %3004 = vmatprep.subr.bf16.mxu0 %v9876_v41  ;;  %v9829_v40 = vcombine.low %v1635_v24, %v1639_v25  ;;  %v9950_v41 = vcombine.high %v1755_v30, %v1759_v31  ;;  %v1691_v25 = vld [vmem:[#allocation9 + $0x258] sm:$0xff] }
 0x775   :  { %3029 = vmatprep.subr.bf16.mxu1 %v9940_v42  ;;  %v9822_v42 = vcombine.high %v1627_v32, %v1631_v35 }
 0x777   :  { %3005 = vmatpush2.bf16.msra.mxu0 %v9875_v47  ;;  %v9949_v47 = vcombine.low %v1755_v30, %v1759_v31  ;;  %v1683_v31 = vld [vmem:[#allocation9 + $0x218] sm:$0xff] }
 0x778   :  { %3030 = vmatpush1.bf16.msra.mxu1 %v9939_v48  ;;  %3097 = vmatprep.subr.bf16.mxu0 %v9998_v49  ;;  %v9821_v48 = vcombine.low %v1627_v32, %v1631_v35  ;;  %v9942_v49 = vcombine.high %v1747_v43, %v1751_v44  ;;  %v1687_v32 = vld [vmem:[#allocation9 + $0x238] sm:$0xff]  ;;  %v11309_v35 = vld [vmem:[#allocation12 + $0x8] sm:$0xff]   ;;  %v11328_v44 = vld [vmem:[#allocation12 + $0x178] sm:$0xff]  }
 0x779   :  { %3056 = vmatprep.subr.bf16.mxu1 %v9870_v50  ;;  %v9814_v50 = vcombine.high %v1619_v45, %v1623_v46  ;;  %v9877_v43 = vcombine.low %v1683_v31, %v1687_v32  ;;  %v11312_v45 = vld [vmem:[#allocation12 + $0xf8] sm:$0xff]  }
 0x77a   :  { %3007 = vmatmul.mubr.bf16.vlgmr.msra.gmra.mxu0 %v12786_v21  ;;  %v11313_v46 = vld [vmem:[#allocation12 + $0xb8] sm:$0xff]  }
 0x77b   :  { %3048 = vmatmul.mubr.bf16.vlgmr.msra.gmra.mxu1 %v12788_v23  ;;  %3098 = vmatpush1.bf16.msra.mxu0 %v9997_v55  ;;  %v11296_v55 = vld [vmem:[#allocation12 + $0x78] sm:$0xff]  }
 0x77c   :  { %3057 = vmatpush1.bf16.msra.mxu1 %v9869_v56  ;;  %3088 = vmatprep.mubr.bf16.mxu1 %v12784_v20  ;;  %v1771_v20 = vld [vmem:[#allocation9 + $0x4d8] sm:$0xff]  ;;  %v9934_v56 = vcombine.high %v1739_v51, %v1743_v52  ;;  %v11318_v51 = vld [vmem:[#allocation12 + $0xe0] sm:$0xff]  }
 0x77d   :  { %3099 = vmatprep.subr.bf16.mxu0 %v9990_v57  ;;  %3058 = vmatprep.subr.bf16.mxu1 %v9862_v58  ;;  %v9966_v16 = vcombine.high %v1771_v20, %v1775_v12  ;;  %v9965_v26 = vcombine.low %v1771_v20, %v1775_v12  ;;  %v1731_v57 = vld [vmem:[#allocation9 + $0x398] sm:$0xff]  ;;  %v11303_v12 = vld [vmem:[#allocation12 + $0x20] sm:$0xff]  }
 0x77e   :  { %3129 = vmatprep.mubr.bf16.mxu0 %v12477_v34  ;;  %v1735_v58 = vld [vmem:[#allocation9 + $0x3b8] sm:$0xff]  ;;  %v11319_v52 = vld [vmem:[#allocation12 + $0xa0] sm:$0xff]  }
 0x77f   :  { %3100 = vmatpush1.bf16.msra.mxu0 %v9989_v63  ;;  %v9926_v62 = vcombine.high %v1731_v57, %v1735_v58  ;;  %v1723_v63 = vld [vmem:[#allocation9 + $0x358] sm:$0xff] }
 0x780   :  { %3059 = vmatpush1.bf16.msra.mxu1 %v9861_v1  ;;  %3101 = vmatprep.subr.bf16.mxu0 %v9982_v2  ;;  %v1727_v1 = vld [vmem:[#allocation9 + $0x378] sm:$0xff] }
 0x781   :  { %3060 = vmatprep.subr.bf16.mxu1 %v9854_v3  ;;  %v11299_v2 = vld [vmem:[#allocation12 + $0x30] sm:$0xff]   ;;  %v9925_v3 = vcombine.low %v1731_v57, %v1735_v58  ;;  %v9918_v5 = vcombine.high %v1723_v63, %v1727_v1  ;;  %v11325_v57 = vld [vmem:[#allocation12 + $0x88] sm:$0xff]   ;;  %v11326_v58 = vld [vmem:[#allocation12 + $0xc0] sm:$0xff]  }
 0x782   :  { %v1711_v20 = vld [vmem:[#allocation9 + $0x2f8] sm:$0xff] }
 0x783   :  { %3102 = vmatpush1.bf16.msra.mxu0 %v9981_v8  ;;  %v11301_v8 = vld [vmem:[#allocation12 + $0x28] sm:$0xff]  }
 0x784   :  { %3061 = vmatpush1.bf16.msra.mxu1 %v9853_v9  ;;  %3103 = vmatprep.subr.bf16.mxu0 %v9974_v10  ;;  %v9917_v9 = vcombine.low %v1723_v63, %v1727_v1  ;;  %v11302_v10 = vld [vmem:[#allocation12 + $0x60] sm:$0xff]  }
 0x785   :  { %3062 = vmatprep.subr.bf16.mxu1 %v9846_v11  ;;  %v1707_v11 = vld [vmem:[#allocation9 + $0x2d8] sm:$0xff] }
 0x786   :  { %v9901_v19 = vcombine.low %v1707_v11, %v1711_v20 }
 0x787   :  { %3104 = vmatpush1.bf16.msra.mxu0 %v9973_v17  ;;  %v9902_v17 = vcombine.high %v1707_v11, %v1711_v20 }
 0x788   :  { %3063 = vmatpush1.bf16.msra.mxu1 %v9845_v15  ;;  %3105 = vmatprep.subr.bf16.mxu0 %v9966_v16  ;;  %v1699_v15 = vld [vmem:[#allocation9 + $0x298] sm:$0xff] }
 0x789   :  { %3064 = vmatprep.subr.bf16.mxu1 %v9838_v18  ;;  %v1703_v16 = vld [vmem:[#allocation9 + $0x2b8] sm:$0xff]  ;;  %v11305_v18 = vld [vmem:[#allocation12 + $0x18] sm:$0xff]  }
 0x78a   :  { %v9894_v24 = vcombine.high %v1699_v15, %v1703_v16 }
 0x78b   :  { %3106 = vmatpush1.bf16.msra.mxu0 %v9965_v26  ;;  %v1695_v26 = vld [vmem:[#allocation9 + $0x278] sm:$0xff] }
 0x78c   :  { %3065 = vmatpush1.bf16.msra.mxu1 %v9837_v27  ;;  %3107 = vmatprep.subr.bf16.mxu0 %v9958_v28  ;;  %v11307_v27 = vld [vmem:[#allocation12 + $0x10] sm:$0xff]   ;;  %v9893_v28 = vcombine.low %v1699_v15, %v1703_v16  ;;  %v9886_v30 = vcombine.high %v1691_v25, %v1695_v26  ;;  %v11352_v15 = vld [vmem:[#allocation12 + $0x1f8] sm:$0xff]  }
 0x78d   :  { %3066 = vmatprep.subr.bf16.mxu1 %v9830_v29  ;;  %v11308_v29 = vld [vmem:[#allocation12 + $0x48] sm:$0xff]   ;;  %v11331_v16 = vld [vmem:[#allocation12 + $0x130] sm:$0xff]  }
 0x78f   :  { %3108 = vmatpush1.bf16.msra.mxu0 %v9957_v39  ;;  %v9885_v39 = vcombine.low %v1691_v25, %v1695_v26  ;;  %v11336_v25 = vld [vmem:[#allocation12 + $0x158] sm:$0xff]  }
 0x790   :  { %3067 = vmatpush1.bf16.msra.mxu1 %v9829_v40  ;;  %3109 = vmatprep.subr.bf16.mxu0 %v9950_v41  ;;  %v11310_v40 = vld [vmem:[#allocation12 + $0x40] sm:$0xff]   ;;  %v9878_v41 = vcombine.high %v1683_v31, %v1687_v32  ;;  %v11337_v26 = vld [vmem:[#allocation12 + $0x118] sm:$0xff]   ;;  %v11341_v31 = vld [vmem:[#allocation12 + $0x108] sm:$0xff]  }
 0x791   :  { %3068 = vmatprep.subr.bf16.mxu1 %v9822_v42  ;;  %v11311_v42 = vld [vmem:[#allocation12] sm:$0xff]  }
 0x793   :  { %3110 = vmatpush1.bf16.msra.mxu0 %v9949_v47  ;;  %v11314_v47 = vld [vmem:[#allocation12 + $0xf0] sm:$0xff]  }
 0x794   :  { %3069 = vmatpush1.bf16.msra.mxu1 %v9821_v48  ;;  %3111 = vmatprep.subr.bf16.mxu0 %v9942_v49  ;;  %v11315_v48 = vld [vmem:[#allocation12 + $0xb0] sm:$0xff]   ;;  %v11316_v49 = vld [vmem:[#allocation12 + $0xe8] sm:$0xff]  }
 0x795   :  { %3070 = vmatprep.subr.bf16.mxu1 %v9814_v50  ;;  %v11317_v50 = vld [vmem:[#allocation12 + $0xa8] sm:$0xff]  }
 0x797   :  { %3112 = vmatpush1.bf16.msra.mxu0 %v9941_v53  ;;  %v11320_v53 = vld [vmem:[#allocation12 + $0xd8] sm:$0xff]  }
 0x798   :  { %3071 = vmatpush1.bf16.msra.mxu1 %v9813_v54  ;;  %10766 = vmatprep.subr.bf16.mxu0 %v11296_v55  ;;  %v11321_v54 = vld [vmem:[#allocation12 + $0x98] sm:$0xff]   ;;  %v11322_v55 = vld [vmem:[#allocation12 + $0xd0] sm:$0xff]  }
 0x799   :  { %3072 = vmatprep.subr.bf16.mxu1 %v9934_v56  ;;  %v11323_v56 = vld [vmem:[#allocation12 + $0x90] sm:$0xff]  }
 0x79a   :  { %3130 = vmatmul.mubr.bf16.vlgmr.msra.gmra.mxu0 %v12788_v23  ;;  %v9910_v23 = vcombine.high %v1715_v6, %v1719_v7 }
 0x79b   :  { %10767 = vmatpush3.bf16.msra.mxu0 %v11297_v59  ;;  %v12805_v59 = vld [vmem:[#allocation10] sm:$0xff] }
 0x79c   :  { %3073 = vmatpush2.bf16.msra.mxu1 %v9933_v60  ;;  %10768 = vmatprep.subr.bf16.mxu0 %v11298_v61  ;;  %v11327_v60 = vld [vmem:[#allocation12 + $0x80] sm:$0xff]   ;;  %v1813_v61 = vrot.slane %v12805_v59, %v12755_v38 }
 0x79d   :  { %3074 = vmatprep.subr.bf16.mxu1 %v9926_v62  ;;  %v1817_v62 = vrot.slane %v12805_v59, %v12752_v37 }
 0x79f   :  { %10769 = vmatpush3.bf16.msra.mxu0 %v11299_v2 }
 0x7a0   :  { %3075 = vmatpush2.bf16.msra.mxu1 %v9925_v3  ;;  %10770 = vmatprep.subr.bf16.mxu0 %v11300_v4 }
 0x7a1   :  { %3076 = vmatprep.subr.bf16.mxu1 %v9918_v5 }
 0x7a3   :  { %10771 = vmatpush3.bf16.msra.mxu0 %v11301_v8 }
 0x7a4   :  { %3077 = vmatpush2.bf16.msra.mxu1 %v9917_v9  ;;  %10772 = vmatprep.subr.bf16.mxu0 %v11302_v10 }
 0x7a5   :  { %3078 = vmatprep.subr.bf16.mxu1 %v9910_v23 }
 0x7a7   :  { %10773 = vmatpush3.bf16.msra.mxu0 %v11303_v12 }
 0x7a8   :  { %3079 = vmatpush2.bf16.msra.mxu1 %v9909_v13  ;;  %10774 = vmatprep.subr.bf16.mxu0 %v11304_v14  ;;  %v11329_v13 = vld [vmem:[#allocation12 + $0x138] sm:$0xff]  }
 0x7a9   :  { %3080 = vmatprep.subr.bf16.mxu1 %v9902_v17  ;;  %v11330_v17 = vld [vmem:[#allocation12 + $0x170] sm:$0xff]  }
 0x7ab   :  { %10775 = vmatpush3.bf16.msra.mxu0 %v11305_v18  ;;  %v11332_v18 = vld [vmem:[#allocation12 + $0x168] sm:$0xff]  }
 0x7ac   :  { %3081 = vmatpush2.bf16.msra.mxu1 %v9901_v19  ;;  %10776 = vmatprep.subr.bf16.mxu0 %v11306_v22  ;;  %v11333_v19 = vld [vmem:[#allocation12 + $0x128] sm:$0xff]   ;;  %v11334_v22 = vld [vmem:[#allocation12 + $0x160] sm:$0xff]  }
 0x7ad   :  { %3082 = vmatprep.subr.bf16.mxu1 %v9894_v24  ;;  %v11335_v24 = vld [vmem:[#allocation12 + $0x120] sm:$0xff]  }
 0x7af   :  { %10777 = vmatpush3.bf16.msra.mxu0 %v11307_v27  ;;  %v11338_v27 = vld [vmem:[#allocation12 + $0x150] sm:$0xff]  }
 0x7b0   :  { %3083 = vmatpush2.bf16.msra.mxu1 %v9893_v28  ;;  %10778 = vmatprep.subr.bf16.mxu0 %v11308_v29  ;;  %v11339_v28 = vld [vmem:[#allocation12 + $0x110] sm:$0xff]   ;;  %v11340_v29 = vld [vmem:[#allocation12 + $0x148] sm:$0xff]  }
 0x7b1   :  { %3084 = vmatprep.subr.bf16.mxu1 %v9886_v30 }
 0x7b3   :  { %10779 = vmatpush3.bf16.msra.mxu0 %v11309_v35  ;;  %v11342_v35 = vld [vmem:[#allocation12 + $0x140] sm:$0xff]  }
 0x7b4   :  { %3085 = vmatpush2.bf16.msra.mxu1 %v9885_v39  ;;  %10780 = vmatprep.subr.bf16.mxu0 %v11310_v40  ;;  %v11343_v40 = vld [vmem:[#allocation12 + $0x100] sm:$0xff]  }
 0x7b5   :  { %3086 = vmatprep.subr.bf16.mxu1 %v9878_v41 }
 0x7b7   :  { %10781 = vmatpush3.bf16.msra.mxu0 %v11311_v42  ;;  %v12811_v42 = vld [vmem:[#allocation15 + $0x38] sm:$0xff]  }
 0x7b8   :  { %3087 = vmatpush2.bf16.msra.mxu1 %v9877_v43  ;;  %10810 = vmatprep.subr.bf16.mxu0 %v11328_v44  ;;  %v12815_v43 = vsub.s32 3, %v12749_v36  ;;  %v1821_v44 = vrot.slane %v12805_v59, %v12772_v33 }
 0x7b9   :  { %10788 = vmatprep.subr.bf16.mxu1 %v11312_v45 }
 0x7ba   :  { %v1825_v45 = vrot.slane %v12805_v59, %v12815_v43 }
 0x7bb   :  { %3089 = vmatmul.mubr.bf16.vlgmr.msra.gmra.mxu1 %v12786_v21  ;;  %v11324_v21 = vld [vmem:[#allocation12 + $0xc8] sm:$0xff]  }
 0x7bc   :  { %10789 = vmatpush3.bf16.msra.mxu1 %v11313_v46 }
 0x7bd   :  { %10790 = vmatprep.subr.bf16.mxu1 %v11314_v47 }
 0x7c0   :  { %10791 = vmatpush3.bf16.msra.mxu1 %v11315_v48 }
 0x7c1   :  { %10792 = vmatprep.subr.bf16.mxu1 %v11316_v49 }
 0x7c4   :  { %10793 = vmatpush3.bf16.msra.mxu1 %v11317_v50 }
 0x7c5   :  { %10794 = vmatprep.subr.bf16.mxu1 %v11318_v51 }
 0x7c8   :  { %10795 = vmatpush3.bf16.msra.mxu1 %v11319_v52 }
 0x7c9   :  { %10796 = vmatprep.subr.bf16.mxu1 %v11320_v53 }
 0x7cc   :  { %10797 = vmatpush3.bf16.msra.mxu1 %v11321_v54 }
 0x7cd   :  { %10798 = vmatprep.subr.bf16.mxu1 %v11322_v55 }
 0x7d0   :  { %10799 = vmatpush3.bf16.msra.mxu1 %v11323_v56 }
 0x7d1   :  { %10800 = vmatprep.subr.bf16.mxu1 %v11324_v21  ;;  %v11353_v21 = vld [vmem:[#allocation12 + $0x1b8] sm:$0xff]  }
 0x7d4   :  { %10801 = vmatpush3.bf16.msra.mxu1 %v11325_v57 }
 0x7d5   :  { %10802 = vmatprep.subr.bf16.mxu1 %v11326_v58  ;;  %v11354_v58 = vld [vmem:[#allocation12 + $0x1f0] sm:$0xff]  }
 0x7d8   :  { %10803 = vmatpush3.bf16.msra.mxu1 %v11327_v60  ;;  %v11355_v60 = vld [vmem:[#allocation12 + $0x1b0] sm:$0xff]  }
 0x7d9   :  { %10832 = vmatprep.subr.bf16.mxu1 %v11352_v15 }
 0x7da   :  { %v2844_v63 = vpop.f32.mrf.mxu0 }
 0x7db   :  { %v2845_v1 = vadd.f32 %v2844_v63, %v1813_v61  ;;  %v2885_v2 = vpop.f32.mrf.mxu1  ;;  %v11356_v61 = vld [vmem:[#allocation12 + $0x1e8] sm:$0xff]   ;;  %v11358_v63 = vld [vmem:[#allocation12 + $0x1e0] sm:$0xff]  }
 0x7dc   :  { %v2846_v3 = vpop.f32.mrf.mxu0 }
 0x7dd   :  { %v2886_v4 = vadd.f32 %v2885_v2, %v2845_v1  ;;  %v2847_v5 = vadd.f32 %v2846_v3, %v1817_v62  ;;  %v2887_v6 = vpop.f32.mrf.mxu1  ;;  %v11357_v62 = vld [vmem:[#allocation12 + $0x1a8] sm:$0xff]   ;;  %v11359_v1 = vld [vmem:[#allocation12 + $0x1a0] sm:$0xff]   ;;  %v11360_v2 = vld [vmem:[#allocation12 + $0x1d8] sm:$0xff]   ;;  %v12822_v3 = vsub.s32 4, %v12749_v36 }
 0x7de   :  { %v2848_v7 = vpop.f32.mrf.mxu0 }
 0x7df   :  { %v2888_v8 = vadd.f32 %v2887_v6, %v2847_v5  ;;  %v2889_v9 = vpop.f32.mrf.mxu1  ;;  %v3138_v10 = vmax.f32 %v2886_v4, 0.0  ;;  %v11361_v4 = vld [vmem:[#allocation12 + $0x198] sm:$0xff]   ;;  %v12825_v5 = vsub.s32 5, %v12749_v36  ;;  %v11362_v6 = vld [vmem:[#allocation12 + $0x1d0] sm:$0xff]   ;;  %v1829_v7 = vrot.slane %v12805_v59, %v12822_v3 }
 0x7e0   :  { %v2849_v23 = vpop.f32.mrf.mxu0 }
 0x7e1   :  { %v3139_v11 = vmax.f32 %v2888_v8, 0.0  ;;  %v2890_v20 = vpop.f32.mrf.mxu1  ;;  %v3146_v14 = vpack.c.bf16 %v3138_v10, %v3138_v10  ;;  %v11363_v8 = vld [vmem:[#allocation12 + $0x190] sm:$0xff]   ;;  %v1833_v9 = vrot.slane %v12805_v59, %v12825_v5  ;;  %v11364_v10 = vld [vmem:[#allocation12 + $0x1c8] sm:$0xff]  }
 0x7e3   :  { %v3147_v12 = vpack.c.bf16 %v3139_v11, %v3139_v11 }
 0x7e5   :  { %3705 = vmatprep.mubr.bf16.mxu0 %v3147_v12 }
 0x7e6   :  { %3706 = vmatmul.mubr.bf16.vlgmr.msra.gmra.mxu0 %v3146_v14 }
 0x7e7   :  { %10811 = vmatpush3.bf16.msra.mxu0 %v11329_v13  ;;  %v11365_v13 = vld [vmem:[#allocation12 + $0x188] sm:$0xff]  }
 0x7e8   :  { %10812 = vmatprep.subr.bf16.mxu0 %v11330_v17 }
 0x7eb   :  { %10813 = vmatpush3.bf16.msra.mxu0 %v11331_v16  ;;  %v11366_v16 = vld [vmem:[#allocation12 + $0x1c0] sm:$0xff]  }
 0x7ec   :  { %10814 = vmatprep.subr.bf16.mxu0 %v11332_v18 }
 0x7ef   :  { %10815 = vmatpush3.bf16.msra.mxu0 %v11333_v19 }
 0x7f0   :  { %10816 = vmatprep.subr.bf16.mxu0 %v11334_v22 }
 0x7f3   :  { %10817 = vmatpush3.bf16.msra.mxu0 %v11335_v24 }
 0x7f4   :  { %10818 = vmatprep.subr.bf16.mxu0 %v11336_v25 }
 0x7f7   :  { %10819 = vmatpush3.bf16.msra.mxu0 %v11337_v26  ;;  %v3833_v26 = vld [vmem:[%s13062_s17] sm:$0xff] }
 0x7f8   :  { %10820 = vmatprep.subr.bf16.mxu0 %v11338_v27  ;;  %v3834_v27 = vld [vmem:[%s13062_s17 + $0x8] sm:$0xff] }
 0x7fa   :  { %v2967_v30 = vpop.f32.mrf.mxu0 }
 0x7fb   :  { %10821 = vmatpush3.bf16.msra.mxu0 %v11339_v28  ;;  %v11367_v28 = vld [vmem:[#allocation12 + $0x180] sm:$0xff]  }
 0x7fc   :  { %v2969_v32 = vpop.f32.mrf.mxu0  ;;  %10822 = vmatprep.subr.bf16.mxu0 %v11340_v29 }
 0x7fe   :  { %v2971_v39 = vpop.f32.mrf.mxu0 }
 0x7ff   :  { %10823 = vmatpush3.bf16.msra.mxu0 %v11341_v31  ;;  %v11345_v39 = vld [vmem:[#allocation15 + $0x30] sm:$0xff]  }
 0x800   :  { %v2972_v41 = vpop.f32.mrf.mxu0  ;;  %10824 = vmatprep.subr.bf16.mxu0 %v11342_v35 }
 0x801   :  { %v11347_v41 = vld [vmem:[#allocation15 + $0x20] sm:$0xff]  }
 0x803   :  { %10825 = vmatpush3.bf16.msra.mxu0 %v11343_v40  ;;  %v11346_v40 = vld [vmem:[#allocation15 + $0x28] sm:$0xff]  }
 0x804   :  { %11059 = vmatprep.subr.bf16.mxu0 %v12811_v42 }
 0x81b   :  { %v2926_v46 = vpop.f32.mrf.mxu1 }
 0x81c   :  { %v2927_v47 = vadd.f32 %v2926_v46, %v1821_v44  ;;  %v11348_v44 = vld [vmem:[#allocation15 + $0x18] sm:$0xff]   ;;  %v11350_v46 = vld [vmem:[#allocation15 + $0x8] sm:$0xff]  }
 0x81d   :  { %v2928_v48 = vpop.f32.mrf.mxu1 }
 0x81e   :  { %v2968_v49 = vadd.f32 %v2967_v30, %v2927_v47  ;;  %v2929_v50 = vadd.f32 %v2928_v48, %v1825_v45  ;;  %v11349_v45 = vld [vmem:[#allocation15 + $0x10] sm:$0xff]  }
 0x81f   :  { %v2930_v51 = vpop.f32.mrf.mxu1 }
 0x820   :  { %v2970_v52 = vadd.f32 %v2969_v32, %v2929_v50  ;;  %v3140_v53 = vmax.f32 %v2968_v49, 0.0  ;;  %v3836_v32 = vpack.c.bf16 %v3834_v27, %v3833_v26  ;;  %v3835_v50 = vld [vmem:[%s13062_s17 + $0x10] sm:$0xf] }
 0x821   :  { %v2931_v54 = vpop.f32.mrf.mxu1 }
 0x822   :  { %v3141_v55 = vmax.f32 %v2970_v52, 0.0  ;;  %v3148_v57 = vpack.c.bf16 %v3140_v53, %v3140_v53  ;;  %v3837_v52 = vpack.c.bf16 %v3835_v50, %v3835_v50  ;;  %v12840_v53 = vsub.s32 6, %v12749_v36  ;;  %v11373_v50 = vld [vmem:[#allocation18 + $0x10] sm:$0xff]  }
 0x823   :  { %v12843_v54 = vsub.s32 7, %v12749_v36 }
 0x824   :  { %v3149_v56 = vpack.c.bf16 %v3141_v55, %v3141_v55  ;;  %v1837_v55 = vrot.slane %v12805_v59, %v12840_v53 }
 0x826   :  { %3745 = vmatprep.mubr.bf16.mxu1 %v3149_v56  ;;  %v1841_v56 = vrot.slane %v12805_v59, %v12843_v54 }
 0x827   :  { %3746 = vmatmul.mubr.bf16.vlgmr.msra.gmra.mxu1 %v3148_v57 }
 0x828   :  { %10833 = vmatpush3.bf16.msra.mxu1 %v11353_v21 }
 0x829   :  { %10834 = vmatprep.subr.bf16.mxu1 %v11354_v58 }
 0x82c   :  { %10835 = vmatpush3.bf16.msra.mxu1 %v11355_v60 }
 0x82d   :  { %10836 = vmatprep.subr.bf16.mxu1 %v11356_v61 }
 0x830   :  { %10837 = vmatpush3.bf16.msra.mxu1 %v11357_v62 }
 0x831   :  { %10838 = vmatprep.subr.bf16.mxu1 %v11358_v63 }
 0x834   :  { %10839 = vmatpush3.bf16.msra.mxu1 %v11359_v1 }
 0x835   :  { %10840 = vmatprep.subr.bf16.mxu1 %v11360_v2 }
 0x838   :  { %10841 = vmatpush3.bf16.msra.mxu1 %v11361_v4 }
 0x839   :  { %10842 = vmatprep.subr.bf16.mxu1 %v11362_v6 }
 0x83a   :  { %v3008_v23 = vpop.f32.mrf.mxu0 }
 0x83b   :  { %v3009_v11 = vadd.f32 %v3008_v23, %v1829_v7  ;;  %v3049_v20 = vpop.f32.mrf.mxu1  ;;  %v9999_v23 = vld [vmem:[#allocation13] ss:$0 sm:$0xff] }
 0x83c   :  { %v3010_v12 = vpop.f32.mrf.mxu0  ;;  %10843 = vmatpush3.bf16.msra.mxu1 %v11363_v8 }
 0x83d   :  { %v3050_v14 = vadd.f32 %v3049_v20, %v3009_v11  ;;  %v3011_v17 = vadd.f32 %v3010_v12, %v1833_v9  ;;  %v3051_v15 = vpop.f32.mrf.mxu1  ;;  %10844 = vmatprep.subr.bf16.mxu1 %v11364_v10 }
 0x83e   :  { %v3012_v18 = vpop.f32.mrf.mxu0 }
 0x83f   :  { %v3052_v19 = vadd.f32 %v3051_v15, %v3011_v17  ;;  %v3053_v22 = vpop.f32.mrf.mxu1  ;;  %v3142_v24 = vmax.f32 %v3050_v14, 0.0 }
 0x840   :  { %v3013_v25 = vpop.f32.mrf.mxu0  ;;  %10845 = vmatpush3.bf16.msra.mxu1 %v11365_v13 }
 0x841   :  { %v3143_v29 = vmax.f32 %v3052_v19, 0.0  ;;  %v3054_v30 = vpop.f32.mrf.mxu1  ;;  %10846 = vmatprep.subr.bf16.mxu1 %v11366_v16  ;;  %v3150_v35 = vpack.c.bf16 %v3142_v24, %v3142_v24 }
 0x842   :  { %v11368_v30 = vld [vmem:[#allocation18 + $0x38] sm:$0xff]  }
 0x843   :  { %v3151_v31 = vpack.c.bf16 %v3143_v29, %v3143_v29 }
 0x844   :  { %10847 = vmatpush3.bf16.msra.mxu1 %v11367_v28 }
 0x845   :  { %3785 = vmatprep.mubr.bf16.mxu0 %v3151_v31  ;;  %11079 = vmatprep.subr.mxu1 %v12475_v0  ;;  %v12854_v31 = vld [vmem:[%s13063_s28] sm:$0xff] }
 0x846   :  { %3786 = vmatmul.mubr.bf16.vlgmr.msra.gmra.mxu0 %v3150_v35  ;;  %v12862_v35 = vld [vmem:[%s13063_s28 + $0x8] sm:$0xff] }
 0x847   :  { %11060 = vmatpush3.bf16.msra.mxu0 %v12811_v42  ;;  %11075 = vmatprep.mubr.bf16.mxu0 %v3836_v32  ;;  %v11351_v42 = vld [vmem:[#allocation15] sm:$0xff]   ;;  %v11369_v32 = vld [vmem:[#allocation18 + $0x30] sm:$0xff]  }
 0x848   :  { %11061 = vmatprep.subr.bf16.mxu0 %v11345_v39 }
 0x84b   :  { %11062 = vmatpush3.bf16.msra.mxu0 %v11345_v39  ;;  %v11370_v39 = vld [vmem:[#allocation18 + $0x28] sm:$0xff]  }
 0x84c   :  { %11063 = vmatprep.subr.bf16.mxu0 %v11346_v40 }
 0x84f   :  { %11064 = vmatpush3.bf16.msra.mxu0 %v11346_v40  ;;  %v12869_v40 = vld [vmem:[%s13063_s28 + $0x10] sm:$0xf] }
 0x850   :  { %11065 = vmatprep.subr.bf16.mxu0 %v11347_v41 }
 0x853   :  { %11066 = vmatpush3.bf16.msra.mxu0 %v11347_v41  ;;  %v11371_v41 = vld [vmem:[#allocation18 + $0x20] sm:$0xff]  }
 0x854   :  { %11067 = vmatprep.subr.bf16.mxu0 %v11348_v44 }
 0x857   :  { %11068 = vmatpush3.bf16.msra.mxu0 %v11348_v44  ;;  %v11372_v44 = vld [vmem:[#allocation18 + $0x18] sm:$0xff]  }
 0x858   :  { %11069 = vmatprep.subr.bf16.mxu0 %v11349_v45 }
 0x85a   :  { %v3131_v47 = vpop.f32.mrf.mxu0 }
 0x85b   :  { %11070 = vmatpush3.bf16.msra.mxu0 %v11349_v45 }
 0x85c   :  { %v3133_v48 = vpop.f32.mrf.mxu0  ;;  %11071 = vmatprep.subr.bf16.mxu0 %v11350_v46 }
 0x85e   :  { %v3135_v49 = vpop.f32.mrf.mxu0 }
 0x85f   :  { %11072 = vmatpush3.bf16.msra.mxu0 %v11350_v46 }
 0x860   :  { %v3136_v51 = vpop.f32.mrf.mxu0  ;;  %11073 = vmatprep.subr.bf16.mxu0 %v11351_v42 }
 0x861   :  { %v11374_v51 = vld [vmem:[#allocation18 + $0x8] sm:$0xff]  }
 0x863   :  { %11074 = vmatpush3.bf16.msra.mxu0 %v11351_v42 }
 0x864   :  { %11114 = vmatprep.subr.mxu0 %v12475_v0 }
 0x866   :  { %11076 = vmatmul.mubr.bf16.vlgmr.msra.gmra.mxu0 %v3837_v52  ;;  %v11375_v52 = vld [vmem:[#allocation18] sm:$0xff]  }
 0x867   :  { %11120 = vmatprep.mubr.msk.f32.mxu0 %vm12476_vm0, %v12475_v0 }
 0x87b   :  { %v3090_v21 = vpop.f32.mrf.mxu1 }
 0x87c   :  { %v3091_v57 = vadd.f32 %v3090_v21, %v1837_v55  ;;  %v10072_v55 = vld [vmem:[#allocation16] ss:$0 sm:$0xff] }
 0x87d   :  { %v3092_v58 = vpop.f32.mrf.mxu1 }
 0x87e   :  { %v3132_v60 = vadd.f32 %v3131_v47, %v3091_v57  ;;  %v3093_v61 = vadd.f32 %v3092_v58, %v1841_v56 }
 0x87f   :  { %v3094_v62 = vpop.f32.mrf.mxu1 }
 0x880   :  { %v3134_v63 = vadd.f32 %v3133_v48, %v3093_v61  ;;  %v3144_v1 = vmax.f32 %v3132_v60, 0.0 }
 0x881   :  { %v3095_v2 = vpop.f32.mrf.mxu1 }
 0x882   :  { %v3145_v4 = vmax.f32 %v3134_v63, 0.0  ;;  %v3152_v7 = vpack.c.bf16 %v3144_v1, %v3144_v1 }
 0x884   :  { %v3153_v6 = vpack.c.bf16 %v3145_v4, %v3145_v4 }
 0x886   :  { %3825 = vmatprep.mubr.bf16.mxu1 %v3153_v6 }
 0x887   :  { %3826 = vmatmul.mubr.bf16.vlgmr.msra.gmra.mxu1 %v3152_v7 }
 0x888   :  { %11085 = vmatprep.mubr.msk.f32.mxu1 %vm12476_vm0, %v12475_v0 }
 0x8a6   :  { %v10782_v36 = vpop.f32.mrf.mxu0 }
 0x8a8   :  { %v10783_v8 = vpop.f32.mrf.mxu0 }
 0x8a9   :  { %v10784_v59 = vadd.f32 %v10783_v8, %v10782_v36 }
 0x8aa   :  { %v10785_v9 = vpop.f32.mrf.mxu0 }
 0x8ab   :  { %v3708_v12 = vadd.f32 %v10784_v59, %v9999_v23  ;;  %v11378_v23 = vld [vmem:[#allocation21 + $0x74] ss:$8 sps:$4 sm:$0xff]  }
 0x8ac   :  { %v10786_v10 = vpop.f32.mrf.mxu0 }
 0x8e7   :  { %v10804_v11 = vpop.f32.mrf.mxu1 }
 0x8e9   :  { %v10805_v20 = vpop.f32.mrf.mxu1 }
 0x8ea   :  { %v10806_v13 = vadd.f32 %v10805_v20, %v10804_v11  ;;  %v11376_v11 = vld [vmem:[#allocation21 + $0x70] ss:$8 sps:$4 sm:$0xff]   ;;  %v11381_v20 = vld [vmem:[#allocation21 + $0x64] ss:$8 sps:$4 sm:$0xff]  }
 0x8eb   :  { %v10807_v14 = vpop.f32.mrf.mxu1 }
 0x8ec   :  { %v3748_v17 = vadd.f32 %v10806_v13, %v3708_v12  ;;  %v11379_v12 = vld [vmem:[#allocation21 + $0x60] ss:$8 sps:$4 sm:$0xff]   ;;  %v11384_v13 = vld [vmem:[#allocation21 + $0x54] ss:$8 sps:$4 sm:$0xff]   ;;  %v11382_v14 = vld [vmem:[#allocation21 + $0x50] ss:$8 sps:$4 sm:$0xff]  }
 0x8ed   :  { %v10808_v15 = vpop.f32.mrf.mxu1 }
 0x8ee   :  { %v11385_v15 = vld [vmem:[#allocation21 + $0x40] ss:$8 sps:$4 sm:$0xff]  }
 0x906   :  { %v10826_v16 = vpop.f32.mrf.mxu0 }
 0x908   :  { %v10827_v18 = vpop.f32.mrf.mxu0 }
 0x909   :  { %v10828_v19 = vadd.f32 %v10827_v18, %v10826_v16  ;;  %v11390_v16 = vld [vmem:[#allocation21 + $0x34] ss:$8 sps:$4 sm:$0xff]   ;;  %v11388_v18 = vld [vmem:[#allocation21 + $0x30] ss:$8 sps:$4 sm:$0xff]  }
 0x90a   :  { %v10829_v22 = vpop.f32.mrf.mxu0 }
 0x90b   :  { %v3788_v24 = vadd.f32 %v10828_v19, %v3748_v17  ;;  %v11387_v17 = vld [vmem:[#allocation21 + $0x44] ss:$8 sps:$4 sm:$0xff]   ;;  %v11391_v22 = vld [vmem:[#allocation21 + $0x20] ss:$8 sps:$4 sm:$0xff]  }
 0x90c   :  { %v10830_v25 = vpop.f32.mrf.mxu0  ;;  %v11393_v19 = vld [vmem:[#allocation21 + $0x24] ss:$8 sps:$4 sm:$0xff]  }
 0x90d   :  { %v11394_v25 = vld [vmem:[#allocation21 + $0x10] ss:$8 sps:$4 sm:$0xff]  }
 0x926   :  { %v11077_v26 = vpop.f32.mrf.mxu0 }
 0x927   :  { %11080 = vmatpush3.msk.msra.mxu1 %vm3970_vm2, %v11077_v26  ;;  %v11399_v26 = vld [vmem:[#allocation21 + $0x4] ss:$8 sps:$4 sm:$0xff]  }
 0x928   :  { %v3936_v27 = vpop.f32.mrf.mxu0  ;;  %11081 = vmatprep.subr.mxu1 %v12475_v0 }
 0x92a   :  { %v11078_v28 = vpop.f32.mrf.mxu0 }
 0x92b   :  { %v10085_v28 = vld [vmem:[#allocation19] ss:$0 sm:$0xff] }
 0x92c   :  { %v3939_v29 = vpop.f32.mrf.mxu0 }
 0x92d   :  { %11082 = vmatpush3.msra.mxu1 %v3939_v29 }
 0x92e   :  { %11083 = vmatprep.subr.mxu1 %v12475_v0 }
 0x92f   :  { %11084 = vmatpush3.msra.mxu1 %v3936_v27  ;;  %v11397_v27 = vld [vmem:[#allocation21] ss:$8 sps:$4 sm:$0xff]  }
 0x930   :  { %11086 = vmatmul.mubr.msk.f32.vlgmr.msra.gmra.mxu1 %vm3960_vm3, %v12854_v31  ;;  %11094 = vmatprep.subr.bf16.mxu1 %v11368_v30 }
 0x931   :  { %11088 = vmatprep.mubr.msk.f32.mxu1 %vm12476_vm0, %v12475_v0  ;;  %11095 = vmatpush3.bf16.msra.mxu1 %v11368_v30 }
 0x932   :  { %11096 = vmatprep.subr.bf16.mxu1 %v11369_v32 }
 0x934   :  { %11089 = vmatmul.mubr.msk.f32.gmra.mxu1 %vm3960_vm3, %v12862_v35 }
 0x935   :  { %11091 = vmatprep.mubr.msk.f32.mxu1 %vm12476_vm0, %v12475_v0  ;;  %11097 = vmatpush3.bf16.msra.mxu1 %v11369_v32 }
 0x936   :  { %11098 = vmatprep.subr.bf16.mxu1 %v11370_v39 }
 0x938   :  { %11092 = vmatmul.mubr.msk.f32.gmra.mxu1 %vm3960_vm3, %v12869_v40 }
 0x939   :  { %11099 = vmatpush3.bf16.msra.mxu1 %v11370_v39 }
 0x93a   :  { %11100 = vmatprep.subr.bf16.mxu1 %v11371_v41 }
 0x93d   :  { %11101 = vmatpush3.bf16.msra.mxu1 %v11371_v41 }
 0x93e   :  { %11102 = vmatprep.subr.bf16.mxu1 %v11372_v44 }
 0x941   :  { %11103 = vmatpush3.bf16.msra.mxu1 %v11372_v44 }
 0x942   :  { %11104 = vmatprep.subr.bf16.mxu1 %v11373_v50 }
 0x945   :  { %11105 = vmatpush3.bf16.msra.mxu1 %v11373_v50 }
 0x946   :  { %11106 = vmatprep.subr.bf16.mxu1 %v11374_v51 }
 0x947   :  { %v10848_v45 = vpop.f32.mrf.mxu1 }
 0x949   :  { %v10849_v46 = vpop.f32.mrf.mxu1  ;;  %11107 = vmatpush3.bf16.msra.mxu1 %v11374_v51 }
 0x94a   :  { %v10850_v47 = vadd.f32 %v10849_v46, %v10848_v45  ;;  %11108 = vmatprep.subr.bf16.mxu1 %v11375_v52 }
 0x94b   :  { %v10851_v48 = vpop.f32.mrf.mxu1 }
 0x94c   :  { %v12873_v42 = vadd.f32 %v10850_v47, %v3788_v24  ;;  %v11396_v24 = vld [vmem:[#allocation21 + $0x14] ss:$8 sps:$4 sm:$0xff]  }
 0x94d   :  { %v10852_v49 = vpop.f32.mrf.mxu1  ;;  %11109 = vmatpush3.bf16.msra.mxu1 %v11375_v52 }
 0x9f0   :  { %v4040_v56 = vpop.f32.mrf.mxu1 }
 0x9f1   :  { %v4041_v57 = vadd.f32 %v10072_v55, %v4040_v56 }
 0x9f2   :  { %v11087_v21 = vpop.f32.mrf.mxu1 }
 0x9f3   :  { %v4054_v62 = vmax.f32 %v4041_v57, 0.0 }
 0x9f4   :  { %v4045_v58 = vpop.f32.mrf.mxu1 }
 0x9f5   :  { %v4046_v60 = vadd.f32 %v10072_v55, %v4045_v58 }
 0x9f6   :  { %v11090_v61 = vpop.f32.mrf.mxu1 }
 0x9f7   :  { %v4055_v63 = vmax.f32 %v4046_v60, 0.0 }
 0x9f8   :  { %v4050_v1 = vpop.f32.mrf.mxu1 }
 0x9f9   :  { %v4057_v2 = vpack.c.bf16 %v4055_v63, %v4054_v62  ;;  %v4051_v4 = vadd.f32 %v10072_v55, %v4050_v1  ;;  %v4660_v63 = vld [vmem:[#allocation24 + $0x1c8] sm:$0xff] }
 0x9fa   :  { %v11093_v6 = vpop.f32.mrf.mxu1  ;;  %v4664_v1 = vld [vmem:[#allocation24 + $0x1e8] sm:$0xff] }
 0x9fb   :  { %v4056_v7 = vmax.f32 %v4051_v4, 0.0  ;;  %11110 = vmatprep.mubr.bf16.mxu1 %v4057_v2  ;;  %v10172_v2 = vcombine.low %v4660_v63, %v4664_v1  ;;  %v10173_v4 = vcombine.high %v4660_v63, %v4664_v1  ;;  %v4652_v6 = vld [vmem:[#allocation24 + $0x188] sm:$0xff] }
 0x9fd   :  { %v4058_v36 = vpack.c.bf16 %v4056_v7, %v4056_v7  ;;  %v4656_v7 = vld [vmem:[#allocation24 + $0x1a8] sm:$0xff] }
 0x9ff   :  { %11111 = vmatmul.mubr.bf16.vlgmr.msra.gmra.mxu1 %v4058_v36  ;;  %v10165_v36 = vcombine.high %v4652_v6, %v4656_v7 }
 0xa00   :  { %4495 = vmatprep.mubr.f32.mxu1 %v12475_v0 }
 0xabf   :  { %v11112_v8 = vpop.f32.mrf.mxu1 }
 0xac0   :  { %11115 = vmatpush3.msk.msra.mxu0 %vm3970_vm2, %v11112_v8  ;;  %v4644_v8 = vld [vmem:[#allocation24 + $0x148] sm:$0xff] }
 0xac1   :  { %v4157_v59 = vpop.f32.mrf.mxu1  ;;  %11116 = vmatprep.subr.mxu0 %v12475_v0 }
 0xac3   :  { %v11113_v9 = vpop.f32.mrf.mxu1 }
 0xac5   :  { %v4160_v10 = vpop.f32.mrf.mxu1 }
 0xac6   :  { %11117 = vmatpush3.msra.mxu0 %v4160_v10  ;;  %v4640_v10 = vld [vmem:[#allocation24 + $0x128] sm:$0xff] }
 0xac7   :  { %11118 = vmatprep.subr.mxu0 %v12475_v0 }
 0xac8   :  { %11119 = vmatpush3.msra.mxu0 %v4157_v59 }
 0xac9   :  { %11121 = vmatmul.mubr.msk.f32.vlgmr.msra.gmra.mxu0 %vm3960_vm3, %v12854_v31  ;;  %4362 = vmatprep.subr.bf16.mxu0 %v11378_v23 }
 0xaca   :  { %11123 = vmatprep.mubr.msk.f32.mxu0 %vm12476_vm0, %v12475_v0  ;;  %4363 = vmatpush1.bf16.msra.mxu0 %v11376_v11  ;;  %v4628_v11 = vld [vmem:[#allocation24 + $0xc8] sm:$0xff] }
 0xacb   :  { %4364 = vmatprep.subr.bf16.mxu0 %v11381_v20  ;;  %v4632_v20 = vld [vmem:[#allocation24 + $0xe8] sm:$0xff] }
 0xacd   :  { %11124 = vmatmul.mubr.msk.f32.gmra.mxu0 %vm3960_vm3, %v12862_v35 }
 0xace   :  { %11126 = vmatprep.mubr.msk.f32.mxu0 %vm12476_vm0, %v12475_v0  ;;  %4365 = vmatpush1.bf16.msra.mxu0 %v11379_v12  ;;  %v10141_v12 = vcombine.high %v4628_v11, %v4632_v20 }
 0xacf   :  { %4366 = vmatprep.subr.bf16.mxu0 %v11384_v13  ;;  %v10140_v13 = vcombine.low %v4628_v11, %v4632_v20 }
 0xad1   :  { %11127 = vmatmul.mubr.msk.f32.gmra.mxu0 %vm3960_vm3, %v12869_v40 }
 0xad2   :  { %4367 = vmatpush1.bf16.msra.mxu0 %v11382_v14  ;;  %4394 = vmatprep.mubr.bf16.mxu0 %v12477_v34  ;;  %v4620_v14 = vld [vmem:[#allocation24 + $0x88] sm:$0xff] }
 0xad3   :  { %4368 = vmatprep.subr.bf16.mxu0 %v11387_v17  ;;  %v4624_v17 = vld [vmem:[#allocation24 + $0xa8] sm:$0xff] }
 0xad6   :  { %4369 = vmatpush1.bf16.msra.mxu0 %v11385_v15  ;;  %v10133_v15 = vcombine.high %v4620_v14, %v4624_v17 }
 0xad7   :  { %4370 = vmatprep.subr.bf16.mxu0 %v11390_v16  ;;  %v10132_v16 = vcombine.low %v4620_v14, %v4624_v17 }
 0xada   :  { %4371 = vmatpush1.bf16.msra.mxu0 %v11388_v18  ;;  %v4612_v18 = vld [vmem:[#allocation24 + $0x48] sm:$0xff] }
 0xadb   :  { %4372 = vmatprep.subr.bf16.mxu0 %v11393_v19  ;;  %v4616_v19 = vld [vmem:[#allocation24 + $0x68] sm:$0xff] }
 0xade   :  { %4373 = vmatpush1.bf16.msra.mxu0 %v11391_v22  ;;  %v10125_v22 = vcombine.high %v4612_v18, %v4616_v19 }
 0xadf   :  { %4374 = vmatprep.subr.bf16.mxu0 %v11396_v24  ;;  %v10124_v24 = vcombine.low %v4612_v18, %v4616_v19  ;;  %v4663_v18 = vld [vmem:[#allocation24 + $0x1e0] sm:$0xff] }
 0xae2   :  { %4375 = vmatpush1.bf16.msra.mxu0 %v11394_v25  ;;  %v4604_v25 = vld [vmem:[#allocation24 + $0x8] sm:$0xff] }
 0xae3   :  { %4376 = vmatprep.subr.bf16.mxu0 %v11399_v26  ;;  %v4608_v26 = vld [vmem:[#allocation24 + $0x28] sm:$0xff] }
 0xae6   :  { %4377 = vmatpush1.bf16.msra.mxu0 %v11397_v27  ;;  %v10117_v27 = vcombine.high %v4604_v25, %v4608_v26 }
 0xae7   :  { %5454 = vmatprep.subr.bf16.mxu0 %v10173_v4  ;;  %v4680_v4 = vld [vmem:[#allocation24 + $0x268] sm:$0xff] }
 0xb89   :  { %v4247_v29 = vpop.f32.mrf.mxu0 }
 0xb8a   :  { %v4248_v32 = vadd.f32 %v10085_v28, %v4247_v29  ;;  %v4724_v29 = vld [vmem:[#allocation24 + $0x3c8] sm:$0xff] }
 0xb8b   :  { %v11122_v30 = vpop.f32.mrf.mxu0 }
 0xb8c   :  { %v4261_v45 = vmax.f32 %v4248_v32, 0.0  ;;  %v4728_v30 = vld [vmem:[#allocation24 + $0x3e8] sm:$0xff] }
 0xb8d   :  { %v4252_v39 = vpop.f32.mrf.mxu0  ;;  %v10237_v32 = vcombine.high %v4724_v29, %v4728_v30 }
 0xb8e   :  { %v4253_v41 = vadd.f32 %v10085_v28, %v4252_v39  ;;  %v10236_v39 = vcombine.low %v4724_v29, %v4728_v30  ;;  %v4520_v29 = vld [vmem:[%s13064_s1] sm:$0x3] }
 0xb8f   :  { %v11125_v44 = vpop.f32.mrf.mxu0 }
 0xb90   :  { %v4262_v46 = vmax.f32 %v4253_v41, 0.0  ;;  %v4716_v41 = vld [vmem:[#allocation24 + $0x388] sm:$0xff] }
 0xb91   :  { %v4257_v47 = vpop.f32.mrf.mxu0  ;;  %v4720_v44 = vld [vmem:[#allocation24 + $0x3a8] sm:$0xff] }
 0xb92   :  { %v4264_v48 = vpack.c.bf16 %v4262_v46, %v4261_v45  ;;  %v4258_v49 = vadd.f32 %v10085_v28, %v4257_v47  ;;  %v10116_v28 = vcombine.low %v4604_v25, %v4608_v26  ;;  %v10229_v45 = vcombine.high %v4716_v41, %v4720_v44  ;;  %v4708_v47 = vld [vmem:[#allocation24 + $0x348] sm:$0xff]  ;;  %v4655_v25 = vld [vmem:[#allocation24 + $0x1a0] sm:$0xff] }
 0xb93   :  { %v11128_v50 = vpop.f32.mrf.mxu0  ;;  %v10228_v46 = vcombine.low %v4716_v41, %v4720_v44  ;;  %v4647_v41 = vld [vmem:[#allocation24 + $0x160] sm:$0xff] }
 0xb94   :  { %v4263_v51 = vmax.f32 %v4258_v49, 0.0  ;;  %4395 = vmatmul.mubr.bf16.vlgmr.msra.gmra.mxu0 %v4264_v48  ;;  %v4712_v48 = vld [vmem:[#allocation24 + $0x368] sm:$0xff] }
 0xb95   :  { %4404 = vmatprep.mubr.bf16.mxu0 %v12477_v34  ;;  %5455 = vmatpush1.bf16.msra.mxu0 %v10172_v2  ;;  %v10221_v49 = vcombine.high %v4708_v47, %v4712_v48  ;;  %v10220_v50 = vcombine.low %v4708_v47, %v4712_v48  ;;  %v4676_v2 = vld [vmem:[#allocation24 + $0x248] sm:$0xff]  ;;  %v4639_v47 = vld [vmem:[#allocation24 + $0x120] sm:$0xff] }
 0xb96   :  { %v4265_v52 = vpack.c.bf16 %v4263_v51, %v4263_v51  ;;  %5456 = vmatprep.subr.bf16.mxu0 %v10165_v36  ;;  %v4700_v51 = vld [vmem:[#allocation24 + $0x308] sm:$0xff] }
 0xb9c   :  { %4405 = vmatmul.mubr.bf16.gmra.mxu0 %v4265_v52  ;;  %v4704_v52 = vld [vmem:[#allocation24 + $0x328] sm:$0xff] }
 0xc54   :  { %v4396_v55 = vpop.f32.mrf.mxu0 }
 0xc56   :  { %v4398_v56 = vpop.f32.mrf.mxu0 }
 0xc58   :  { %v4400_v21 = vpop.f32.mrf.mxu0 }
 0xc5a   :  { %v4402_v57 = vpop.f32.mrf.mxu0 }
 0xc5c   :  { %v4406_v58 = vpop.f32.mrf.mxu0 }
 0xc5e   :  { %v4408_v60 = vpop.f32.mrf.mxu0 }
 0xc5f   :  { %10106 = vmatprep.subr.msk.mxu1 %vm3970_vm2, %v4408_v60 }
 0xc60   :  { %v4410_v61 = vpop.f32.mrf.mxu0  ;;  %10107 = vmatpush1.msk.msra.mxu1 %vm3970_vm2, %v4406_v58 }
 0xc61   :  { %4459 = vmatprep.subr.mxu1 %v4402_v57  ;;  %v4696_v57 = vld [vmem:[#allocation24 + $0x2e8] sm:$0xff] }
 0xc62   :  { %v4411_v62 = vpop.f32.mrf.mxu0  ;;  %4460 = vmatpush1.msra.mxu1 %v4400_v21  ;;  %v4692_v21 = vld [vmem:[#allocation24 + $0x2c8] sm:$0xff] }
 0xc63   :  { %4461 = vmatprep.subr.mxu1 %v4398_v56  ;;  %v10212_v56 = vcombine.low %v4700_v51, %v4704_v52  ;;  %v10205_v58 = vcombine.high %v4692_v21, %v4696_v57  ;;  %v10204_v60 = vcombine.low %v4692_v21, %v4696_v57  ;;  %v4684_v61 = vld [vmem:[#allocation24 + $0x288] sm:$0xff]  ;;  %v4623_v21 = vld [vmem:[#allocation24 + $0xa0] sm:$0xff] }
 0xc64   :  { %4462 = vmatpush1.msra.mxu1 %v4396_v55  ;;  %v10213_v55 = vcombine.high %v4700_v51, %v4704_v52  ;;  %v4688_v62 = vld [vmem:[#allocation24 + $0x2a8] sm:$0xff]  ;;  %v4631_v51 = vld [vmem:[#allocation24 + $0xe0] sm:$0xff] }
 0xc65   :  { %10108 = vmatmul.mubr.msk.f32.vlgmr.msra.gmra.mxu1 %vm3960_vm3, %v12854_v31  ;;  %v10164_v31 = vcombine.low %v4652_v6, %v4656_v7  ;;  %v10197_v63 = vcombine.high %v4684_v61, %v4688_v62  ;;  %v10196_v1 = vcombine.low %v4684_v61, %v4688_v62  ;;  %v10189_v6 = vcombine.high %v4676_v2, %v4680_v4  ;;  %v4615_v61 = vld [vmem:[#allocation24 + $0x60] sm:$0xff] }
 0xc66   :  { %4501 = vmatprep.mubr.f32.mxu1 %v12475_v0  ;;  %v10188_v7 = vcombine.low %v4676_v2, %v4680_v4  ;;  %v4607_v2 = vld [vmem:[#allocation24 + $0x20] sm:$0xff] }
 0xc67   :  { %5457 = vmatpush1.bf16.msra.mxu0 %v10164_v31 }
 0xc69   :  { %10109 = vmatmul.mubr.msk.f32.gmra.mxu1 %vm3960_vm3, %v12862_v35  ;;  %v4648_v35 = vld [vmem:[#allocation24 + $0x168] sm:$0xff] }
 0xc6a   :  { %4507 = vmatprep.mubr.f32.mxu1 %v12475_v0  ;;  %v10157_v59 = vcombine.high %v4644_v8, %v4648_v35  ;;  %v10156_v9 = vcombine.low %v4644_v8, %v4648_v35  ;;  %v4413_v35 = vld [vmem:[#allocation22] sm:$0x3] }
 0xc6c   :  { %5458 = vmatprep.subr.bf16.mxu0 %v10157_v59 }
 0xc6d   :  { %10110 = vmatmul.mubr.msk.f32.gmra.mxu1 %vm3960_vm3, %v12869_v40  ;;  %v4636_v40 = vld [vmem:[#allocation24 + $0x108] sm:$0xff]  ;;  %5459 = vmatpush1.bf16.msra.mxu0 %v10156_v9  ;;  %v4418_v9 = vrot.slane %v4413_v35, %v12755_v38 }
 0xc6e   :  { %4594 = vmatprep.mubr.f32.mxu1 %v12475_v0  ;;  %v10149_v0 = vcombine.high %v4636_v40, %v4640_v10  ;;  %v10148_v23 = vcombine.low %v4636_v40, %v4640_v10  ;;  %v4422_v10 = vrot.slane %v4413_v35, %v12752_v37  ;;  %v4715_v35 = vld [vmem:[#allocation24 + $0x380] sm:$0xff] }
 0xc70   :  { %5460 = vmatprep.subr.bf16.mxu0 %v10149_v0 }
 0xc71   :  { %5461 = vmatpush1.bf16.msra.mxu0 %v10148_v23 }
 0xc72   :  { %5462 = vmatprep.subr.bf16.mxu0 %v10141_v12 }
 0xc75   :  { %5463 = vmatpush1.bf16.msra.mxu0 %v10140_v13 }
 0xc76   :  { %5464 = vmatprep.subr.bf16.mxu0 %v10133_v15 }
 0xc79   :  { %5465 = vmatpush1.bf16.msra.mxu0 %v10132_v16  ;;  %v4659_v16 = vld [vmem:[#allocation24 + $0x1c0] sm:$0xff] }
 0xc7a   :  { %5466 = vmatprep.subr.bf16.mxu0 %v10125_v22  ;;  %v10170_v30 = vcombine.low %v4659_v16, %v4663_v18 }
 0xc7d   :  { %5467 = vmatpush1.bf16.msra.mxu0 %v10124_v24  ;;  %v4651_v24 = vld [vmem:[#allocation24 + $0x180] sm:$0xff] }
 0xc7e   :  { %5468 = vmatprep.subr.bf16.mxu0 %v10117_v27  ;;  %v10171_v27 = vcombine.high %v4659_v16, %v4663_v18  ;;  %v10162_v44 = vcombine.low %v4651_v24, %v4655_v25 }
 0xc81   :  { %5469 = vmatpush1.bf16.msra.mxu0 %v10116_v28 }
 0xc82   :  { %5470 = vmatprep.subr.bf16.mxu0 %v10237_v32  ;;  %v10163_v32 = vcombine.high %v4651_v24, %v4655_v25 }
 0xc85   :  { %5471 = vmatpush2.bf16.msra.mxu0 %v10236_v39  ;;  %v4643_v39 = vld [vmem:[#allocation24 + $0x140] sm:$0xff] }
 0xc86   :  { %5472 = vmatprep.subr.bf16.mxu0 %v10229_v45  ;;  %v10155_v45 = vcombine.high %v4643_v39, %v4647_v41  ;;  %v10154_v48 = vcombine.low %v4643_v39, %v4647_v41  ;;  %v4671_v39 = vld [vmem:[#allocation24 + $0x220] sm:$0xff]  ;;  %v4668_v41 = vld [vmem:[#allocation24 + $0x208] sm:$0xff] }
 0xc89   :  { %5473 = vmatpush2.bf16.msra.mxu0 %v10228_v46  ;;  %v4635_v46 = vld [vmem:[#allocation24 + $0x100] sm:$0xff] }
 0xc8a   :  { %5474 = vmatprep.subr.bf16.mxu0 %v10221_v49  ;;  %v10147_v49 = vcombine.high %v4635_v46, %v4639_v47  ;;  %v10146_v52 = vcombine.low %v4635_v46, %v4639_v47 }
 0xc8d   :  { %5475 = vmatpush2.bf16.msra.mxu0 %v10220_v50  ;;  %v4627_v50 = vld [vmem:[#allocation24 + $0xc0] sm:$0xff] }
 0xc8e   :  { %5476 = vmatprep.subr.bf16.mxu0 %v10213_v55  ;;  %v10139_v55 = vcombine.high %v4627_v50, %v4631_v51  ;;  %v10138_v57 = vcombine.low %v4627_v50, %v4631_v51  ;;  %v4665_v50 = vld [vmem:[#allocation24 + $0x1f0] sm:$0xff]  ;;  %v4662_v51 = vld [vmem:[#allocation24 + $0x1d8] sm:$0xff] }
 0xc91   :  { %5477 = vmatpush2.bf16.msra.mxu0 %v10212_v56  ;;  %v4619_v56 = vld [vmem:[#allocation24 + $0x80] sm:$0xff] }
 0xc92   :  { %5478 = vmatprep.subr.bf16.mxu0 %v10205_v58  ;;  %v10131_v58 = vcombine.high %v4619_v56, %v4623_v21  ;;  %v10130_v62 = vcombine.low %v4619_v56, %v4623_v21 }
 0xc95   :  { %5479 = vmatpush2.bf16.msra.mxu0 %v10204_v60  ;;  %v4611_v60 = vld [vmem:[#allocation24 + $0x40] sm:$0xff] }
 0xc96   :  { %5480 = vmatprep.subr.bf16.mxu0 %v10197_v63  ;;  %v10123_v63 = vcombine.high %v4611_v60, %v4615_v61  ;;  %v10122_v4 = vcombine.low %v4611_v60, %v4615_v61  ;;  %v4653_v60 = vld [vmem:[#allocation24 + $0x190] sm:$0xff] }
 0xc97   :  { %v4657_v61 = vld [vmem:[#allocation24 + $0x1b0] sm:$0xff] }
 0xc99   :  { %5481 = vmatpush2.bf16.msra.mxu0 %v10196_v1  ;;  %v4603_v1 = vld [vmem:[#allocation24] sm:$0xff] }
 0xc9a   :  { %5482 = vmatprep.subr.bf16.mxu0 %v10189_v6  ;;  %v10115_v6 = vcombine.high %v4603_v1, %v4607_v2 }
 0xc9d   :  { %5483 = vmatpush2.bf16.msra.mxu0 %v10188_v7  ;;  %v4723_v7 = vld [vmem:[#allocation24 + $0x3c0] sm:$0xff] }
 0xd25   :  { %v4497_v36 = vpop.f32.mrf.mxu1 }
 0xd26   :  { %v4498_v17 = vadd.f32 %v4497_v36, %v4418_v9  ;;  %v4727_v36 = vld [vmem:[#allocation24 + $0x3e0] sm:$0xff] }
 0xd27   :  { %v4499_v31 = vpop.f32.mrf.mxu1 }
 0xd28   :  { %v4500_v13 = vadd.f32 %v4499_v31, %v4422_v10  ;;  %v4514_v28 = vmax.f32 %v4498_v17, 0.0  ;;  %v10114_v31 = vcombine.low %v4603_v1, %v4607_v2  ;;  %v4691_v17 = vld [vmem:[#allocation24 + $0x2c0] sm:$0xff] }
 0xd29   :  { %v4503_v8 = vpop.f32.mrf.mxu1 }
 0xd2a   :  { %v4504_v12 = vadd.f32 %v4503_v8, %v4418_v9  ;;  %v4515_v26 = vmax.f32 %v4500_v13, 0.0  ;;  %v10235_v8 = vcombine.high %v4723_v7, %v4727_v36 }
 0xd2b   :  { %v4505_v59 = vpop.f32.mrf.mxu1 }
 0xd2c   :  { %v4506_v11 = vadd.f32 %v4505_v59, %v4422_v10  ;;  %v4516_v22 = vmax.f32 %v4504_v12, 0.0  ;;  %v4719_v59 = vld [vmem:[#allocation24 + $0x3a0] sm:$0xff] }
 0xd2d   :  { %v4509_v40 = vpop.f32.mrf.mxu1  ;;  %v4703_v12 = vld [vmem:[#allocation24 + $0x320] sm:$0xff] }
 0xd2e   :  { %v4510_v0 = vadd.f32 %v4509_v40, %v4418_v9  ;;  %v4517_v19 = vmax.f32 %v4506_v11, 0.0  ;;  %v10234_v9 = vcombine.low %v4723_v7, %v4727_v36  ;;  %v10227_v40 = vcombine.high %v4715_v35, %v4719_v59  ;;  %v4645_v36 = vld [vmem:[#allocation24 + $0x150] sm:$0xff] }
 0xd2f   :  { %v4511_v23 = vpop.f32.mrf.mxu1 }
 0xd30   :  { %v4512_v20 = vadd.f32 %v4511_v23, %v4422_v10  ;;  %v4518_v15 = vmax.f32 %v4510_v0, 0.0  ;;  %v4707_v10 = vld [vmem:[#allocation24 + $0x340] sm:$0xff]  ;;  %v10226_v23 = vcombine.low %v4715_v35, %v4719_v59  ;;  %v4650_v35 = vld [vmem:[#allocation24 + $0x178] sm:$0xff]  ;;  %v10166_v59 = vcombine.low %v4653_v60, %v4657_v61 }
 0xd31   :  { %v4711_v0 = vld [vmem:[#allocation24 + $0x360] sm:$0xff] }
 0xd32   :  { %v4519_v14 = vmax.f32 %v4512_v20, 0.0  ;;  %v10219_v11 = vcombine.high %v4707_v10, %v4711_v0  ;;  %v4699_v20 = vld [vmem:[#allocation24 + $0x300] sm:$0xff]  ;;  %v10218_v13 = vcombine.low %v4707_v10, %v4711_v0  ;;  %v4637_v0 = vld [vmem:[#allocation24 + $0x110] sm:$0xff] }
 0xd33   :  { %v10210_v16 = vcombine.low %v4699_v20, %v4703_v12 }
 0xd34   :  { %10111 = vmatprep.subr.msk.mxu1 %vm3970_vm2, %v4519_v14  ;;  %v10211_v14 = vcombine.high %v4699_v20, %v4703_v12  ;;  %v4642_v20 = vld [vmem:[#allocation24 + $0x138] sm:$0xff] }
 0xd35   :  { %10112 = vmatpush1.msk.msra.mxu1 %vm3970_vm2, %v4518_v15  ;;  %v4695_v15 = vld [vmem:[#allocation24 + $0x2e0] sm:$0xff] }
 0xd36   :  { %4558 = vmatprep.subr.mxu1 %v4517_v19  ;;  %v10203_v18 = vcombine.high %v4691_v17, %v4695_v15  ;;  %v4683_v19 = vld [vmem:[#allocation24 + $0x280] sm:$0xff]  ;;  %v10202_v24 = vcombine.low %v4691_v17, %v4695_v15  ;;  %v4629_v15 = vld [vmem:[#allocation24 + $0xd0] sm:$0xff] }
 0xd37   :  { %4559 = vmatpush1.msra.mxu1 %v4516_v22  ;;  %v4687_v22 = vld [vmem:[#allocation24 + $0x2a0] sm:$0xff] }
 0xd38   :  { %4560 = vmatprep.subr.mxu1 %v4515_v26  ;;  %v10195_v25 = vcombine.high %v4683_v19, %v4687_v22  ;;  %v4675_v26 = vld [vmem:[#allocation24 + $0x240] sm:$0xff] }
 0xd39   :  { %4561 = vmatpush1.msra.mxu1 %v4514_v28  ;;  %v10194_v28 = vcombine.low %v4683_v19, %v4687_v22  ;;  %v4634_v19 = vld [vmem:[#allocation24 + $0xf8] sm:$0xff] }
 0xd3a   :  { %10113 = vmatmul.mubr.msk.f32.vlgmr.msra.gmra.mxu1 %vm3960_vm3, %v4520_v29  ;;  %5413 = vmatprep.subr.bf16.mxu1 %v10171_v27  ;;  %v4679_v27 = vld [vmem:[#allocation24 + $0x260] sm:$0xff] }
 0xd3b   :  { %5414 = vmatpush1.bf16.msra.mxu1 %v10170_v30  ;;  %v10187_v29 = vcombine.high %v4675_v26, %v4679_v27  ;;  %v10186_v30 = vcombine.low %v4675_v26, %v4679_v27  ;;  %v4621_v27 = vld [vmem:[#allocation24 + $0x90] sm:$0xff] }
 0xd3c   :  { %5415 = vmatprep.subr.bf16.mxu1 %v10163_v32  ;;  %v4667_v32 = vld [vmem:[#allocation24 + $0x200] sm:$0xff] }
 0xd3d   :  { %v10178_v46 = vcombine.low %v4667_v32, %v4671_v39 }
 0xd3f   :  { %5416 = vmatpush1.bf16.msra.mxu1 %v10162_v44  ;;  %v10179_v44 = vcombine.high %v4667_v32, %v4671_v39 }
 0xd40   :  { %5417 = vmatprep.subr.bf16.mxu1 %v10155_v45  ;;  %v4672_v45 = vld [vmem:[#allocation24 + $0x228] sm:$0xff] }
 0xd41   :  { %v10180_v47 = vcombine.low %v4668_v41, %v4672_v45 }
 0xd43   :  { %5418 = vmatpush1.bf16.msra.mxu1 %v10154_v48  ;;  %v10181_v48 = vcombine.high %v4668_v41, %v4672_v45  ;;  %v4613_v45 = vld [vmem:[#allocation24 + $0x50] sm:$0xff] }
 0xd44   :  { %5419 = vmatprep.subr.bf16.mxu1 %v10147_v49  ;;  %v4661_v49 = vld [vmem:[#allocation24 + $0x1d0] sm:$0xff] }
 0xd45   :  { %5484 = vmatprep.subr.bf16.mxu0 %v10181_v48  ;;  %v10174_v56 = vcombine.low %v4661_v49, %v4665_v50  ;;  %v4618_v48 = vld [vmem:[#allocation24 + $0x78] sm:$0xff] }
 0xd46   :  { %5485 = vmatpush2.bf16.msra.mxu0 %v10180_v47  ;;  %v4614_v47 = vld [vmem:[#allocation24 + $0x58] sm:$0xff] }
 0xd47   :  { %5420 = vmatpush1.bf16.msra.mxu1 %v10146_v52  ;;  %v10175_v52 = vcombine.high %v4661_v49, %v4665_v50 }
 0xd48   :  { %5421 = vmatprep.subr.bf16.mxu1 %v10139_v55  ;;  %v4666_v55 = vld [vmem:[#allocation24 + $0x1f8] sm:$0xff] }
 0xd49   :  { %v10176_v21 = vcombine.low %v4662_v51, %v4666_v55 }
 0xd4b   :  { %5422 = vmatpush1.bf16.msra.mxu1 %v10138_v57  ;;  %v10177_v57 = vcombine.high %v4662_v51, %v4666_v55  ;;  %v4605_v55 = vld [vmem:[#allocation24 + $0x10] sm:$0xff] }
 0xd4c   :  { %5423 = vmatprep.subr.bf16.mxu1 %v10131_v58 }
 0xd4d   :  { %5536 = vmatprep.subr.bf16.mxu0 %v10177_v57  ;;  %v4610_v57 = vld [vmem:[#allocation24 + $0x38] sm:$0xff] }
 0xd4f   :  { %5424 = vmatpush1.bf16.msra.mxu1 %v10130_v62  ;;  %v4654_v62 = vld [vmem:[#allocation24 + $0x198] sm:$0xff] }
 0xd50   :  { %5425 = vmatprep.subr.bf16.mxu1 %v10123_v63  ;;  %v4658_v63 = vld [vmem:[#allocation24 + $0x1b8] sm:$0xff] }
 0xd51   :  { %v10169_v7 = vcombine.high %v4654_v62, %v4658_v63 }
 0xd53   :  { %5426 = vmatpush1.bf16.msra.mxu1 %v10122_v4 }
 0xd54   :  { %5427 = vmatprep.subr.bf16.mxu1 %v10115_v6  ;;  %v10167_v6 = vcombine.high %v4653_v60, %v4657_v61  ;;  %v10128_v60 = vcombine.low %v4614_v47, %v4618_v48 }
 0xd57   :  { %5428 = vmatpush1.bf16.msra.mxu1 %v10114_v31  ;;  %v4649_v31 = vld [vmem:[#allocation24 + $0x170] sm:$0xff] }
 0xd58   :  { %5429 = vmatprep.subr.bf16.mxu1 %v10235_v8  ;;  %v4646_v8 = vld [vmem:[#allocation24 + $0x158] sm:$0xff]  ;;  %v10158_v12 = vcombine.low %v4645_v36, %v4649_v31 }
 0xd59   :  { %v10161_v10 = vcombine.high %v4646_v8, %v4650_v35 }
 0xd5b   :  { %5430 = vmatpush2.bf16.msra.mxu1 %v10234_v9  ;;  %v10168_v9 = vcombine.low %v4654_v62, %v4658_v63  ;;  %v4725_v63 = vld [vmem:[#allocation24 + $0x3d0] sm:$0xff] }
 0xd5c   :  { %5431 = vmatprep.subr.bf16.mxu1 %v10227_v40  ;;  %v10159_v40 = vcombine.high %v4645_v36, %v4649_v31 }
 0xd5f   :  { %5432 = vmatpush2.bf16.msra.mxu1 %v10226_v23  ;;  %v4641_v23 = vld [vmem:[#allocation24 + $0x130] sm:$0xff] }
 0xd60   :  { %5433 = vmatprep.subr.bf16.mxu1 %v10219_v11  ;;  %v4638_v11 = vld [vmem:[#allocation24 + $0x118] sm:$0xff]  ;;  %v10150_v22 = vcombine.low %v4637_v0, %v4641_v23 }
 0xd61   :  { %v10153_v17 = vcombine.high %v4638_v11, %v4642_v20 }
 0xd63   :  { %5434 = vmatpush2.bf16.msra.mxu1 %v10218_v13  ;;  %v10160_v13 = vcombine.low %v4646_v8, %v4650_v35  ;;  %v4717_v35 = vld [vmem:[#allocation24 + $0x390] sm:$0xff] }
 0xd64   :  { %5435 = vmatprep.subr.bf16.mxu1 %v10211_v14  ;;  %v10151_v14 = vcombine.high %v4637_v0, %v4641_v23 }
 0xd67   :  { %5436 = vmatpush2.bf16.msra.mxu1 %v10210_v16  ;;  %v4633_v16 = vld [vmem:[#allocation24 + $0xf0] sm:$0xff] }
 0xd68   :  { %5437 = vmatprep.subr.bf16.mxu1 %v10203_v18  ;;  %v4630_v18 = vld [vmem:[#allocation24 + $0xd8] sm:$0xff]  ;;  %v10142_v32 = vcombine.low %v4629_v15, %v4633_v16 }
 0xd69   :  { %v10145_v26 = vcombine.high %v4630_v18, %v4634_v19  ;;  %v10144_v39 = vcombine.low %v4630_v18, %v4634_v19  ;;  %v4701_v19 = vld [vmem:[#allocation24 + $0x310] sm:$0xff] }
 0xd6b   :  { %5438 = vmatpush2.bf16.msra.mxu1 %v10202_v24  ;;  %v10152_v24 = vcombine.low %v4638_v11, %v4642_v20  ;;  %v4709_v20 = vld [vmem:[#allocation24 + $0x350] sm:$0xff] }
 0xd6c   :  { %5439 = vmatprep.subr.bf16.mxu1 %v10195_v25  ;;  %v10143_v25 = vcombine.high %v4629_v15, %v4633_v16 }
 0xd6f   :  { %5440 = vmatpush2.bf16.msra.mxu1 %v10194_v28  ;;  %v4625_v28 = vld [vmem:[#allocation24 + $0xb0] sm:$0xff] }
 0xd70   :  { %5441 = vmatprep.subr.bf16.mxu1 %v10187_v29  ;;  %v4622_v29 = vld [vmem:[#allocation24 + $0x98] sm:$0xff]  ;;  %v10135_v41 = vcombine.high %v4621_v27, %v4625_v28  ;;  %v10134_v49 = vcombine.low %v4621_v27, %v4625_v28 }
 0xd73   :  { %5442 = vmatpush2.bf16.msra.mxu1 %v10186_v30  ;;  %v4626_v30 = vld [vmem:[#allocation24 + $0xb8] sm:$0xff] }
 0xd74   :  { %5443 = vmatprep.subr.bf16.mxu1 %v10179_v44  ;;  %v10137_v44 = vcombine.high %v4622_v29, %v4626_v30  ;;  %v10136_v50 = vcombine.low %v4622_v29, %v4626_v30  ;;  %v4693_v30 = vld [vmem:[#allocation24 + $0x2d0] sm:$0xff] }
 0xd77   :  { %5444 = vmatpush2.bf16.msra.mxu1 %v10178_v46  ;;  %v4617_v46 = vld [vmem:[#allocation24 + $0x70] sm:$0xff] }
 0xd78   :  { %5495 = vmatprep.subr.bf16.mxu1 %v10175_v52  ;;  %v10127_v51 = vcombine.high %v4613_v45, %v4617_v46  ;;  %v10129_v52 = vcombine.high %v4614_v47, %v4618_v48  ;;  %v4685_v48 = vld [vmem:[#allocation24 + $0x290] sm:$0xff] }
 0xdfa   :  { %v4596_v58 = vpop.f32.mrf.mxu1 }
 0xdfb   :  { %v12908_v4 = vpack.c.bf16 %v4596_v58, %v4596_v58  ;;  %v10126_v58 = vcombine.low %v4613_v45, %v4617_v46 }
 0xdfc   :  { %v4598_v1 = vpop.f32.mrf.mxu1 }
 0xdfd   :  { %v4602_v2 = vpack.c.bf16 %v4598_v1, %v4598_v1  ;;  %v4729_v1 = vld [vmem:[#allocation24 + $0x3f0] sm:$0xff] }
 0xdfe   :  { %v10239_v31 = vcombine.high %v4725_v63, %v4729_v1 }
 0xdff   :  { %5445 = vmatprep.mubr.bf16.mxu1 %v4602_v2  ;;  %5486 = vmatprep.mubr.bf16.mxu0 %v4602_v2 }
 0xe00   :  { %5446 = vmatmul.mubr.bf16.vlgmr.msra.gmra.mxu1 %v12908_v4  ;;  %5487 = vmatmul.mubr.bf16.vlgmr.msra.gmra.mxu0 %v12908_v4 }
 0xe01   :  { %5496 = vmatpush1.bf16.msra.mxu1 %v10174_v56  ;;  %5537 = vmatpush1.bf16.msra.mxu0 %v10176_v21  ;;  %v4609_v56 = vld [vmem:[#allocation24 + $0x30] sm:$0xff]  ;;  %v4606_v21 = vld [vmem:[#allocation24 + $0x18] sm:$0xff] }
 0xe02   :  { %5497 = vmatprep.subr.bf16.mxu1 %v10167_v6  ;;  %5538 = vmatprep.subr.bf16.mxu0 %v10169_v7  ;;  %v10119_v61 = vcombine.high %v4605_v55, %v4609_v56  ;;  %v10121_v62 = vcombine.high %v4606_v21, %v4610_v57  ;;  %v4730_v6 = vld [vmem:[#allocation24 + $0x3f8] sm:$0xff]  ;;  %v10118_v7 = vcombine.low %v4605_v55, %v4609_v56 }
 0xe03   :  { %5527 = vmatprep.mubr.bf16.mxu1 %v4602_v2  ;;  %5568 = vmatprep.mubr.bf16.mxu0 %v4602_v2  ;;  %v4726_v2 = vld [vmem:[#allocation24 + $0x3d8] sm:$0xff]  ;;  %v10120_v36 = vcombine.low %v4606_v21, %v4610_v57  ;;  %v4677_v57 = vld [vmem:[#allocation24 + $0x250] sm:$0xff] }
 0xe04   :  { %v10241_v8 = vcombine.high %v4726_v2, %v4730_v6  ;;  %v10240_v0 = vcombine.low %v4726_v2, %v4730_v6  ;;  %v4669_v6 = vld [vmem:[#allocation24 + $0x210] sm:$0xff] }
 0xe05   :  { %5498 = vmatpush1.bf16.msra.mxu1 %v10166_v59  ;;  %5539 = vmatpush1.bf16.msra.mxu0 %v10168_v9  ;;  %v4721_v59 = vld [vmem:[#allocation24 + $0x3b0] sm:$0xff]  ;;  %v4718_v9 = vld [vmem:[#allocation24 + $0x398] sm:$0xff] }
 0xe06   :  { %5499 = vmatprep.subr.bf16.mxu1 %v10159_v40  ;;  %5540 = vmatprep.subr.bf16.mxu0 %v10161_v10  ;;  %v4722_v40 = vld [vmem:[#allocation24 + $0x3b8] sm:$0xff]  ;;  %v10238_v10 = vcombine.low %v4725_v63, %v4729_v1  ;;  %v10231_v23 = vcombine.high %v4717_v35, %v4721_v59 }
 0xe07   :  { %v10233_v11 = vcombine.high %v4718_v9, %v4722_v40  ;;  %v10232_v15 = vcombine.low %v4718_v9, %v4722_v40 }
 0xe09   :  { %5500 = vmatpush1.bf16.msra.mxu1 %v10158_v12  ;;  %5541 = vmatpush1.bf16.msra.mxu0 %v10160_v13  ;;  %v4713_v12 = vld [vmem:[#allocation24 + $0x370] sm:$0xff]  ;;  %v4710_v13 = vld [vmem:[#allocation24 + $0x358] sm:$0xff] }
 0xe0a   :  { %5501 = vmatprep.subr.bf16.mxu1 %v10151_v14  ;;  %5542 = vmatprep.subr.bf16.mxu0 %v10153_v17  ;;  %v4714_v14 = vld [vmem:[#allocation24 + $0x378] sm:$0xff]  ;;  %v10230_v17 = vcombine.low %v4717_v35, %v4721_v59  ;;  %v10223_v16 = vcombine.high %v4709_v20, %v4713_v12 }
 0xe0b   :  { %v10225_v18 = vcombine.high %v4710_v13, %v4714_v14  ;;  %v10224_v27 = vcombine.low %v4710_v13, %v4714_v14  ;;  %v11405_v13 = vld [vmem:[#allocation27 + $0xf0] sm:$0xff]  }
 0xe0c   :  { %v11406_v14 = vld [vmem:[#allocation27 + $0x30] sm:$0xff]  }
 0xe0d   :  { %5502 = vmatpush1.bf16.msra.mxu1 %v10150_v22  ;;  %5543 = vmatpush1.bf16.msra.mxu0 %v10152_v24  ;;  %v4705_v22 = vld [vmem:[#allocation24 + $0x330] sm:$0xff]  ;;  %v4702_v24 = vld [vmem:[#allocation24 + $0x318] sm:$0xff] }
 0xe0e   :  { %5503 = vmatprep.subr.bf16.mxu1 %v10143_v25  ;;  %5544 = vmatprep.subr.bf16.mxu0 %v10145_v26  ;;  %v4706_v25 = vld [vmem:[#allocation24 + $0x338] sm:$0xff]  ;;  %v10222_v26 = vcombine.low %v4709_v20, %v4713_v12  ;;  %v10215_v28 = vcombine.high %v4701_v19, %v4705_v22  ;;  %v11403_v20 = vld [vmem:[#allocation27 + $0xb8] sm:$0xff]  }
 0xe0f   :  { %v10217_v29 = vcombine.high %v4702_v24, %v4706_v25  ;;  %v10216_v45 = vcombine.low %v4702_v24, %v4706_v25  ;;  %v11404_v12 = vld [vmem:[#allocation27 + $0x70] sm:$0xff]   ;;  %v11413_v24 = vld [vmem:[#allocation27 + $0xe0] sm:$0xff]  }
 0xe10   :  { %v11414_v25 = vld [vmem:[#allocation27 + $0x20] sm:$0xff]  }
 0xe11   :  { %5504 = vmatpush1.bf16.msra.mxu1 %v10142_v32  ;;  %5545 = vmatpush1.bf16.msra.mxu0 %v10144_v39  ;;  %v4697_v32 = vld [vmem:[#allocation24 + $0x2f0] sm:$0xff]  ;;  %v4694_v39 = vld [vmem:[#allocation24 + $0x2d8] sm:$0xff] }
 0xe12   :  { %5505 = vmatprep.subr.bf16.mxu1 %v10135_v41  ;;  %5546 = vmatprep.subr.bf16.mxu0 %v10137_v44  ;;  %v4698_v41 = vld [vmem:[#allocation24 + $0x2f8] sm:$0xff]  ;;  %v10214_v44 = vcombine.low %v4701_v19, %v4705_v22  ;;  %v10207_v46 = vcombine.high %v4693_v30, %v4697_v32  ;;  %v11411_v19 = vld [vmem:[#allocation27 + $0xa8] sm:$0xff]   ;;  %v11412_v22 = vld [vmem:[#allocation27 + $0x60] sm:$0xff]  }
 0xe13   :  { %v10209_v47 = vcombine.high %v4694_v39, %v4698_v41  ;;  %v10208_v55 = vcombine.low %v4694_v39, %v4698_v41  ;;  %v11422_v39 = vld [vmem:[#allocation27 + $0x10] sm:$0xff]  }
 0xe14   :  { %v11423_v41 = vld [vmem:[#allocation27 + $0x90] sm:$0xff]  }
 0xe15   :  { %5506 = vmatpush1.bf16.msra.mxu1 %v10134_v49  ;;  %5547 = vmatpush1.bf16.msra.mxu0 %v10136_v50  ;;  %v4689_v49 = vld [vmem:[#allocation24 + $0x2b0] sm:$0xff]  ;;  %v4686_v50 = vld [vmem:[#allocation24 + $0x298] sm:$0xff] }
 0xe16   :  { %5507 = vmatprep.subr.bf16.mxu1 %v10127_v51  ;;  %5548 = vmatprep.subr.bf16.mxu0 %v10129_v52  ;;  %v4690_v51 = vld [vmem:[#allocation24 + $0x2b8] sm:$0xff]  ;;  %v10206_v52 = vcombine.low %v4693_v30, %v4697_v32  ;;  %v10199_v56 = vcombine.high %v4685_v48, %v4689_v49 }
 0xe17   :  { %v10201_v21 = vcombine.high %v4686_v50, %v4690_v51  ;;  %v10200_v63 = vcombine.low %v4686_v50, %v4690_v51  ;;  %v11420_v30 = vld [vmem:[#allocation27 + $0x50] sm:$0xff]   ;;  %v11430_v50 = vld [vmem:[#allocation27] sm:$0xff]  }
 0xe18   :  { %v11421_v32 = vld [vmem:[#allocation27 + $0xd0] sm:$0xff]   ;;  %v11431_v51 = vld [vmem:[#allocation27 + $0x80] sm:$0xff]  }
 0xe19   :  { %5508 = vmatpush1.bf16.msra.mxu1 %v10126_v58  ;;  %5549 = vmatpush1.bf16.msra.mxu0 %v10128_v60  ;;  %v4681_v58 = vld [vmem:[#allocation24 + $0x270] sm:$0xff]  ;;  %v4678_v60 = vld [vmem:[#allocation24 + $0x258] sm:$0xff] }
 0xe1a   :  { %5509 = vmatprep.subr.bf16.mxu1 %v10119_v61  ;;  %5550 = vmatprep.subr.bf16.mxu0 %v10121_v62  ;;  %v4682_v61 = vld [vmem:[#allocation24 + $0x278] sm:$0xff]  ;;  %v10198_v62 = vcombine.low %v4685_v48, %v4689_v49  ;;  %v10191_v1 = vcombine.high %v4677_v57, %v4681_v58  ;;  %v11428_v48 = vld [vmem:[#allocation27 + $0x40] sm:$0xff]  }
 0xe1b   :  { %v10193_v2 = vcombine.high %v4678_v60, %v4682_v61  ;;  %v10192_v35 = vcombine.low %v4678_v60, %v4682_v61  ;;  %v11429_v49 = vld [vmem:[#allocation27 + $0xc0] sm:$0xff]  }
 0xe1d   :  { %5510 = vmatpush1.bf16.msra.mxu1 %v10118_v7  ;;  %5551 = vmatpush1.bf16.msra.mxu0 %v10120_v36  ;;  %v4673_v7 = vld [vmem:[#allocation24 + $0x230] sm:$0xff]  ;;  %v4670_v36 = vld [vmem:[#allocation24 + $0x218] sm:$0xff] }
 0xe1e   :  { %5511 = vmatprep.subr.bf16.mxu1 %v10239_v31  ;;  %5552 = vmatprep.subr.bf16.mxu0 %v10241_v8  ;;  %v4674_v31 = vld [vmem:[#allocation24 + $0x238] sm:$0xff]  ;;  %v10190_v8 = vcombine.low %v4677_v57, %v4681_v58  ;;  %v10183_v59 = vcombine.high %v4669_v6, %v4673_v7  ;;  %v10182_v40 = vcombine.low %v4669_v6, %v4673_v7 }
 0xe1f   :  { %v10185_v9 = vcombine.high %v4670_v36, %v4674_v31 }
 0xe21   :  { %5512 = vmatpush2.bf16.msra.mxu1 %v10238_v10  ;;  %5553 = vmatpush2.bf16.msra.mxu0 %v10240_v0  ;;  %v10184_v10 = vcombine.low %v4670_v36, %v4674_v31  ;;  %v11400_v0 = vld [vmem:[#allocation27 + $0x78] sm:$0xff]  }
 0xe22   :  { %5513 = vmatprep.subr.bf16.mxu1 %v10231_v23  ;;  %5554 = vmatprep.subr.bf16.mxu0 %v10233_v11  ;;  %v11401_v23 = vld [vmem:[#allocation27 + $0xf8] sm:$0xff]  }
 0xe23   :  { %v11402_v11 = vld [vmem:[#allocation27 + $0x38] sm:$0xff]  }
 0xe25   :  { %5514 = vmatpush2.bf16.msra.mxu1 %v10230_v17  ;;  %5555 = vmatpush2.bf16.msra.mxu0 %v10232_v15  ;;  %v11407_v17 = vld [vmem:[#allocation27 + $0xb0] sm:$0xff]   ;;  %v11408_v15 = vld [vmem:[#allocation27 + $0x68] sm:$0xff]  }
 0xe26   :  { %5515 = vmatprep.subr.bf16.mxu1 %v10223_v16  ;;  %5556 = vmatprep.subr.bf16.mxu0 %v10225_v18  ;;  %v11409_v16 = vld [vmem:[#allocation27 + $0xe8] sm:$0xff]  }
 0xe27   :  { %v11410_v18 = vld [vmem:[#allocation27 + $0x28] sm:$0xff]  }
 0xe29   :  { %5516 = vmatpush2.bf16.msra.mxu1 %v10222_v26  ;;  %5557 = vmatpush2.bf16.msra.mxu0 %v10224_v27  ;;  %v11416_v26 = vld [vmem:[#allocation27 + $0x58] sm:$0xff]  }
 0xe2a   :  { %5517 = vmatprep.subr.bf16.mxu1 %v10215_v28  ;;  %5558 = vmatprep.subr.bf16.mxu0 %v10217_v29  ;;  %v11417_v27 = vld [vmem:[#allocation27 + $0xd8] sm:$0xff]  }
 0xe2b   :  { %v11418_v28 = vld [vmem:[#allocation27 + $0x18] sm:$0xff]  }
 0xe2c   :  { %v11419_v29 = vld [vmem:[#allocation27 + $0x98] sm:$0xff]  }
 0xe2d   :  { %5518 = vmatpush2.bf16.msra.mxu1 %v10214_v44  ;;  %5559 = vmatpush2.bf16.msra.mxu0 %v10216_v45  ;;  %v11424_v44 = vld [vmem:[#allocation27 + $0x48] sm:$0xff]  }
 0xe2e   :  { %5519 = vmatprep.subr.bf16.mxu1 %v10207_v46  ;;  %5560 = vmatprep.subr.bf16.mxu0 %v10209_v47  ;;  %v11425_v45 = vld [vmem:[#allocation27 + $0xc8] sm:$0xff]  }
 0xe2f   :  { %v11426_v46 = vld [vmem:[#allocation27 + $0x8] sm:$0xff]  }
 0xe30   :  { %v11427_v47 = vld [vmem:[#allocation27 + $0x88] sm:$0xff]  }
 0xe31   :  { %5520 = vmatpush2.bf16.msra.mxu1 %v10206_v52  ;;  %5561 = vmatpush2.bf16.msra.mxu0 %v10208_v55  ;;  %v11432_v52 = vld [vmem:[#allocation27 + $0x178] sm:$0xff]  }
 0xe32   :  { %5521 = vmatprep.subr.bf16.mxu1 %v10199_v56  ;;  %5562 = vmatprep.subr.bf16.mxu0 %v10201_v21  ;;  %v11433_v55 = vld [vmem:[#allocation27 + $0x1f8] sm:$0xff]  }
 0xe33   :  { %v12914_v56 = vld [vmem:[#allocation25] sm:$0xff] }
 0xe34   :  { %v4736_v21 = vrot.slane %v12914_v56, %v12755_v38  ;;  %v4744_v57 = vrot.slane %v12914_v56, %v12772_v33  ;;  %v4740_v58 = vrot.slane %v12914_v56, %v12752_v37  ;;  %v4748_v60 = vrot.slane %v12914_v56, %v12815_v43 }
 0xe35   :  { %5522 = vmatpush2.bf16.msra.mxu1 %v10198_v62  ;;  %5563 = vmatpush2.bf16.msra.mxu0 %v10200_v63 }
 0xe36   :  { %5523 = vmatprep.subr.bf16.mxu1 %v10191_v1  ;;  %5564 = vmatprep.subr.bf16.mxu0 %v10193_v2 }
 0xe39   :  { %5524 = vmatpush2.bf16.msra.mxu1 %v10190_v8  ;;  %5565 = vmatpush2.bf16.msra.mxu0 %v10192_v35 }
 0xe3a   :  { %5525 = vmatprep.subr.bf16.mxu1 %v10183_v59  ;;  %5566 = vmatprep.subr.bf16.mxu0 %v10185_v9 }
 0xe3d   :  { %5526 = vmatpush2.bf16.msra.mxu1 %v10182_v40  ;;  %5567 = vmatpush2.bf16.msra.mxu0 %v10184_v10 }
 0xe3e   :  { %10886 = vmatprep.subr.bf16.mxu1 %v11400_v0  ;;  %10908 = vmatprep.subr.bf16.mxu0 %v11401_v23 }
 0xe40   :  { %5528 = vmatmul.mubr.bf16.vlgmr.msra.gmra.mxu1 %v12908_v4  ;;  %5569 = vmatmul.mubr.bf16.vlgmr.msra.gmra.mxu0 %v12908_v4  ;;  %v11415_v4 = vld [vmem:[#allocation27 + $0xa0] sm:$0xff]  }
 0xe41   :  { %10887 = vmatpush3.bf16.msra.mxu1 %v11402_v11  ;;  %10909 = vmatpush3.bf16.msra.mxu0 %v11403_v20  ;;  %v11434_v20 = vld [vmem:[#allocation27 + $0x138] sm:$0xff]  }
 0xe42   :  { %10888 = vmatprep.subr.bf16.mxu1 %v11404_v12  ;;  %10910 = vmatprep.subr.bf16.mxu0 %v11405_v13  ;;  %v11435_v12 = vld [vmem:[#allocation27 + $0x1b8] sm:$0xff]  }
 0xe45   :  { %10889 = vmatpush3.bf16.msra.mxu1 %v11406_v14  ;;  %10911 = vmatpush3.bf16.msra.mxu0 %v11407_v17  ;;  %v11436_v17 = vld [vmem:[#allocation27 + $0x170] sm:$0xff]  }
 0xe46   :  { %10890 = vmatprep.subr.bf16.mxu1 %v11408_v15  ;;  %10912 = vmatprep.subr.bf16.mxu0 %v11409_v16  ;;  %v11437_v15 = vld [vmem:[#allocation27 + $0x1f0] sm:$0xff]  }
 0xe47   :  { %v11438_v16 = vld [vmem:[#allocation27 + $0x130] sm:$0xff]  }
 0xe49   :  { %10891 = vmatpush3.bf16.msra.mxu1 %v11410_v18  ;;  %10913 = vmatpush3.bf16.msra.mxu0 %v11411_v19  ;;  %v11439_v18 = vld [vmem:[#allocation27 + $0x1b0] sm:$0xff]   ;;  %v11440_v19 = vld [vmem:[#allocation27 + $0x168] sm:$0xff]  }
 0xe4a   :  { %10892 = vmatprep.subr.bf16.mxu1 %v11412_v22  ;;  %10914 = vmatprep.subr.bf16.mxu0 %v11413_v24  ;;  %v11441_v22 = vld [vmem:[#allocation27 + $0x1e8] sm:$0xff]  }
 0xe4b   :  { %v11442_v24 = vld [vmem:[#allocation27 + $0x128] sm:$0xff]  }
 0xe4d   :  { %10893 = vmatpush3.bf16.msra.mxu1 %v11414_v25  ;;  %10915 = vmatpush3.bf16.msra.mxu0 %v11415_v4  ;;  %v11443_v25 = vld [vmem:[#allocation27 + $0x1a8] sm:$0xff]   ;;  %v11444_v4 = vld [vmem:[#allocation27 + $0x160] sm:$0xff]  }
 0xe4e   :  { %10894 = vmatprep.subr.bf16.mxu1 %v11416_v26  ;;  %10916 = vmatprep.subr.bf16.mxu0 %v11417_v27  ;;  %v11445_v26 = vld [vmem:[#allocation27 + $0x1e0] sm:$0xff]  }
 0xe4f   :  { %v11446_v27 = vld [vmem:[#allocation27 + $0x120] sm:$0xff]  }
 0xe51   :  { %10895 = vmatpush3.bf16.msra.mxu1 %v11418_v28  ;;  %10917 = vmatpush3.bf16.msra.mxu0 %v11419_v29  ;;  %v11447_v28 = vld [vmem:[#allocation27 + $0x1a0] sm:$0xff]   ;;  %v11448_v29 = vld [vmem:[#allocation27 + $0x158] sm:$0xff]  }
 0xe52   :  { %10896 = vmatprep.subr.bf16.mxu1 %v11420_v30  ;;  %10918 = vmatprep.subr.bf16.mxu0 %v11421_v32  ;;  %v11449_v30 = vld [vmem:[#allocation27 + $0x1d8] sm:$0xff]  }
 0xe53   :  { %v11450_v32 = vld [vmem:[#allocation27 + $0x118] sm:$0xff]  }
 0xe55   :  { %10897 = vmatpush3.bf16.msra.mxu1 %v11422_v39  ;;  %10919 = vmatpush3.bf16.msra.mxu0 %v11423_v41  ;;  %v11451_v39 = vld [vmem:[#allocation27 + $0x198] sm:$0xff]   ;;  %v11452_v41 = vld [vmem:[#allocation27 + $0x150] sm:$0xff]  }
 0xe56   :  { %10898 = vmatprep.subr.bf16.mxu1 %v11424_v44  ;;  %10920 = vmatprep.subr.bf16.mxu0 %v11425_v45  ;;  %v11453_v44 = vld [vmem:[#allocation27 + $0x1d0] sm:$0xff]  }
 0xe57   :  { %v11454_v45 = vld [vmem:[#allocation27 + $0x110] sm:$0xff]  }
 0xe59   :  { %10899 = vmatpush3.bf16.msra.mxu1 %v11426_v46  ;;  %10921 = vmatpush3.bf16.msra.mxu0 %v11427_v47  ;;  %v11455_v46 = vld [vmem:[#allocation27 + $0x190] sm:$0xff]   ;;  %v11456_v47 = vld [vmem:[#allocation27 + $0x148] sm:$0xff]  }
 0xe5a   :  { %10900 = vmatprep.subr.bf16.mxu1 %v11428_v48  ;;  %10922 = vmatprep.subr.bf16.mxu0 %v11429_v49  ;;  %v11457_v48 = vld [vmem:[#allocation27 + $0x1c8] sm:$0xff]  }
 0xe5b   :  { %v11458_v49 = vld [vmem:[#allocation27 + $0x108] sm:$0xff]  }
 0xe5d   :  { %10901 = vmatpush3.bf16.msra.mxu1 %v11430_v50  ;;  %10923 = vmatpush3.bf16.msra.mxu0 %v11431_v51  ;;  %v11459_v50 = vld [vmem:[#allocation27 + $0x188] sm:$0xff]   ;;  %v11460_v51 = vld [vmem:[#allocation27 + $0x140] sm:$0xff]  }
 0xe5e   :  { %10930 = vmatprep.subr.bf16.mxu1 %v11432_v52  ;;  %10952 = vmatprep.subr.bf16.mxu0 %v11433_v55  ;;  %v11461_v52 = vld [vmem:[#allocation27 + $0x1c0] sm:$0xff]  }
 0xe5f   :  { %v11462_v55 = vld [vmem:[#allocation27 + $0x100] sm:$0xff]  }
 0xec0   :  { %v5447_v61 = vpop.f32.mrf.mxu1  ;;  %v5488_v62 = vpop.f32.mrf.mxu0 }
 0xec1   :  { %v5448_v63 = vadd.f32 %v5447_v61, %v4736_v21  ;;  %v5489_v1 = vadd.f32 %v5488_v62, %v4744_v57  ;;  %v11463_v21 = vld [vmem:[#allocation27 + $0x180] sm:$0xff]   ;;  %v4752_v57 = vrot.slane %v12914_v56, %v12822_v3  ;;  %v4764_v61 = vrot.slane %v12914_v56, %v12843_v54 }
 0xec2   :  { %v5449_v2 = vpop.f32.mrf.mxu1  ;;  %v5490_v6 = vpop.f32.mrf.mxu0 }
 0xec3   :  { %v5450_v7 = vadd.f32 %v5449_v2, %v4740_v58  ;;  %v5491_v36 = vadd.f32 %v5490_v6, %v4748_v60  ;;  %v5577_v31 = vmax.f32 %v5448_v63, 0.0  ;;  %v5579_v8 = vmax.f32 %v5489_v1, 0.0 }
 0xec4   :  { %v5451_v35 = vpop.f32.mrf.mxu1  ;;  %v5492_v59 = vpop.f32.mrf.mxu0  ;;  %v4760_v58 = vrot.slane %v12914_v56, %v12840_v53  ;;  %v4756_v60 = vrot.slane %v12914_v56, %v12825_v5 }
 0xec5   :  { %v5578_v9 = vmax.f32 %v5450_v7, 0.0  ;;  %v5580_v40 = vmax.f32 %v5491_v36, 0.0  ;;  %v5585_v13 = vpack.c.bf16 %v5577_v31, %v5577_v31  ;;  %v5587_v14 = vpack.c.bf16 %v5579_v8, %v5579_v8 }
 0xec6   :  { %v5452_v10 = vpop.f32.mrf.mxu1  ;;  %v5493_v0 = vpop.f32.mrf.mxu0 }
 0xec7   :  { %v5586_v23 = vpack.c.bf16 %v5578_v9, %v5578_v9  ;;  %v5588_v11 = vpack.c.bf16 %v5580_v40, %v5580_v40 }
 0xec9   :  { %6144 = vmatprep.mubr.bf16.mxu1 %v5586_v23  ;;  %6184 = vmatprep.mubr.bf16.mxu0 %v5588_v11 }
 0xeca   :  { %6145 = vmatmul.mubr.bf16.vlgmr.msra.gmra.mxu1 %v5585_v13  ;;  %6185 = vmatmul.mubr.bf16.vlgmr.msra.gmra.mxu0 %v5587_v14  ;;  %v6394_v13 = vld [vmem:[#allocation31 + $0x1c0] sm:$0xff] }
 0xecb   :  { %10931 = vmatpush3.bf16.msra.mxu1 %v11434_v20  ;;  %10953 = vmatpush3.bf16.msra.mxu0 %v11435_v12  ;;  %v6398_v14 = vld [vmem:[#allocation31 + $0x1e0] sm:$0xff] }
 0xecc   :  { %10932 = vmatprep.subr.bf16.mxu1 %v11436_v17  ;;  %10954 = vmatprep.subr.bf16.mxu0 %v11437_v15  ;;  %v6395_v17 = vld [vmem:[#allocation31 + $0x1c8] sm:$0xff]  ;;  %v10363_v15 = vcombine.low %v6394_v13, %v6398_v14 }
 0xecf   :  { %10933 = vmatpush3.bf16.msra.mxu1 %v11438_v16  ;;  %10955 = vmatpush3.bf16.msra.mxu0 %v11439_v18  ;;  %v10364_v16 = vcombine.high %v6394_v13, %v6398_v14  ;;  %v6399_v18 = vld [vmem:[#allocation31 + $0x1e8] sm:$0xff] }
 0xed0   :  { %10934 = vmatprep.subr.bf16.mxu1 %v11440_v19  ;;  %10956 = vmatprep.subr.bf16.mxu0 %v11441_v22  ;;  %v6386_v19 = vld [vmem:[#allocation31 + $0x180] sm:$0xff] }
 0xed1   :  { %v6390_v22 = vld [vmem:[#allocation31 + $0x1a0] sm:$0xff] }
 0xed3   :  { %10935 = vmatpush3.bf16.msra.mxu1 %v11442_v24  ;;  %10957 = vmatpush3.bf16.msra.mxu0 %v11443_v25  ;;  %v10365_v24 = vcombine.low %v6395_v17, %v6399_v18  ;;  %v10366_v25 = vcombine.high %v6395_v17, %v6399_v18  ;;  %v6338_v17 = vld [vmem:[#allocation31] sm:$0xff] }
 0xed4   :  { %10936 = vmatprep.subr.bf16.mxu1 %v11444_v4  ;;  %10958 = vmatprep.subr.bf16.mxu0 %v11445_v26  ;;  %v10356_v4 = vcombine.high %v6386_v19, %v6390_v22  ;;  %v6387_v26 = vld [vmem:[#allocation31 + $0x188] sm:$0xff] }
 0xed7   :  { %10937 = vmatpush3.bf16.msra.mxu1 %v11446_v27  ;;  %10959 = vmatpush3.bf16.msra.mxu0 %v11447_v28  ;;  %v6391_v27 = vld [vmem:[#allocation31 + $0x1a8] sm:$0xff]  ;;  %v6378_v28 = vld [vmem:[#allocation31 + $0x140] sm:$0xff] }
 0xed8   :  { %10938 = vmatprep.subr.bf16.mxu1 %v11448_v29  ;;  %10960 = vmatprep.subr.bf16.mxu0 %v11449_v30  ;;  %v10358_v29 = vcombine.high %v6387_v26, %v6391_v27  ;;  %v6382_v30 = vld [vmem:[#allocation31 + $0x160] sm:$0xff] }
 0xedb   :  { %10939 = vmatpush3.bf16.msra.mxu1 %v11450_v32  ;;  %10961 = vmatpush3.bf16.msra.mxu0 %v11451_v39  ;;  %v6379_v32 = vld [vmem:[#allocation31 + $0x148] sm:$0xff] }
 0xedc   :  { %10940 = vmatprep.subr.bf16.mxu1 %v11452_v41  ;;  %10962 = vmatprep.subr.bf16.mxu0 %v11453_v44  ;;  %v6383_v39 = vld [vmem:[#allocation31 + $0x168] sm:$0xff]  ;;  %v10355_v41 = vcombine.low %v6386_v19, %v6390_v22  ;;  %v10357_v44 = vcombine.low %v6387_v26, %v6391_v27  ;;  %v6400_v26 = vld [vmem:[#allocation31 + $0x1f0] sm:$0xff]  ;;  %v6397_v27 = vld [vmem:[#allocation31 + $0x1d8] sm:$0xff] }
 0xedd   :  { %v6343_v19 = vld [vmem:[#allocation31 + $0x28] sm:$0xff] }
 0xedf   :  { %10941 = vmatpush3.bf16.msra.mxu1 %v11454_v45  ;;  %10963 = vmatpush3.bf16.msra.mxu0 %v11455_v46  ;;  %v10348_v45 = vcombine.high %v6378_v28, %v6382_v30  ;;  %v10350_v46 = vcombine.high %v6379_v32, %v6383_v39 }
 0xee0   :  { %10942 = vmatprep.subr.bf16.mxu1 %v11456_v47  ;;  %10964 = vmatprep.subr.bf16.mxu0 %v11457_v48  ;;  %v6370_v47 = vld [vmem:[#allocation31 + $0x100] sm:$0xff] }
 0xee1   :  { %v6374_v48 = vld [vmem:[#allocation31 + $0x120] sm:$0xff] }
 0xee3   :  { %10943 = vmatpush3.bf16.msra.mxu1 %v11458_v49  ;;  %10965 = vmatpush3.bf16.msra.mxu0 %v11459_v50  ;;  %v6371_v49 = vld [vmem:[#allocation31 + $0x108] sm:$0xff] }
 0xee4   :  { %10944 = vmatprep.subr.bf16.mxu1 %v11460_v51  ;;  %10966 = vmatprep.subr.bf16.mxu0 %v11461_v52  ;;  %v6375_v50 = vld [vmem:[#allocation31 + $0x128] sm:$0xff]  ;;  %v10347_v51 = vcombine.low %v6378_v28, %v6382_v30  ;;  %v10349_v52 = vcombine.low %v6379_v32, %v6383_v39  ;;  %v6401_v30 = vld [vmem:[#allocation31 + $0x1f8] sm:$0xff] }
 0xee5   :  { %v10369_v32 = vcombine.low %v6397_v27, %v6401_v30  ;;  %v10370_v39 = vcombine.high %v6397_v27, %v6401_v30  ;;  %v6364_v27 = vld [vmem:[#allocation31 + $0xd0] sm:$0xff]  ;;  %v6369_v30 = vld [vmem:[#allocation31 + $0xf8] sm:$0xff] }
 0xee7   :  { %10945 = vmatpush3.bf16.msra.mxu1 %v11462_v55  ;;  %10967 = vmatpush3.bf16.msra.mxu0 %v11463_v21  ;;  %v10340_v55 = vcombine.high %v6370_v47, %v6374_v48  ;;  %v10342_v21 = vcombine.high %v6371_v49, %v6375_v50 }
 0xee8   :  { %6722 = vmatprep.subr.bf16.mxu1 %v10364_v16  ;;  %6763 = vmatprep.subr.bf16.mxu0 %v10366_v25  ;;  %v6339_v16 = vld [vmem:[#allocation31 + $0x8] sm:$0xff] }
 0xee9   :  { %v10310_v25 = vcombine.high %v6339_v16, %v6343_v19 }
 0xf00   :  { %v5529_v62 = vpop.f32.mrf.mxu1  ;;  %v5570_v63 = vpop.f32.mrf.mxu0 }
 0xf01   :  { %v5530_v1 = vadd.f32 %v5529_v62, %v4752_v57  ;;  %v5571_v2 = vadd.f32 %v5570_v63, %v4760_v58  ;;  %v6362_v57 = vld [vmem:[#allocation31 + $0xc0] sm:$0xff]  ;;  %v10339_v62 = vcombine.low %v6370_v47, %v6374_v48  ;;  %v10341_v63 = vcombine.low %v6371_v49, %v6375_v50 }
 0xf02   :  { %v5531_v6 = vpop.f32.mrf.mxu1  ;;  %v5572_v7 = vpop.f32.mrf.mxu0  ;;  %v6366_v58 = vld [vmem:[#allocation31 + $0xe0] sm:$0xff] }
 0xf03   :  { %v5532_v36 = vadd.f32 %v5531_v6, %v4756_v60  ;;  %v5573_v31 = vadd.f32 %v5572_v7, %v4764_v61  ;;  %v5581_v8 = vmax.f32 %v5530_v1, 0.0  ;;  %v5583_v35 = vmax.f32 %v5571_v2, 0.0  ;;  %v6363_v60 = vld [vmem:[#allocation31 + $0xc8] sm:$0xff]  ;;  %v6354_v6 = vld [vmem:[#allocation31 + $0x80] sm:$0xff] }
 0xf04   :  { %v5533_v59 = vpop.f32.mrf.mxu1  ;;  %v5574_v9 = vpop.f32.mrf.mxu0  ;;  %v6367_v61 = vld [vmem:[#allocation31 + $0xe8] sm:$0xff]  ;;  %v10332_v1 = vcombine.high %v6362_v57, %v6366_v58  ;;  %v6358_v7 = vld [vmem:[#allocation31 + $0xa0] sm:$0xff] }
 0xf05   :  { %v5582_v40 = vmax.f32 %v5532_v36, 0.0  ;;  %v5584_v10 = vmax.f32 %v5573_v31, 0.0  ;;  %v5589_v12 = vpack.c.bf16 %v5581_v8, %v5581_v8  ;;  %v5591_v56 = vpack.c.bf16 %v5583_v35, %v5583_v35  ;;  %v6355_v36 = vld [vmem:[#allocation31 + $0x88] sm:$0xff] }
 0xf06   :  { %v5534_v0 = vpop.f32.mrf.mxu1  ;;  %v5575_v23 = vpop.f32.mrf.mxu0  ;;  %v10334_v2 = vcombine.high %v6363_v60, %v6367_v61  ;;  %v6359_v31 = vld [vmem:[#allocation31 + $0xa8] sm:$0xff]  ;;  %v10331_v8 = vcombine.low %v6362_v57, %v6366_v58  ;;  %v10333_v35 = vcombine.low %v6363_v60, %v6367_v61  ;;  %v10324_v59 = vcombine.high %v6354_v6, %v6358_v7 }
 0xf07   :  { %v5590_v11 = vpack.c.bf16 %v5582_v40, %v5582_v40  ;;  %v5592_v20 = vpack.c.bf16 %v5584_v10, %v5584_v10  ;;  %v10326_v9 = vcombine.high %v6355_v36, %v6359_v31  ;;  %v10323_v40 = vcombine.low %v6354_v6, %v6358_v7  ;;  %v6346_v0 = vld [vmem:[#allocation31 + $0x40] sm:$0xff] }
 0xf08   :  { %v10325_v10 = vcombine.low %v6355_v36, %v6359_v31  ;;  %v6350_v23 = vld [vmem:[#allocation31 + $0x60] sm:$0xff]  ;;  %v6388_v36 = vld [vmem:[#allocation31 + $0x190] sm:$0xff] }
 0xf09   :  { %6224 = vmatprep.mubr.bf16.mxu1 %v5590_v11  ;;  %6264 = vmatprep.mubr.bf16.mxu0 %v5592_v20  ;;  %v6347_v11 = vld [vmem:[#allocation31 + $0x48] sm:$0xff]  ;;  %v10316_v20 = vcombine.high %v6346_v0, %v6350_v23 }
 0xf0a   :  { %6225 = vmatmul.mubr.bf16.vlgmr.msra.gmra.mxu1 %v5589_v12  ;;  %6265 = vmatmul.mubr.bf16.vlgmr.msra.gmra.mxu0 %v5591_v56  ;;  %v6351_v12 = vld [vmem:[#allocation31 + $0x68] sm:$0xff]  ;;  %v10315_v56 = vcombine.low %v6346_v0, %v6350_v23 }
 0xf0b   :  { %6754 = vmatprep.mubr.bf16.mxu1 %v12477_v34  ;;  %6795 = vmatprep.mubr.bf16.mxu0 %v12477_v34  ;;  %v10317_v13 = vcombine.low %v6347_v11, %v6351_v12  ;;  %v10318_v14 = vcombine.high %v6347_v11, %v6351_v12  ;;  %v6380_v11 = vld [vmem:[#allocation31 + $0x150] sm:$0xff]  ;;  %v6381_v12 = vld [vmem:[#allocation31 + $0x158] sm:$0xff] }
 0xf0c   :  { %6723 = vmatpush1.bf16.msra.mxu1 %v10363_v15  ;;  %6764 = vmatpush1.bf16.msra.mxu0 %v10365_v24  ;;  %v6342_v15 = vld [vmem:[#allocation31 + $0x20] sm:$0xff]  ;;  %v10309_v24 = vcombine.low %v6339_v16, %v6343_v19  ;;  %v6372_v16 = vld [vmem:[#allocation31 + $0x110] sm:$0xff]  ;;  %v6373_v19 = vld [vmem:[#allocation31 + $0x118] sm:$0xff] }
 0xf0d   :  { %6724 = vmatprep.subr.bf16.mxu1 %v10356_v4  ;;  %6765 = vmatprep.subr.bf16.mxu0 %v10358_v29  ;;  %v10308_v18 = vcombine.high %v6338_v17, %v6342_v15  ;;  %v10307_v22 = vcombine.low %v6338_v17, %v6342_v15  ;;  %v6396_v4 = vld [vmem:[#allocation31 + $0x1d0] sm:$0xff] }
 0xf0e   :  { %v10367_v28 = vcombine.low %v6396_v4, %v6400_v26  ;;  %v10368_v29 = vcombine.high %v6396_v4, %v6400_v26 }
 0xf10   :  { %6725 = vmatpush1.bf16.msra.mxu1 %v10355_v41  ;;  %6766 = vmatpush1.bf16.msra.mxu0 %v10357_v44 }
 0xf11   :  { %6726 = vmatprep.subr.bf16.mxu1 %v10348_v45  ;;  %6767 = vmatprep.subr.bf16.mxu0 %v10350_v46 }
 0xf14   :  { %6727 = vmatpush1.bf16.msra.mxu1 %v10347_v51  ;;  %6768 = vmatpush1.bf16.msra.mxu0 %v10349_v52  ;;  %v10242_v52 = vld [vmem:[#allocation28] ss:$0 sm:$0xff] }
 0xf15   :  { %6728 = vmatprep.subr.bf16.mxu1 %v10340_v55  ;;  %6769 = vmatprep.subr.bf16.mxu0 %v10342_v21 }
 0xf18   :  { %6729 = vmatpush1.bf16.msra.mxu1 %v10339_v62  ;;  %6770 = vmatpush1.bf16.msra.mxu0 %v10341_v63 }
 0xf19   :  { %6730 = vmatprep.subr.bf16.mxu1 %v10332_v1  ;;  %6771 = vmatprep.subr.bf16.mxu0 %v10334_v2 }
 0xf1c   :  { %6731 = vmatpush1.bf16.msra.mxu1 %v10331_v8  ;;  %6772 = vmatpush1.bf16.msra.mxu0 %v10333_v35  ;;  %v6392_v35 = vld [vmem:[#allocation31 + $0x1b0] sm:$0xff] }
 0xf1d   :  { %6732 = vmatprep.subr.bf16.mxu1 %v10324_v59  ;;  %6773 = vmatprep.subr.bf16.mxu0 %v10326_v9  ;;  %v6389_v59 = vld [vmem:[#allocation31 + $0x198] sm:$0xff]  ;;  %v10360_v0 = vcombine.high %v6388_v36, %v6392_v35 }
 0xf1e   :  { %v6393_v9 = vld [vmem:[#allocation31 + $0x1b8] sm:$0xff] }
 0xf1f   :  { %v10362_v23 = vcombine.high %v6389_v59, %v6393_v9 }
 0xf20   :  { %6733 = vmatpush1.bf16.msra.mxu1 %v10323_v40  ;;  %6774 = vmatpush1.bf16.msra.mxu0 %v10325_v10 }
 0xf21   :  { %6734 = vmatprep.subr.bf16.mxu1 %v10316_v20  ;;  %6775 = vmatprep.subr.bf16.mxu0 %v10318_v14  ;;  %v6384_v20 = vld [vmem:[#allocation31 + $0x170] sm:$0xff]  ;;  %v10361_v14 = vcombine.low %v6389_v59, %v6393_v9  ;;  %v6329_v59 = vld [vmem:[#allocation30 + $0x1c0] sm:$0xff] }
 0xf22   :  { %v10352_v17 = vcombine.high %v6380_v11, %v6384_v20  ;;  %v6333_v9 = vld [vmem:[#allocation30 + $0x1e0] sm:$0xff] }
 0xf24   :  { %6735 = vmatpush1.bf16.msra.mxu1 %v10315_v56  ;;  %6776 = vmatpush1.bf16.msra.mxu0 %v10317_v13  ;;  %v6385_v56 = vld [vmem:[#allocation31 + $0x178] sm:$0xff]  ;;  %v10359_v13 = vcombine.low %v6388_v36, %v6392_v35 }
 0xf25   :  { %6736 = vmatprep.subr.bf16.mxu1 %v10308_v18  ;;  %6777 = vmatprep.subr.bf16.mxu0 %v10310_v25  ;;  %v10354_v15 = vcombine.high %v6381_v12, %v6385_v56  ;;  %v6376_v18 = vld [vmem:[#allocation31 + $0x130] sm:$0xff]  ;;  %v10353_v25 = vcombine.low %v6381_v12, %v6385_v56  ;;  %v6321_v56 = vld [vmem:[#allocation30 + $0x180] sm:$0xff] }
 0xf26   :  { %v10344_v4 = vcombine.high %v6372_v16, %v6376_v18 }
 0xf28   :  { %6737 = vmatpush1.bf16.msra.mxu1 %v10307_v22  ;;  %6778 = vmatpush1.bf16.msra.mxu0 %v10309_v24  ;;  %v6377_v22 = vld [vmem:[#allocation31 + $0x138] sm:$0xff]  ;;  %v10351_v24 = vcombine.low %v6380_v11, %v6384_v20  ;;  %v10428_v20 = vcombine.high %v6329_v59, %v6333_v9 }
 0xf29   :  { %6804 = vmatprep.subr.bf16.mxu1 %v10368_v29  ;;  %6845 = vmatprep.subr.bf16.mxu0 %v10370_v39  ;;  %v10346_v26 = vcombine.high %v6373_v19, %v6377_v22  ;;  %v6365_v29 = vld [vmem:[#allocation31 + $0xd8] sm:$0xff]  ;;  %v10345_v39 = vcombine.low %v6373_v19, %v6377_v22  ;;  %v6313_v22 = vld [vmem:[#allocation30 + $0x140] sm:$0xff] }
 0xf8a   :  { %v10902_v41 = vpop.f32.mrf.mxu1  ;;  %v10924_v44 = vpop.f32.mrf.mxu0 }
 0xf8c   :  { %v10903_v45 = vpop.f32.mrf.mxu1  ;;  %v10925_v46 = vpop.f32.mrf.mxu0 }
 0xf8d   :  { %v10904_v51 = vadd.f32 %v10903_v45, %v10902_v41  ;;  %v10926_v58 = vadd.f32 %v10925_v46, %v10924_v44  ;;  %v10338_v44 = vcombine.high %v6365_v29, %v6369_v30  ;;  %v6356_v45 = vld [vmem:[#allocation31 + $0x90] sm:$0xff] }
 0xf8e   :  { %v10905_v47 = vpop.f32.mrf.mxu1  ;;  %v10927_v48 = vpop.f32.mrf.mxu0  ;;  %v6360_v46 = vld [vmem:[#allocation31 + $0xb0] sm:$0xff] }
 0xf8f   :  { %v6147_v55 = vadd.f32 %v10904_v51, %v10242_v52  ;;  %v6357_v47 = vld [vmem:[#allocation31 + $0x98] sm:$0xff]  ;;  %v10328_v51 = vcombine.high %v6356_v45, %v6360_v46 }
 0xf90   :  { %v10906_v49 = vpop.f32.mrf.mxu1  ;;  %v10928_v50 = vpop.f32.mrf.mxu0  ;;  %v6361_v48 = vld [vmem:[#allocation31 + $0xb8] sm:$0xff] }
 0xf91   :  { %v6187_v62 = vadd.f32 %v10926_v58, %v6147_v55  ;;  %v10337_v50 = vcombine.low %v6365_v29, %v6369_v30  ;;  %v10330_v52 = vcombine.high %v6357_v47, %v6361_v48  ;;  %v6348_v55 = vld [vmem:[#allocation31 + $0x50] sm:$0xff]  ;;  %v6353_v58 = vld [vmem:[#allocation31 + $0x78] sm:$0xff]  ;;  %v6305_v30 = vld [vmem:[#allocation30 + $0x100] sm:$0xff] }
 0xfca   :  { %v10946_v21 = vpop.f32.mrf.mxu1  ;;  %v10968_v57 = vpop.f32.mrf.mxu0 }
 0xfcc   :  { %v10947_v60 = vpop.f32.mrf.mxu1  ;;  %v10969_v61 = vpop.f32.mrf.mxu0 }
 0xfcd   :  { %v10948_v63 = vadd.f32 %v10947_v60, %v10946_v21  ;;  %v10970_v7 = vadd.f32 %v10969_v61, %v10968_v57  ;;  %v6352_v21 = vld [vmem:[#allocation31 + $0x70] sm:$0xff]  ;;  %v6349_v57 = vld [vmem:[#allocation31 + $0x58] sm:$0xff]  ;;  %v10327_v60 = vcombine.low %v6356_v45, %v6360_v46  ;;  %v10329_v61 = vcombine.low %v6357_v47, %v6361_v48  ;;  %v6297_v47 = vld [vmem:[#allocation30 + $0xc0] sm:$0xff] }
 0xfce   :  { %v10949_v1 = vpop.f32.mrf.mxu1  ;;  %v10971_v2 = vpop.f32.mrf.mxu0  ;;  %v10319_v36 = vcombine.low %v6348_v55, %v6352_v21  ;;  %v6301_v48 = vld [vmem:[#allocation30 + $0xe0] sm:$0xff] }
 0xfcf   :  { %v6227_v6 = vadd.f32 %v10948_v63, %v6187_v62  ;;  %v10320_v62 = vcombine.high %v6348_v55, %v6352_v21  ;;  %v10322_v63 = vcombine.high %v6349_v57, %v6353_v58  ;;  %v6340_v1 = vld [vmem:[#allocation31 + $0x10] sm:$0xff]  ;;  %v10396_v55 = vcombine.high %v6297_v47, %v6301_v48 }
 0xfd0   :  { %v10950_v31 = vpop.f32.mrf.mxu1  ;;  %v10972_v8 = vpop.f32.mrf.mxu0  ;;  %v6344_v2 = vld [vmem:[#allocation31 + $0x30] sm:$0xff] }
 0xfd1   :  { %v6267_v40 = vadd.f32 %v10970_v7, %v6227_v6  ;;  %v6341_v6 = vld [vmem:[#allocation31 + $0x18] sm:$0xff]  ;;  %v10321_v31 = vcombine.low %v6349_v57, %v6353_v58  ;;  %v10312_v8 = vcombine.high %v6340_v1, %v6344_v2  ;;  %v6289_v57 = vld [vmem:[#allocation30 + $0x80] sm:$0xff] }
 0xfd2   :  { %v6345_v7 = vld [vmem:[#allocation31 + $0x38] sm:$0xff]  ;;  %v6293_v58 = vld [vmem:[#allocation30 + $0xa0] sm:$0xff] }
 0xfd3   :  { %v12934_v10 = vpack.c.bf16 %v6267_v40, %v6267_v40  ;;  %v10314_v35 = vcombine.high %v6341_v6, %v6345_v7  ;;  %v6330_v40 = vld [vmem:[#allocation30 + $0x1c8] sm:$0xff]  ;;  %v10313_v11 = vcombine.low %v6341_v6, %v6345_v7  ;;  %v6281_v6 = vld [vmem:[#allocation30 + $0x40] sm:$0xff] }
 0xfd4   :  { %v6285_v7 = vld [vmem:[#allocation30 + $0x60] sm:$0xff] }
 0xfd5   :  { %6755 = vmatmul.mubr.bf16.vlgmr.msra.gmra.mxu1 %v12934_v10  ;;  %6796 = vmatmul.mubr.bf16.vlgmr.msra.gmra.mxu0 %v12934_v10 }
 0xfd6   :  { %6805 = vmatpush1.bf16.msra.mxu1 %v10367_v28  ;;  %6846 = vmatpush1.bf16.msra.mxu0 %v10369_v32  ;;  %v6368_v28 = vld [vmem:[#allocation31 + $0xf0] sm:$0xff]  ;;  %v10343_v32 = vcombine.low %v6372_v16, %v6376_v18 }
 0xfd7   :  { %6806 = vmatprep.subr.bf16.mxu1 %v10360_v0  ;;  %6847 = vmatprep.subr.bf16.mxu0 %v10362_v23  ;;  %v10336_v41 = vcombine.high %v6364_v27, %v6368_v28  ;;  %v10335_v49 = vcombine.low %v6364_v27, %v6368_v28  ;;  %v6334_v0 = vld [vmem:[#allocation30 + $0x1e8] sm:$0xff]  ;;  %v10311_v23 = vcombine.low %v6340_v1, %v6344_v2 }
 0xfd8   :  { %6836 = vmatprep.mubr.bf16.mxu1 %v12477_v34  ;;  %6877 = vmatprep.mubr.bf16.mxu0 %v12477_v34  ;;  %v10430_v12 = vcombine.high %v6330_v40, %v6334_v0  ;;  %v10429_v16 = vcombine.low %v6330_v40, %v6334_v0  ;;  %v10388_v1 = vcombine.high %v6289_v57, %v6293_v58  ;;  %v6273_v40 = vld [vmem:[#allocation30] sm:$0xff] }
 0xfd9   :  { %v6277_v0 = vld [vmem:[#allocation30 + $0x20] sm:$0xff] }
 0xfda   :  { %6807 = vmatpush1.bf16.msra.mxu1 %v10359_v13  ;;  %6848 = vmatpush1.bf16.msra.mxu0 %v10361_v14  ;;  %v6325_v13 = vld [vmem:[#allocation30 + $0x1a0] sm:$0xff]  ;;  %v6322_v14 = vld [vmem:[#allocation30 + $0x188] sm:$0xff] }
 0xfdb   :  { %6808 = vmatprep.subr.bf16.mxu1 %v10352_v17  ;;  %6849 = vmatprep.subr.bf16.mxu0 %v10354_v15  ;;  %v6326_v17 = vld [vmem:[#allocation30 + $0x1a8] sm:$0xff]  ;;  %v10427_v15 = vcombine.low %v6329_v59, %v6333_v9  ;;  %v10420_v18 = vcombine.high %v6321_v56, %v6325_v13  ;;  %v10380_v59 = vcombine.high %v6281_v6, %v6285_v7 }
 0xfdc   :  { %v10422_v19 = vcombine.high %v6322_v14, %v6326_v17  ;;  %v10421_v27 = vcombine.low %v6322_v14, %v6326_v17  ;;  %v6331_v14 = vld [vmem:[#allocation30 + $0x1d0] sm:$0xff] }
 0xfdd   :  { %v6335_v17 = vld [vmem:[#allocation30 + $0x1f0] sm:$0xff] }
 0xfde   :  { %6809 = vmatpush1.bf16.msra.mxu1 %v10351_v24  ;;  %6850 = vmatpush1.bf16.msra.mxu0 %v10353_v25  ;;  %v6317_v24 = vld [vmem:[#allocation30 + $0x160] sm:$0xff]  ;;  %v6314_v25 = vld [vmem:[#allocation30 + $0x148] sm:$0xff] }
 0xfdf   :  { %6810 = vmatprep.subr.bf16.mxu1 %v10344_v4  ;;  %6851 = vmatprep.subr.bf16.mxu0 %v10346_v26  ;;  %v6318_v4 = vld [vmem:[#allocation30 + $0x168] sm:$0xff]  ;;  %v10419_v26 = vcombine.low %v6321_v56, %v6325_v13  ;;  %v10412_v28 = vcombine.high %v6313_v22, %v6317_v24  ;;  %v10372_v56 = vcombine.high %v6273_v40, %v6277_v0 }
 0xfe0   :  { %v10414_v29 = vcombine.high %v6314_v25, %v6318_v4 }
 0xfe2   :  { %6811 = vmatpush1.bf16.msra.mxu1 %v10343_v32  ;;  %6852 = vmatpush1.bf16.msra.mxu0 %v10345_v39  ;;  %v6309_v32 = vld [vmem:[#allocation30 + $0x120] sm:$0xff]  ;;  %v6306_v39 = vld [vmem:[#allocation30 + $0x108] sm:$0xff] }
 0xfe3   :  { %6812 = vmatprep.subr.bf16.mxu1 %v10336_v41  ;;  %6853 = vmatprep.subr.bf16.mxu0 %v10338_v44  ;;  %v6310_v41 = vld [vmem:[#allocation30 + $0x128] sm:$0xff]  ;;  %v10411_v44 = vcombine.low %v6313_v22, %v6317_v24  ;;  %v10404_v45 = vcombine.high %v6305_v30, %v6309_v32  ;;  %v10432_v22 = vcombine.high %v6331_v14, %v6335_v17 }
 0xfe4   :  { %v10406_v46 = vcombine.high %v6306_v39, %v6310_v41 }
 0xfe6   :  { %6813 = vmatpush1.bf16.msra.mxu1 %v10335_v49  ;;  %6854 = vmatpush1.bf16.msra.mxu0 %v10337_v50  ;;  %v6298_v49 = vld [vmem:[#allocation30 + $0xc8] sm:$0xff] }
 0xfe7   :  { %6814 = vmatprep.subr.bf16.mxu1 %v10328_v51  ;;  %6855 = vmatprep.subr.bf16.mxu0 %v10330_v52  ;;  %v6302_v50 = vld [vmem:[#allocation30 + $0xe8] sm:$0xff]  ;;  %v10403_v51 = vcombine.low %v6305_v30, %v6309_v32  ;;  %v10405_v52 = vcombine.low %v6306_v39, %v6310_v41  ;;  %v12946_v30 = vpack.c.bf16 %v12873_v42, %v12873_v42  ;;  %v6315_v41 = vld [vmem:[#allocation30 + $0x150] sm:$0xff] }
 0xfe8   :  { %v10398_v21 = vcombine.high %v6298_v49, %v6302_v50 }
 0xfea   :  { %6815 = vmatpush1.bf16.msra.mxu1 %v10327_v60  ;;  %6856 = vmatpush1.bf16.msra.mxu0 %v10329_v61  ;;  %v6290_v60 = vld [vmem:[#allocation30 + $0x88] sm:$0xff] }
 0xfeb   :  { %6816 = vmatprep.subr.bf16.mxu1 %v10320_v62  ;;  %6857 = vmatprep.subr.bf16.mxu0 %v10322_v63  ;;  %v6294_v61 = vld [vmem:[#allocation30 + $0xa8] sm:$0xff]  ;;  %v10395_v62 = vcombine.low %v6297_v47, %v6301_v48  ;;  %v10397_v63 = vcombine.low %v6298_v49, %v6302_v50  ;;  %v6307_v49 = vld [vmem:[#allocation30 + $0x110] sm:$0xff] }
 0xfec   :  { %v10390_v2 = vcombine.high %v6290_v60, %v6294_v61  ;;  %v6311_v50 = vld [vmem:[#allocation30 + $0x130] sm:$0xff] }
 0xfee   :  { %6817 = vmatpush1.bf16.msra.mxu1 %v10319_v36  ;;  %6858 = vmatpush1.bf16.msra.mxu0 %v10321_v31  ;;  %v6282_v36 = vld [vmem:[#allocation30 + $0x48] sm:$0xff] }
 0xfef   :  { %6818 = vmatprep.subr.bf16.mxu1 %v10312_v8  ;;  %6859 = vmatprep.subr.bf16.mxu0 %v10314_v35  ;;  %v6286_v31 = vld [vmem:[#allocation30 + $0x68] sm:$0xff]  ;;  %v10387_v8 = vcombine.low %v6289_v57, %v6293_v58  ;;  %v10389_v35 = vcombine.low %v6290_v60, %v6294_v61  ;;  %v10408_v57 = vcombine.high %v6307_v49, %v6311_v50  ;;  %v6299_v60 = vld [vmem:[#allocation30 + $0xd0] sm:$0xff] }
 0xff0   :  { %v10382_v9 = vcombine.high %v6282_v36, %v6286_v31  ;;  %v6303_v61 = vld [vmem:[#allocation30 + $0xf0] sm:$0xff] }
 0xff2   :  { %6819 = vmatpush1.bf16.msra.mxu1 %v10311_v23  ;;  %6860 = vmatpush1.bf16.msra.mxu0 %v10313_v11  ;;  %v6274_v23 = vld [vmem:[#allocation30 + $0x8] sm:$0xff] }
 0xff3   :  { %7206 = vmatprep.subr.bf16.mxu1 %v10428_v20  ;;  %7247 = vmatprep.subr.bf16.mxu0 %v10430_v12  ;;  %v6278_v11 = vld [vmem:[#allocation30 + $0x28] sm:$0xff]  ;;  %v10379_v20 = vcombine.low %v6281_v6, %v6285_v7  ;;  %v10381_v12 = vcombine.low %v6282_v36, %v6286_v31  ;;  %v10400_v6 = vcombine.high %v6299_v60, %v6303_v61  ;;  %v6291_v7 = vld [vmem:[#allocation30 + $0x90] sm:$0xff]  ;;  %v6292_v31 = vld [vmem:[#allocation30 + $0x98] sm:$0xff] }
 0xff4   :  { %v10374_v13 = vcombine.high %v6274_v23, %v6278_v11  ;;  %v6295_v36 = vld [vmem:[#allocation30 + $0xb0] sm:$0xff] }
 0xff5   :  { %6837 = vmatmul.mubr.bf16.vlgmr.msra.gmra.mxu1 %v12934_v10  ;;  %6878 = vmatmul.mubr.bf16.vlgmr.msra.gmra.mxu0 %v12934_v10  ;;  %v10413_v10 = vcombine.low %v6314_v25, %v6318_v4  ;;  %v6323_v25 = vld [vmem:[#allocation30 + $0x190] sm:$0xff] }
 0xff6   :  { %7207 = vmatpush1.bf16.msra.mxu1 %v10427_v15  ;;  %7248 = vmatpush1.bf16.msra.mxu0 %v10429_v16  ;;  %v6332_v15 = vld [vmem:[#allocation30 + $0x1d8] sm:$0xff]  ;;  %v6327_v4 = vld [vmem:[#allocation30 + $0x1b0] sm:$0xff] }
 0xff7   :  { %7208 = vmatprep.subr.bf16.mxu1 %v10420_v18  ;;  %7249 = vmatprep.subr.bf16.mxu0 %v10422_v19  ;;  %v6336_v16 = vld [vmem:[#allocation30 + $0x1f8] sm:$0xff]  ;;  %v10371_v18 = vcombine.low %v6273_v40, %v6277_v0  ;;  %v10373_v19 = vcombine.low %v6274_v23, %v6278_v11  ;;  %v10424_v32 = vcombine.high %v6323_v25, %v6327_v4  ;;  %v6283_v0 = vld [vmem:[#allocation30 + $0x50] sm:$0xff] }
 0xff8   :  { %7238 = vmatprep.mubr.bf16.mxu1 %v12477_v34  ;;  %7279 = vmatprep.mubr.bf16.mxu0 %v12477_v34  ;;  %v10434_v24 = vcombine.high %v6332_v15, %v6336_v16  ;;  %v6287_v23 = vld [vmem:[#allocation30 + $0x70] sm:$0xff]  ;;  %v6284_v11 = vld [vmem:[#allocation30 + $0x58] sm:$0xff] }
 0xffa   :  { %7209 = vmatpush1.bf16.msra.mxu1 %v10419_v26  ;;  %7250 = vmatpush1.bf16.msra.mxu0 %v10421_v27  ;;  %v6324_v26 = vld [vmem:[#allocation30 + $0x198] sm:$0xff] }
 0xffb   :  { %7210 = vmatprep.subr.bf16.mxu1 %v10412_v28  ;;  %7251 = vmatprep.subr.bf16.mxu0 %v10414_v29  ;;  %v6328_v27 = vld [vmem:[#allocation30 + $0x1b8] sm:$0xff]  ;;  %v10431_v28 = vcombine.low %v6331_v14, %v6335_v17  ;;  %v10433_v29 = vcombine.low %v6332_v15, %v6336_v16  ;;  %v6275_v17 = vld [vmem:[#allocation30 + $0x10] sm:$0xff] }
 0xffc   :  { %v10426_v39 = vcombine.high %v6324_v26, %v6328_v27  ;;  %v10425_v47 = vcombine.low %v6324_v26, %v6328_v27  ;;  %v6279_v15 = vld [vmem:[#allocation30 + $0x30] sm:$0xff]  ;;  %v6276_v16 = vld [vmem:[#allocation30 + $0x18] sm:$0xff] }
 0xffd   :  { %v11466_v27 = vld [vmem:[#allocation34 + $0xe4] ss:$16 sps:$4 sm:$0xff]  }
 0xffe   :  { %7211 = vmatpush1.bf16.msra.mxu1 %v10411_v44  ;;  %7252 = vmatpush1.bf16.msra.mxu0 %v10413_v10  ;;  %v6319_v44 = vld [vmem:[#allocation30 + $0x170] sm:$0xff]  ;;  %v6316_v10 = vld [vmem:[#allocation30 + $0x158] sm:$0xff] }
 0xfff   :  { %7212 = vmatprep.subr.bf16.mxu1 %v10404_v45  ;;  %7253 = vmatprep.subr.bf16.mxu0 %v10406_v46  ;;  %v6320_v45 = vld [vmem:[#allocation30 + $0x178] sm:$0xff]  ;;  %v10423_v46 = vcombine.low %v6323_v25, %v6327_v4  ;;  %v10416_v42 = vcombine.high %v6315_v41, %v6319_v44  ;;  %v10375_v4 = vcombine.low %v6275_v17, %v6279_v15 }
0x1000   :  { %v10418_v48 = vcombine.high %v6316_v10, %v6320_v45 }
0x1002   :  { %7213 = vmatpush1.bf16.msra.mxu1 %v10403_v51  ;;  %7254 = vmatpush1.bf16.msra.mxu0 %v10405_v52  ;;  %v6308_v51 = vld [vmem:[#allocation30 + $0x118] sm:$0xff] }
0x1003   :  { %7214 = vmatprep.subr.bf16.mxu1 %v10396_v55  ;;  %7255 = vmatprep.subr.bf16.mxu0 %v10398_v21  ;;  %v6312_v52 = vld [vmem:[#allocation30 + $0x138] sm:$0xff]  ;;  %v10415_v55 = vcombine.low %v6315_v41, %v6319_v44  ;;  %v10417_v21 = vcombine.low %v6316_v10, %v6320_v45 }
0x1004   :  { %v10410_v58 = vcombine.high %v6308_v51, %v6312_v52  ;;  %v11475_v41 = vld [vmem:[#allocation34 + $0x2c4] ss:$16 sps:$4 sm:$0xff]   ;;  %v11470_v44 = vld [vmem:[#allocation34 + $0xc0] ss:$16 sps:$4 sm:$0xff]  }
0x1005   :  { %v11473_v10 = vld [vmem:[#allocation34 + $0x2c0] ss:$16 sps:$4 sm:$0xff]   ;;  %v11478_v45 = vld [vmem:[#allocation34 + $0xa4] ss:$16 sps:$4 sm:$0xff]  }
0x1006   :  { %7215 = vmatpush1.bf16.msra.mxu1 %v10395_v62  ;;  %7256 = vmatpush1.bf16.msra.mxu0 %v10397_v63  ;;  %v6300_v62 = vld [vmem:[#allocation30 + $0xd8] sm:$0xff] }
0x1007   :  { %7216 = vmatprep.subr.bf16.mxu1 %v10388_v1  ;;  %7257 = vmatprep.subr.bf16.mxu0 %v10390_v2  ;;  %v6304_v63 = vld [vmem:[#allocation30 + $0xf8] sm:$0xff]  ;;  %v10407_v1 = vcombine.low %v6307_v49, %v6311_v50  ;;  %v10409_v2 = vcombine.low %v6308_v51, %v6312_v52 }
0x1008   :  { %v11487_v49 = vld [vmem:[#allocation34 + $0x284] ss:$16 sps:$4 sm:$0xff]   ;;  %v11482_v50 = vld [vmem:[#allocation34 + $0x80] ss:$16 sps:$4 sm:$0xff]  }
0x1009   :  { %v11490_v51 = vld [vmem:[#allocation34 + $0x64] ss:$16 sps:$4 sm:$0xff]  }
0x100a   :  { %7217 = vmatpush1.bf16.msra.mxu1 %v10387_v8  ;;  %7258 = vmatpush1.bf16.msra.mxu0 %v10389_v35  ;;  %v6296_v8 = vld [vmem:[#allocation30 + $0xb8] sm:$0xff]  ;;  %v10399_v35 = vcombine.low %v6299_v60, %v6303_v61 }
0x100b   :  { %7218 = vmatprep.subr.bf16.mxu1 %v10380_v59  ;;  %7259 = vmatprep.subr.bf16.mxu0 %v10382_v9  ;;  %v10401_v59 = vcombine.low %v6300_v62, %v6304_v63  ;;  %v10392_v9 = vcombine.high %v6291_v7, %v6295_v36  ;;  %v10394_v40 = vcombine.high %v6292_v31, %v6296_v8  ;;  %v11493_v52 = vld [vmem:[#allocation34 + $0x264] ss:$16 sps:$4 sm:$0xff]   ;;  %v11494_v60 = vld [vmem:[#allocation34 + $0x40] ss:$16 sps:$4 sm:$0xff]  }
0x100c   :  { %v11497_v61 = vld [vmem:[#allocation34 + $0x240] ss:$16 sps:$4 sm:$0xff]  }
0x100e   :  { %7219 = vmatpush1.bf16.msra.mxu1 %v10379_v20  ;;  %7260 = vmatpush1.bf16.msra.mxu0 %v10381_v12  ;;  %v6288_v20 = vld [vmem:[#allocation30 + $0x78] sm:$0xff]  ;;  %v10391_v12 = vcombine.low %v6291_v7, %v6295_v36 }
0x100f   :  { %7220 = vmatprep.subr.bf16.mxu1 %v10372_v56  ;;  %7261 = vmatprep.subr.bf16.mxu0 %v10374_v13  ;;  %v10393_v56 = vcombine.low %v6292_v31, %v6296_v8  ;;  %v10384_v13 = vcombine.high %v6283_v0, %v6287_v23  ;;  %v10386_v14 = vcombine.high %v6284_v11, %v6288_v20  ;;  %v11506_v7 = vld [vmem:[#allocation34] ss:$16 sps:$4 sm:$0xff]   ;;  %v11514_v31 = vld [vmem:[#allocation34 + $0x1e4] ss:$16 sps:$4 sm:$0xff]  }
0x1010   :  { %v11509_v36 = vld [vmem:[#allocation34 + $0x200] ss:$16 sps:$4 sm:$0xff]   ;;  %v11517_v8 = vld [vmem:[#allocation34 + $0x3e4] ss:$16 sps:$4 sm:$0xff]  }
0x1012   :  { %7221 = vmatpush1.bf16.msra.mxu1 %v10371_v18  ;;  %7262 = vmatpush1.bf16.msra.mxu0 %v10373_v19  ;;  %v6280_v18 = vld [vmem:[#allocation30 + $0x38] sm:$0xff]  ;;  %v10383_v19 = vcombine.low %v6283_v0, %v6287_v23 }
0x1013   :  { %7288 = vmatprep.subr.bf16.mxu1 %v10432_v22  ;;  %7329 = vmatprep.subr.bf16.mxu0 %v10434_v24  ;;  %v10385_v22 = vcombine.low %v6284_v11, %v6288_v20  ;;  %v10376_v24 = vcombine.high %v6275_v17, %v6279_v15  ;;  %v10378_v25 = vcombine.high %v6276_v16, %v6280_v18  ;;  %v11518_v0 = vld [vmem:[#allocation34 + $0x1c0] ss:$16 sps:$4 sm:$0xff]   ;;  %v11526_v11 = vld [vmem:[#allocation34 + $0x1a4] ss:$16 sps:$4 sm:$0xff]  }
0x1014   :  { %v10377_v26 = vcombine.low %v6276_v16, %v6280_v18  ;;  %v11521_v23 = vld [vmem:[#allocation34 + $0x3c0] ss:$16 sps:$4 sm:$0xff]   ;;  %v11529_v20 = vld [vmem:[#allocation34 + $0x3a4] ss:$16 sps:$4 sm:$0xff]  }
0x1015   :  { %7239 = vmatmul.mubr.bf16.vlgmr.msra.gmra.mxu1 %v12946_v30  ;;  %7280 = vmatmul.mubr.bf16.vlgmr.msra.gmra.mxu0 %v12946_v30  ;;  %v11530_v17 = vld [vmem:[#allocation34 + $0x180] ss:$16 sps:$4 sm:$0xff]   ;;  %v11538_v16 = vld [vmem:[#allocation34 + $0x164] ss:$16 sps:$4 sm:$0xff]  }
0x1016   :  { %7289 = vmatpush1.bf16.msra.mxu1 %v10431_v28  ;;  %7330 = vmatpush1.bf16.msra.mxu0 %v10433_v29  ;;  %v11469_v28 = vld [vmem:[#allocation34 + $0x2e4] ss:$16 sps:$4 sm:$0xff]   ;;  %v11464_v29 = vld [vmem:[#allocation34 + $0xe0] ss:$16 sps:$4 sm:$0xff]  }
0x1017   :  { %7290 = vmatprep.subr.bf16.mxu1 %v10424_v32  ;;  %7331 = vmatprep.subr.bf16.mxu0 %v10426_v39  ;;  %v11467_v32 = vld [vmem:[#allocation34 + $0x2e0] ss:$16 sps:$4 sm:$0xff]   ;;  %v11472_v39 = vld [vmem:[#allocation34 + $0xc4] ss:$16 sps:$4 sm:$0xff]  }
0x1018   :  { %7320 = vmatprep.mubr.bf16.mxu1 %v12477_v34  ;;  %7361 = vmatprep.mubr.bf16.mxu0 %v12477_v34  ;;  %v10402_v34 = vcombine.high %v6300_v62, %v6304_v63  ;;  %v11502_v62 = vld [vmem:[#allocation34 + $0x24] ss:$16 sps:$4 sm:$0xff]   ;;  %v11533_v15 = vld [vmem:[#allocation34 + $0x380] ss:$16 sps:$4 sm:$0xff]  }
0x1019   :  { %v11505_v63 = vld [vmem:[#allocation34 + $0x224] ss:$16 sps:$4 sm:$0xff]  }
0x101a   :  { %7291 = vmatpush1.bf16.msra.mxu1 %v10423_v46  ;;  %7332 = vmatpush1.bf16.msra.mxu0 %v10425_v47  ;;  %v11481_v46 = vld [vmem:[#allocation34 + $0x2a4] ss:$16 sps:$4 sm:$0xff]   ;;  %v11476_v47 = vld [vmem:[#allocation34 + $0xa0] ss:$16 sps:$4 sm:$0xff]  }
0x101b   :  { %7292 = vmatprep.subr.bf16.mxu1 %v10416_v42  ;;  %7333 = vmatprep.subr.bf16.mxu0 %v10418_v48  ;;  %v11479_v42 = vld [vmem:[#allocation34 + $0x2a0] ss:$16 sps:$4 sm:$0xff]   ;;  %v11484_v48 = vld [vmem:[#allocation34 + $0x84] ss:$16 sps:$4 sm:$0xff]  }
0x101c   :  { %v11541_v18 = vld [vmem:[#allocation34 + $0x364] ss:$16 sps:$4 sm:$0xff]  }
0x101e   :  { %7293 = vmatpush1.bf16.msra.mxu1 %v10415_v55  ;;  %7334 = vmatpush1.bf16.msra.mxu0 %v10417_v21  ;;  %v11488_v55 = vld [vmem:[#allocation34 + $0x60] ss:$16 sps:$4 sm:$0xff]  }
0x101f   :  { %7294 = vmatprep.subr.bf16.mxu1 %v10408_v57  ;;  %7335 = vmatprep.subr.bf16.mxu0 %v10410_v58  ;;  %v11491_v21 = vld [vmem:[#allocation34 + $0x260] ss:$16 sps:$4 sm:$0xff]   ;;  %v11496_v57 = vld [vmem:[#allocation34 + $0x44] ss:$16 sps:$4 sm:$0xff]  }
0x1020   :  { %v11499_v58 = vld [vmem:[#allocation34 + $0x244] ss:$16 sps:$4 sm:$0xff]  }
0x1022   :  { %7295 = vmatpush1.bf16.msra.mxu1 %v10407_v1  ;;  %7336 = vmatpush1.bf16.msra.mxu0 %v10409_v2  ;;  %v11500_v1 = vld [vmem:[#allocation34 + $0x20] ss:$16 sps:$4 sm:$0xff]  }
0x1023   :  { %7296 = vmatprep.subr.bf16.mxu1 %v10400_v6  ;;  %7337 = vmatprep.subr.bf16.mxu0 %v10402_v34  ;;  %v11503_v2 = vld [vmem:[#allocation34 + $0x220] ss:$16 sps:$4 sm:$0xff]   ;;  %v11508_v6 = vld [vmem:[#allocation34 + $0x4] ss:$16 sps:$4 sm:$0xff]  }
0x1024   :  { %v11511_v34 = vld [vmem:[#allocation34 + $0x204] ss:$16 sps:$4 sm:$0xff]  }
0x1026   :  { %7297 = vmatpush1.bf16.msra.mxu1 %v10399_v35  ;;  %7338 = vmatpush1.bf16.msra.mxu0 %v10401_v59  ;;  %v11512_v35 = vld [vmem:[#allocation34 + $0x1e0] ss:$16 sps:$4 sm:$0xff]  }
0x1027   :  { %7298 = vmatprep.subr.bf16.mxu1 %v10392_v9  ;;  %7339 = vmatprep.subr.bf16.mxu0 %v10394_v40  ;;  %v11515_v59 = vld [vmem:[#allocation34 + $0x3e0] ss:$16 sps:$4 sm:$0xff]   ;;  %v11520_v9 = vld [vmem:[#allocation34 + $0x1c4] ss:$16 sps:$4 sm:$0xff]  }
0x1028   :  { %v11523_v40 = vld [vmem:[#allocation34 + $0x3c4] ss:$16 sps:$4 sm:$0xff]  }
0x102a   :  { %7299 = vmatpush1.bf16.msra.mxu1 %v10391_v12  ;;  %7340 = vmatpush1.bf16.msra.mxu0 %v10393_v56  ;;  %v11524_v12 = vld [vmem:[#allocation34 + $0x1a0] ss:$16 sps:$4 sm:$0xff]  }
0x102b   :  { %7300 = vmatprep.subr.bf16.mxu1 %v10384_v13  ;;  %7341 = vmatprep.subr.bf16.mxu0 %v10386_v14  ;;  %v11527_v56 = vld [vmem:[#allocation34 + $0x3a0] ss:$16 sps:$4 sm:$0xff]   ;;  %v11532_v13 = vld [vmem:[#allocation34 + $0x184] ss:$16 sps:$4 sm:$0xff]  }
0x102c   :  { %v11535_v14 = vld [vmem:[#allocation34 + $0x384] ss:$16 sps:$4 sm:$0xff]  }
0x102e   :  { %7301 = vmatpush1.bf16.msra.mxu1 %v10383_v19  ;;  %7342 = vmatpush1.bf16.msra.mxu0 %v10385_v22  ;;  %v11536_v19 = vld [vmem:[#allocation34 + $0x160] ss:$16 sps:$4 sm:$0xff]  }
0x102f   :  { %7302 = vmatprep.subr.bf16.mxu1 %v10376_v24  ;;  %7343 = vmatprep.subr.bf16.mxu0 %v10378_v25  ;;  %v11539_v22 = vld [vmem:[#allocation34 + $0x360] ss:$16 sps:$4 sm:$0xff]   ;;  %v11544_v24 = vld [vmem:[#allocation34 + $0x144] ss:$16 sps:$4 sm:$0xff]  }
0x1030   :  { %v11547_v25 = vld [vmem:[#allocation34 + $0x344] ss:$16 sps:$4 sm:$0xff]  }
0x1032   :  { %7303 = vmatpush1.bf16.msra.mxu1 %v10375_v4  ;;  %7344 = vmatpush1.bf16.msra.mxu0 %v10377_v26  ;;  %v11542_v4 = vld [vmem:[#allocation34 + $0x140] ss:$16 sps:$4 sm:$0xff]  }
0x1033   :  { %8994 = vmatprep.subr.bf16.mxu1 %v11466_v27  ;;  %9035 = vmatprep.subr.bf16.mxu0 %v11469_v28  ;;  %v11545_v26 = vld [vmem:[#allocation34 + $0x340] ss:$16 sps:$4 sm:$0xff]   ;;  %v11550_v27 = vld [vmem:[#allocation34 + $0x124] ss:$16 sps:$4 sm:$0xff]  }
0x1034   :  { %v11553_v28 = vld [vmem:[#allocation34 + $0x324] ss:$16 sps:$4 sm:$0xff]  }
0x1035   :  { %7321 = vmatmul.mubr.bf16.vlgmr.msra.gmra.mxu1 %v12946_v30  ;;  %7362 = vmatmul.mubr.bf16.vlgmr.msra.gmra.mxu0 %v12946_v30  ;;  %v11485_v30 = vld [vmem:[#allocation34 + $0x280] ss:$16 sps:$4 sm:$0xff]  }
0x1036   :  { %8995 = vmatpush1.bf16.msra.mxu1 %v11464_v29  ;;  %9036 = vmatpush1.bf16.msra.mxu0 %v11467_v32  ;;  %v11548_v29 = vld [vmem:[#allocation34 + $0x120] ss:$16 sps:$4 sm:$0xff]  }
0x1037   :  { %8996 = vmatprep.subr.bf16.mxu1 %v11472_v39  ;;  %9037 = vmatprep.subr.bf16.mxu0 %v11475_v41  ;;  %v11551_v32 = vld [vmem:[#allocation34 + $0x320] ss:$16 sps:$4 sm:$0xff]   ;;  %v11556_v39 = vld [vmem:[#allocation34 + $0x104] ss:$16 sps:$4 sm:$0xff]  }
0x1038   :  { %v11559_v41 = vld [vmem:[#allocation34 + $0x304] ss:$16 sps:$4 sm:$0xff]  }
0x103a   :  { %8997 = vmatpush1.bf16.msra.mxu1 %v11470_v44  ;;  %9038 = vmatpush1.bf16.msra.mxu0 %v11473_v10  ;;  %v11554_v44 = vld [vmem:[#allocation34 + $0x100] ss:$16 sps:$4 sm:$0xff]  }
0x103b   :  { %8998 = vmatprep.subr.bf16.mxu1 %v11478_v45  ;;  %9039 = vmatprep.subr.bf16.mxu0 %v11481_v46  ;;  %v11557_v10 = vld [vmem:[#allocation34 + $0x300] ss:$16 sps:$4 sm:$0xff]   ;;  %v11562_v45 = vld [vmem:[#allocation34 + $0x4e4] ss:$16 sps:$4 sm:$0xff]  }
0x103c   :  { %v11565_v46 = vld [vmem:[#allocation34 + $0x6e4] ss:$16 sps:$4 sm:$0xff]  }
0x103e   :  { %8999 = vmatpush1.bf16.msra.mxu1 %v11476_v47  ;;  %9040 = vmatpush1.bf16.msra.mxu0 %v11479_v42 }
0x103f   :  { %9000 = vmatprep.subr.bf16.mxu1 %v11484_v48  ;;  %9041 = vmatprep.subr.bf16.mxu0 %v11487_v49 }
0x1042   :  { %9001 = vmatpush1.bf16.msra.mxu1 %v11482_v50  ;;  %9042 = vmatpush1.bf16.msra.mxu0 %v11485_v30 }
0x1043   :  { %9002 = vmatprep.subr.bf16.mxu1 %v11490_v51  ;;  %9043 = vmatprep.subr.bf16.mxu0 %v11493_v52 }
0x1046   :  { %9003 = vmatpush1.bf16.msra.mxu1 %v11488_v55  ;;  %9044 = vmatpush1.bf16.msra.mxu0 %v11491_v21 }
0x1047   :  { %9004 = vmatprep.subr.bf16.mxu1 %v11496_v57  ;;  %9045 = vmatprep.subr.bf16.mxu0 %v11499_v58 }
0x104a   :  { %9005 = vmatpush1.bf16.msra.mxu1 %v11494_v60  ;;  %9046 = vmatpush1.bf16.msra.mxu0 %v11497_v61 }
0x104b   :  { %9006 = vmatprep.subr.bf16.mxu1 %v11502_v62  ;;  %9047 = vmatprep.subr.bf16.mxu0 %v11505_v63 }
0x104e   :  { %9007 = vmatpush1.bf16.msra.mxu1 %v11500_v1  ;;  %9048 = vmatpush1.bf16.msra.mxu0 %v11503_v2  ;;  %v12962_v1 = vld [vmem:[#allocation33] sm:$0xff] }
0x104f   :  { %9008 = vmatprep.subr.bf16.mxu1 %v11508_v6  ;;  %9049 = vmatprep.subr.bf16.mxu0 %v11511_v34  ;;  %v7375_v2 = vrot.slane %v12962_v1, %v12755_v38  ;;  %v7383_v6 = vrot.slane %v12962_v1, %v12772_v33 }
0x1052   :  { %9009 = vmatpush1.bf16.msra.mxu1 %v11506_v7  ;;  %9050 = vmatpush1.bf16.msra.mxu0 %v11509_v36 }
0x1053   :  { %9010 = vmatprep.subr.bf16.mxu1 %v11514_v31  ;;  %9051 = vmatprep.subr.bf16.mxu0 %v11517_v8  ;;  %v7379_v8 = vrot.slane %v12962_v1, %v12752_v37 }
0x1056   :  { %9011 = vmatpush2.bf16.msra.mxu1 %v11512_v35  ;;  %9052 = vmatpush2.bf16.msra.mxu0 %v11515_v59  ;;  %v7387_v35 = vrot.slane %v12962_v1, %v12815_v43 }
0x1057   :  { %9012 = vmatprep.subr.bf16.mxu1 %v11520_v9  ;;  %9053 = vmatprep.subr.bf16.mxu0 %v11523_v40 }
0x105a   :  { %9013 = vmatpush2.bf16.msra.mxu1 %v11518_v0  ;;  %9054 = vmatpush2.bf16.msra.mxu0 %v11521_v23 }
0x105b   :  { %9014 = vmatprep.subr.bf16.mxu1 %v11526_v11  ;;  %9055 = vmatprep.subr.bf16.mxu0 %v11529_v20 }
0x105e   :  { %9015 = vmatpush2.bf16.msra.mxu1 %v11524_v12  ;;  %9056 = vmatpush2.bf16.msra.mxu0 %v11527_v56 }
0x105f   :  { %9016 = vmatprep.subr.bf16.mxu1 %v11532_v13  ;;  %9057 = vmatprep.subr.bf16.mxu0 %v11535_v14 }
0x1062   :  { %9017 = vmatpush2.bf16.msra.mxu1 %v11530_v17  ;;  %9058 = vmatpush2.bf16.msra.mxu0 %v11533_v15 }
0x1063   :  { %9018 = vmatprep.subr.bf16.mxu1 %v11538_v16  ;;  %9059 = vmatprep.subr.bf16.mxu0 %v11541_v18 }
0x1066   :  { %9019 = vmatpush2.bf16.msra.mxu1 %v11536_v19  ;;  %9060 = vmatpush2.bf16.msra.mxu0 %v11539_v22 }
0x1067   :  { %9020 = vmatprep.subr.bf16.mxu1 %v11544_v24  ;;  %9061 = vmatprep.subr.bf16.mxu0 %v11547_v25  ;;  %v11560_v25 = vld [vmem:[#allocation34 + $0x4e0] ss:$16 sps:$4 sm:$0xff]  }
0x106a   :  { %9021 = vmatpush2.bf16.msra.mxu1 %v11542_v4  ;;  %9062 = vmatpush2.bf16.msra.mxu0 %v11545_v26  ;;  %v11563_v4 = vld [vmem:[#allocation34 + $0x6e0] ss:$16 sps:$4 sm:$0xff]  }
0x106b   :  { %9022 = vmatprep.subr.bf16.mxu1 %v11550_v27  ;;  %9063 = vmatprep.subr.bf16.mxu0 %v11553_v28  ;;  %v11568_v28 = vld [vmem:[#allocation34 + $0x4c4] ss:$16 sps:$4 sm:$0xff]  }
0x106e   :  { %9023 = vmatpush2.bf16.msra.mxu1 %v11548_v29  ;;  %9064 = vmatpush2.bf16.msra.mxu0 %v11551_v32  ;;  %v11571_v29 = vld [vmem:[#allocation34 + $0x6c4] ss:$16 sps:$4 sm:$0xff]   ;;  %v11566_v32 = vld [vmem:[#allocation34 + $0x4c0] ss:$16 sps:$4 sm:$0xff]  }
0x106f   :  { %9024 = vmatprep.subr.bf16.mxu1 %v11556_v39  ;;  %9065 = vmatprep.subr.bf16.mxu0 %v11559_v41  ;;  %v11569_v39 = vld [vmem:[#allocation34 + $0x6c0] ss:$16 sps:$4 sm:$0xff]   ;;  %v11574_v41 = vld [vmem:[#allocation34 + $0x4a4] ss:$16 sps:$4 sm:$0xff]  }
0x1072   :  { %9025 = vmatpush2.bf16.msra.mxu1 %v11554_v44  ;;  %9066 = vmatpush2.bf16.msra.mxu0 %v11557_v10  ;;  %v11577_v44 = vld [vmem:[#allocation34 + $0x6a4] ss:$16 sps:$4 sm:$0xff]   ;;  %v11572_v10 = vld [vmem:[#allocation34 + $0x4a0] ss:$16 sps:$4 sm:$0xff]  }
0x1073   :  { %9076 = vmatprep.subr.bf16.mxu1 %v11562_v45  ;;  %9117 = vmatprep.subr.bf16.mxu0 %v11565_v46  ;;  %v11575_v45 = vld [vmem:[#allocation34 + $0x6a0] ss:$16 sps:$4 sm:$0xff]   ;;  %v11580_v46 = vld [vmem:[#allocation34 + $0x484] ss:$16 sps:$4 sm:$0xff]  }
0x1095   :  { %v6756_v47 = vpop.f32.mrf.mxu1  ;;  %v6797_v42 = vpop.f32.mrf.mxu0 }
0x1097   :  { %v6758_v48 = vpop.f32.mrf.mxu1  ;;  %v6799_v49 = vpop.f32.mrf.mxu0 }
0x1099   :  { %v6760_v50 = vpop.f32.mrf.mxu1  ;;  %v6801_v30 = vpop.f32.mrf.mxu0 }
0x109a   :  { %v11589_v50 = vld [vmem:[#allocation34 + $0x664] ss:$16 sps:$4 sm:$0xff]   ;;  %v11584_v30 = vld [vmem:[#allocation34 + $0x460] ss:$16 sps:$4 sm:$0xff]  }
0x109b   :  { %v6761_v51 = vpop.f32.mrf.mxu1  ;;  %v6802_v52 = vpop.f32.mrf.mxu0 }
0x109c   :  { %v11587_v51 = vld [vmem:[#allocation34 + $0x660] ss:$16 sps:$4 sm:$0xff]   ;;  %v11592_v52 = vld [vmem:[#allocation34 + $0x444] ss:$16 sps:$4 sm:$0xff]  }
0x10b5   :  { %v12954_v55 = vpop.f32.mrf.mxu1  ;;  %v12956_v21 = vpop.f32.mrf.mxu0 }
0x10b7   :  { %v12958_v57 = vpop.f32.mrf.mxu1  ;;  %v12960_v58 = vpop.f32.mrf.mxu0 }
0x10b9   :  { %v6842_v60 = vpop.f32.mrf.mxu1  ;;  %v6883_v61 = vpop.f32.mrf.mxu0 }
0x10ba   :  { %v11595_v60 = vld [vmem:[#allocation34 + $0x644] ss:$16 sps:$4 sm:$0xff]   ;;  %v11590_v61 = vld [vmem:[#allocation34 + $0x440] ss:$16 sps:$4 sm:$0xff]  }
0x10bb   :  { %v6843_v62 = vpop.f32.mrf.mxu1  ;;  %v6884_v63 = vpop.f32.mrf.mxu0 }
0x10bc   :  { %v11593_v62 = vld [vmem:[#allocation34 + $0x640] ss:$16 sps:$4 sm:$0xff]   ;;  %v11598_v63 = vld [vmem:[#allocation34 + $0x424] ss:$16 sps:$4 sm:$0xff]  }
0x10d5   :  { %v7240_v34 = vpop.f32.mrf.mxu1  ;;  %v7281_v7 = vpop.f32.mrf.mxu0 }
0x10d6   :  { %v7241_v36 = vadd.f32 %v7240_v34, %v6756_v47  ;;  %v7282_v31 = vadd.f32 %v7281_v7, %v6797_v42  ;;  %v11583_v47 = vld [vmem:[#allocation34 + $0x684] ss:$16 sps:$4 sm:$0xff]   ;;  %v11578_v42 = vld [vmem:[#allocation34 + $0x480] ss:$16 sps:$4 sm:$0xff]   ;;  %v7399_v34 = vrot.slane %v12962_v1, %v12840_v53 }
0x10d7   :  { %v7242_v59 = vpop.f32.mrf.mxu1  ;;  %v7283_v9 = vpop.f32.mrf.mxu0  ;;  %v11604_v53 = vld [vmem:[#allocation34 + $0x404] ss:$16 sps:$4 sm:$0xff]  }
0x10d8   :  { %v7412_v40 = vadd.f32 %v7375_v2, %v7241_v36  ;;  %v7414_v0 = vadd.f32 %v7383_v6, %v7282_v31  ;;  %v7243_v23 = vadd.f32 %v7242_v59, %v6758_v48  ;;  %v7284_v11 = vadd.f32 %v7283_v9, %v6799_v49  ;;  %v11581_v48 = vld [vmem:[#allocation34 + $0x680] ss:$16 sps:$4 sm:$0xff]   ;;  %v11586_v49 = vld [vmem:[#allocation34 + $0x464] ss:$16 sps:$4 sm:$0xff]  }
0x10d9   :  { %v7244_v20 = vpop.f32.mrf.mxu1  ;;  %v7285_v12 = vpop.f32.mrf.mxu0  ;;  %v11601_v2 = vld [vmem:[#allocation34 + $0x624] ss:$16 sps:$4 sm:$0xff]   ;;  %v7391_v6 = vrot.slane %v12962_v1, %v12822_v3  ;;  %v7395_v31 = vrot.slane %v12962_v1, %v12825_v5  ;;  %v7403_v59 = vrot.slane %v12962_v1, %v12843_v54  ;;  %v11596_v9 = vld [vmem:[#allocation34 + $0x420] ss:$16 sps:$4 sm:$0xff]  }
0x10da   :  { %v7413_v56 = vadd.f32 %v7379_v8, %v7243_v23  ;;  %v7415_v13 = vadd.f32 %v7387_v35, %v7284_v11  ;;  %v7420_v14 = vmax.f32 %v7412_v40, 0.0  ;;  %v7422_v17 = vmax.f32 %v7414_v0, 0.0  ;;  %v11599_v40 = vld [vmem:[#allocation34 + $0x620] ss:$16 sps:$4 sm:$0xff]   ;;  %v11607_v23 = vld [vmem:[#allocation34 + $0x604] ss:$16 sps:$4 sm:$0xff]  }
0x10db   :  { %v7245_v15 = vpop.f32.mrf.mxu1  ;;  %v7286_v16 = vpop.f32.mrf.mxu0  ;;  %v11602_v1 = vld [vmem:[#allocation34 + $0x400] ss:$16 sps:$4 sm:$0xff]  }
0x10dc   :  { %v7421_v18 = vmax.f32 %v7413_v56, 0.0  ;;  %v7423_v19 = vmax.f32 %v7415_v13, 0.0  ;;  %v12976_v26 = vpack.c.bf16 %v7420_v14, %v7420_v14  ;;  %v12978_v27 = vpack.c.bf16 %v7422_v17, %v7422_v17  ;;  %v11605_v13 = vld [vmem:[#allocation34 + $0x600] ss:$16 sps:$4 sm:$0xff]   ;;  %v11610_v15 = vld [vmem:[#allocation34 + $0x5e4] ss:$16 sps:$4 sm:$0xff]  }
0x10dd   :  { %v11613_v16 = vld [vmem:[#allocation34 + $0x7e4] ss:$16 sps:$4 sm:$0xff]  }
0x10de   :  { %v12972_v22 = vpack.c.bf16 %v7421_v18, %v7421_v18  ;;  %v12974_v24 = vpack.c.bf16 %v7423_v19, %v7423_v19 }
0x10e0   :  { %9026 = vmatprep.mubr.bf16.mxu1 %v12972_v22  ;;  %9067 = vmatprep.mubr.bf16.mxu0 %v12974_v24 }
0x10e1   :  { %9027 = vmatmul.mubr.bf16.vlgmr.msra.gmra.mxu1 %v12976_v26  ;;  %9068 = vmatmul.mubr.bf16.vlgmr.msra.gmra.mxu0 %v12978_v27 }
0x10e2   :  { %9077 = vmatpush1.bf16.msra.mxu1 %v11560_v25  ;;  %9118 = vmatpush1.bf16.msra.mxu0 %v11563_v4  ;;  %v11611_v4 = vld [vmem:[#allocation34 + $0x7e0] ss:$16 sps:$4 sm:$0xff]  }
0x10e3   :  { %9078 = vmatprep.subr.bf16.mxu1 %v11568_v28  ;;  %9119 = vmatprep.subr.bf16.mxu0 %v11571_v29  ;;  %v11616_v28 = vld [vmem:[#allocation34 + $0x5c4] ss:$16 sps:$4 sm:$0xff]  }
0x10e4   :  { %v11619_v29 = vld [vmem:[#allocation34 + $0x7c4] ss:$16 sps:$4 sm:$0xff]  }
0x10e6   :  { %9079 = vmatpush1.bf16.msra.mxu1 %v11566_v32  ;;  %9120 = vmatpush1.bf16.msra.mxu0 %v11569_v39  ;;  %v11614_v32 = vld [vmem:[#allocation34 + $0x5c0] ss:$16 sps:$4 sm:$0xff]  }
0x10e7   :  { %9080 = vmatprep.subr.bf16.mxu1 %v11574_v41  ;;  %9121 = vmatprep.subr.bf16.mxu0 %v11577_v44  ;;  %v11617_v39 = vld [vmem:[#allocation34 + $0x7c0] ss:$16 sps:$4 sm:$0xff]   ;;  %v11622_v41 = vld [vmem:[#allocation34 + $0x5a4] ss:$16 sps:$4 sm:$0xff]  }
0x10e8   :  { %v11625_v44 = vld [vmem:[#allocation34 + $0x7a4] ss:$16 sps:$4 sm:$0xff]  }
0x10ea   :  { %9081 = vmatpush1.bf16.msra.mxu1 %v11572_v10  ;;  %9122 = vmatpush1.bf16.msra.mxu0 %v11575_v45  ;;  %v11620_v10 = vld [vmem:[#allocation34 + $0x5a0] ss:$16 sps:$4 sm:$0xff]  }
0x10eb   :  { %9082 = vmatprep.subr.bf16.mxu1 %v11580_v46  ;;  %9123 = vmatprep.subr.bf16.mxu0 %v11583_v47  ;;  %v11623_v45 = vld [vmem:[#allocation34 + $0x7a0] ss:$16 sps:$4 sm:$0xff]   ;;  %v11628_v46 = vld [vmem:[#allocation34 + $0x584] ss:$16 sps:$4 sm:$0xff]  }
0x10ec   :  { %v11631_v47 = vld [vmem:[#allocation34 + $0x784] ss:$16 sps:$4 sm:$0xff]  }
0x10ee   :  { %9083 = vmatpush1.bf16.msra.mxu1 %v11578_v42  ;;  %9124 = vmatpush1.bf16.msra.mxu0 %v11581_v48  ;;  %v11626_v42 = vld [vmem:[#allocation34 + $0x580] ss:$16 sps:$4 sm:$0xff]  }
0x10ef   :  { %9084 = vmatprep.subr.bf16.mxu1 %v11586_v49  ;;  %9125 = vmatprep.subr.bf16.mxu0 %v11589_v50  ;;  %v11629_v48 = vld [vmem:[#allocation34 + $0x780] ss:$16 sps:$4 sm:$0xff]   ;;  %v11634_v49 = vld [vmem:[#allocation34 + $0x564] ss:$16 sps:$4 sm:$0xff]  }
0x10f0   :  { %v11637_v50 = vld [vmem:[#allocation34 + $0x764] ss:$16 sps:$4 sm:$0xff]  }
0x10f2   :  { %9085 = vmatpush1.bf16.msra.mxu1 %v11584_v30  ;;  %9126 = vmatpush1.bf16.msra.mxu0 %v11587_v51  ;;  %v11632_v30 = vld [vmem:[#allocation34 + $0x560] ss:$16 sps:$4 sm:$0xff]  }
0x10f3   :  { %9086 = vmatprep.subr.bf16.mxu1 %v11592_v52  ;;  %9127 = vmatprep.subr.bf16.mxu0 %v11595_v60  ;;  %v11635_v51 = vld [vmem:[#allocation34 + $0x760] ss:$16 sps:$4 sm:$0xff]   ;;  %v11640_v52 = vld [vmem:[#allocation34 + $0x544] ss:$16 sps:$4 sm:$0xff]  }
0x10f4   :  { %v11643_v60 = vld [vmem:[#allocation34 + $0x744] ss:$16 sps:$4 sm:$0xff]  }
0x10f5   :  { %v7322_v7 = vpop.f32.mrf.mxu1  ;;  %v7363_v36 = vpop.f32.mrf.mxu0 }
0x10f6   :  { %v7323_v8 = vadd.f32 %v7322_v7, %v12954_v55  ;;  %v7364_v35 = vadd.f32 %v7363_v36, %v12956_v21  ;;  %9087 = vmatpush1.bf16.msra.mxu1 %v11590_v61  ;;  %9128 = vmatpush1.bf16.msra.mxu0 %v11593_v62  ;;  %v11638_v61 = vld [vmem:[#allocation34 + $0x540] ss:$16 sps:$4 sm:$0xff]   ;;  %v11652_v7 = vld [vmem:[#allocation34 + $0x504] ss:$16 sps:$4 sm:$0xff]  }
0x10f7   :  { %v7324_v3 = vpop.f32.mrf.mxu1  ;;  %v7365_v0 = vpop.f32.mrf.mxu0  ;;  %9088 = vmatprep.subr.bf16.mxu1 %v11598_v63  ;;  %9129 = vmatprep.subr.bf16.mxu0 %v11601_v2  ;;  %v11641_v62 = vld [vmem:[#allocation34 + $0x740] ss:$16 sps:$4 sm:$0xff]   ;;  %v11646_v63 = vld [vmem:[#allocation34 + $0x524] ss:$16 sps:$4 sm:$0xff]  }
0x10f8   :  { %v12994_v11 = vadd.f32 %v7391_v6, %v7323_v8  ;;  %v12996_v5 = vadd.f32 %v7399_v34, %v7364_v35  ;;  %v7325_v55 = vadd.f32 %v7324_v3, %v12958_v57  ;;  %v7366_v21 = vadd.f32 %v7365_v0, %v12960_v58  ;;  %v11608_v58 = vld [vmem:[#allocation34 + $0x5e0] ss:$16 sps:$4 sm:$0xff]   ;;  %v11649_v2 = vld [vmem:[#allocation34 + $0x724] ss:$16 sps:$4 sm:$0xff]   ;;  %v11656_v3 = vld [vmem:[#allocation34 + $0xe8] ss:$16 sps:$4 sm:$0xff]  }
0x10f9   :  { %v7326_v20 = vpop.f32.mrf.mxu1  ;;  %v7367_v12 = vpop.f32.mrf.mxu0  ;;  %v11644_v6 = vld [vmem:[#allocation34 + $0x520] ss:$16 sps:$4 sm:$0xff]   ;;  %v11655_v36 = vld [vmem:[#allocation34 + $0x704] ss:$16 sps:$4 sm:$0xff]  }
0x10fa   :  { %v7417_v56 = vadd.f32 %v7395_v31, %v7325_v55  ;;  %v7419_v54 = vadd.f32 %v7403_v59, %v7366_v21  ;;  %9089 = vmatpush1.bf16.msra.mxu1 %v11596_v9  ;;  %9130 = vmatpush1.bf16.msra.mxu0 %v11599_v40  ;;  %v11647_v34 = vld [vmem:[#allocation34 + $0x720] ss:$16 sps:$4 sm:$0xff]   ;;  %v7424_v35 = vmax.f32 %v12994_v11, 0.0  ;;  %v7426_v59 = vmax.f32 %v12996_v5, 0.0  ;;  %v11658_v9 = vld [vmem:[#allocation34 + $0xec] ss:$16 sps:$4 sm:$0xff]  }
0x10fb   :  { %v7327_v14 = vpop.f32.mrf.mxu1  ;;  %v7368_v17 = vpop.f32.mrf.mxu0  ;;  %9090 = vmatprep.subr.bf16.mxu1 %v11604_v53  ;;  %9131 = vmatprep.subr.bf16.mxu0 %v11607_v23  ;;  %v11650_v31 = vld [vmem:[#allocation34 + $0x500] ss:$16 sps:$4 sm:$0xff]   ;;  %v11661_v40 = vld [vmem:[#allocation34 + $0x2ec] ss:$16 sps:$4 sm:$0xff]   ;;  %v11659_v23 = vld [vmem:[#allocation34 + $0x2e8] ss:$16 sps:$4 sm:$0xff]  }
0x10fc   :  { %v7425_v18 = vmax.f32 %v7417_v56, 0.0  ;;  %v7427_v19 = vmax.f32 %v7419_v54, 0.0  ;;  %v11653_v8 = vld [vmem:[#allocation34 + $0x700] ss:$16 sps:$4 sm:$0xff]   ;;  %v13008_v0 = vpack.c.bf16 %v7424_v35, %v7424_v35  ;;  %v13010_v53 = vpack.c.bf16 %v7426_v59, %v7426_v59  ;;  %v11664_v55 = vld [vmem:[#allocation34 + $0xcc] ss:$16 sps:$4 sm:$0xff]  }
0x10fd   :  { %v11667_v21 = vld [vmem:[#allocation34 + $0x2cc] ss:$16 sps:$4 sm:$0xff]   ;;  %v11662_v11 = vld [vmem:[#allocation34 + $0xc8] ss:$16 sps:$4 sm:$0xff]  }
0x10fe   :  { %v13000_v25 = vpack.c.bf16 %v7425_v18, %v7425_v18  ;;  %v13002_v57 = vpack.c.bf16 %v7427_v19, %v7427_v19  ;;  %9091 = vmatpush1.bf16.msra.mxu1 %v11602_v1  ;;  %9132 = vmatpush1.bf16.msra.mxu0 %v11605_v13  ;;  %v11665_v5 = vld [vmem:[#allocation34 + $0x2c8] ss:$16 sps:$4 sm:$0xff]   ;;  %v11670_v20 = vld [vmem:[#allocation34 + $0xac] ss:$16 sps:$4 sm:$0xff]  }
0x10ff   :  { %9092 = vmatprep.subr.bf16.mxu1 %v11610_v15  ;;  %9133 = vmatprep.subr.bf16.mxu0 %v11613_v16  ;;  %v11673_v12 = vld [vmem:[#allocation34 + $0x2ac] ss:$16 sps:$4 sm:$0xff]   ;;  %v11668_v56 = vld [vmem:[#allocation34 + $0xa8] ss:$16 sps:$4 sm:$0xff]  }
0x1100   :  { %9108 = vmatprep.mubr.bf16.mxu1 %v13000_v25  ;;  %9149 = vmatprep.mubr.bf16.mxu0 %v13002_v57  ;;  %v11671_v54 = vld [vmem:[#allocation34 + $0x2a8] ss:$16 sps:$4 sm:$0xff]   ;;  %v11676_v1 = vld [vmem:[#allocation34 + $0x8c] ss:$16 sps:$4 sm:$0xff]  }
0x1101   :  { %v11679_v13 = vld [vmem:[#allocation34 + $0x28c] ss:$16 sps:$4 sm:$0xff]   ;;  %v11674_v14 = vld [vmem:[#allocation34 + $0x88] ss:$16 sps:$4 sm:$0xff]  }
0x1102   :  { %9093 = vmatpush2.bf16.msra.mxu1 %v11608_v58  ;;  %9134 = vmatpush2.bf16.msra.mxu0 %v11611_v4  ;;  %v11682_v17 = vld [vmem:[#allocation34 + $0x6c] ss:$16 sps:$4 sm:$0xff]   ;;  %v11680_v15 = vld [vmem:[#allocation34 + $0x68] ss:$16 sps:$4 sm:$0xff]  }
0x1103   :  { %9094 = vmatprep.subr.bf16.mxu1 %v11616_v28  ;;  %9135 = vmatprep.subr.bf16.mxu0 %v11619_v29  ;;  %v11683_v16 = vld [vmem:[#allocation34 + $0x268] ss:$16 sps:$4 sm:$0xff]   ;;  %v11688_v18 = vld [vmem:[#allocation34 + $0x4c] ss:$16 sps:$4 sm:$0xff]  }
0x1104   :  { %v11691_v19 = vld [vmem:[#allocation34 + $0x24c] ss:$16 sps:$4 sm:$0xff]   ;;  %v11686_v58 = vld [vmem:[#allocation34 + $0x48] ss:$16 sps:$4 sm:$0xff]  }
0x1105   :  { %v11689_v4 = vld [vmem:[#allocation34 + $0x248] ss:$16 sps:$4 sm:$0xff]   ;;  %v11694_v28 = vld [vmem:[#allocation34 + $0x2c] ss:$16 sps:$4 sm:$0xff]  }
0x1106   :  { %9095 = vmatpush2.bf16.msra.mxu1 %v11614_v32  ;;  %9136 = vmatpush2.bf16.msra.mxu0 %v11617_v39  ;;  %v11697_v29 = vld [vmem:[#allocation34 + $0x22c] ss:$16 sps:$4 sm:$0xff]   ;;  %v11692_v32 = vld [vmem:[#allocation34 + $0x28] ss:$16 sps:$4 sm:$0xff]  }
0x1107   :  { %9096 = vmatprep.subr.bf16.mxu1 %v11622_v41  ;;  %9137 = vmatprep.subr.bf16.mxu0 %v11625_v44  ;;  %v11695_v39 = vld [vmem:[#allocation34 + $0x228] ss:$16 sps:$4 sm:$0xff]   ;;  %v11700_v41 = vld [vmem:[#allocation34 + $0xc] ss:$16 sps:$4 sm:$0xff]  }
0x1108   :  { %v11703_v44 = vld [vmem:[#allocation34 + $0x20c] ss:$16 sps:$4 sm:$0xff]  }
0x1109   :  { %v11736_v35 = vld [vmem:[#allocation34 + $0x14c] ss:$16 sps:$4 sm:$0xff]  }
0x110a   :  { %9097 = vmatpush2.bf16.msra.mxu1 %v11620_v10  ;;  %9138 = vmatpush2.bf16.msra.mxu0 %v11623_v45  ;;  %v11698_v10 = vld [vmem:[#allocation34 + $0x8] ss:$16 sps:$4 sm:$0xff]   ;;  %v11739_v59 = vld [vmem:[#allocation34 + $0x34c] ss:$16 sps:$4 sm:$0xff]  }
0x110b   :  { %9098 = vmatprep.subr.bf16.mxu1 %v11628_v46  ;;  %9139 = vmatprep.subr.bf16.mxu0 %v11631_v47  ;;  %v11701_v45 = vld [vmem:[#allocation34 + $0x208] ss:$16 sps:$4 sm:$0xff]   ;;  %v11706_v46 = vld [vmem:[#allocation34 + $0x1ec] ss:$16 sps:$4 sm:$0xff]  }
0x110c   :  { %v11709_v47 = vld [vmem:[#allocation34 + $0x3ec] ss:$16 sps:$4 sm:$0xff]  }
0x110e   :  { %9099 = vmatpush2.bf16.msra.mxu1 %v11626_v42  ;;  %9140 = vmatpush2.bf16.msra.mxu0 %v11629_v48  ;;  %v11704_v42 = vld [vmem:[#allocation34 + $0x1e8] ss:$16 sps:$4 sm:$0xff]  }
0x110f   :  { %9100 = vmatprep.subr.bf16.mxu1 %v11634_v49  ;;  %9141 = vmatprep.subr.bf16.mxu0 %v11637_v50  ;;  %v11707_v48 = vld [vmem:[#allocation34 + $0x3e8] ss:$16 sps:$4 sm:$0xff]   ;;  %v11712_v49 = vld [vmem:[#allocation34 + $0x1cc] ss:$16 sps:$4 sm:$0xff]  }
0x1110   :  { %v11715_v50 = vld [vmem:[#allocation34 + $0x3cc] ss:$16 sps:$4 sm:$0xff]  }
0x1112   :  { %9101 = vmatpush2.bf16.msra.mxu1 %v11632_v30  ;;  %9142 = vmatpush2.bf16.msra.mxu0 %v11635_v51  ;;  %v11710_v30 = vld [vmem:[#allocation34 + $0x1c8] ss:$16 sps:$4 sm:$0xff]  }
0x1113   :  { %9102 = vmatprep.subr.bf16.mxu1 %v11640_v52  ;;  %9143 = vmatprep.subr.bf16.mxu0 %v11643_v60  ;;  %v11713_v51 = vld [vmem:[#allocation34 + $0x3c8] ss:$16 sps:$4 sm:$0xff]   ;;  %v11718_v52 = vld [vmem:[#allocation34 + $0x1ac] ss:$16 sps:$4 sm:$0xff]  }
0x1114   :  { %v11721_v60 = vld [vmem:[#allocation34 + $0x3ac] ss:$16 sps:$4 sm:$0xff]  }
0x1116   :  { %9103 = vmatpush2.bf16.msra.mxu1 %v11638_v61  ;;  %9144 = vmatpush2.bf16.msra.mxu0 %v11641_v62  ;;  %v11716_v61 = vld [vmem:[#allocation34 + $0x1a8] ss:$16 sps:$4 sm:$0xff]  }
0x1117   :  { %9104 = vmatprep.subr.bf16.mxu1 %v11646_v63  ;;  %9145 = vmatprep.subr.bf16.mxu0 %v11649_v2  ;;  %v11719_v62 = vld [vmem:[#allocation34 + $0x3a8] ss:$16 sps:$4 sm:$0xff]   ;;  %v11724_v63 = vld [vmem:[#allocation34 + $0x18c] ss:$16 sps:$4 sm:$0xff]  }
0x1118   :  { %v11727_v2 = vld [vmem:[#allocation34 + $0x38c] ss:$16 sps:$4 sm:$0xff]  }
0x111a   :  { %9105 = vmatpush2.bf16.msra.mxu1 %v11644_v6  ;;  %9146 = vmatpush2.bf16.msra.mxu0 %v11647_v34  ;;  %v11722_v6 = vld [vmem:[#allocation34 + $0x188] ss:$16 sps:$4 sm:$0xff]  }
0x111b   :  { %9106 = vmatprep.subr.bf16.mxu1 %v11652_v7  ;;  %9147 = vmatprep.subr.bf16.mxu0 %v11655_v36  ;;  %v11725_v34 = vld [vmem:[#allocation34 + $0x388] ss:$16 sps:$4 sm:$0xff]   ;;  %v11730_v7 = vld [vmem:[#allocation34 + $0x16c] ss:$16 sps:$4 sm:$0xff]  }
0x111c   :  { %v11733_v36 = vld [vmem:[#allocation34 + $0x36c] ss:$16 sps:$4 sm:$0xff]  }
0x111e   :  { %9107 = vmatpush2.bf16.msra.mxu1 %v11650_v31  ;;  %9148 = vmatpush2.bf16.msra.mxu0 %v11653_v8  ;;  %v11728_v31 = vld [vmem:[#allocation34 + $0x168] ss:$16 sps:$4 sm:$0xff]  }
0x111f   :  { %9158 = vmatprep.subr.bf16.mxu1 %v11658_v9  ;;  %9199 = vmatprep.subr.bf16.mxu0 %v11661_v40  ;;  %v11731_v8 = vld [vmem:[#allocation34 + $0x368] ss:$16 sps:$4 sm:$0xff]  }
0x1120   :  { %v11734_v9 = vld [vmem:[#allocation34 + $0x148] ss:$16 sps:$4 sm:$0xff]  }
0x1121   :  { %9109 = vmatmul.mubr.bf16.vlgmr.msra.gmra.mxu1 %v13008_v0  ;;  %9150 = vmatmul.mubr.bf16.vlgmr.msra.gmra.mxu0 %v13010_v53  ;;  %v11737_v40 = vld [vmem:[#allocation34 + $0x348] ss:$16 sps:$4 sm:$0xff]  }
0x1122   :  { %9159 = vmatpush1.bf16.msra.mxu1 %v11656_v3  ;;  %9190 = vmatprep.mubr.bf16.mxu1 %v12972_v22  ;;  %v11677_v22 = vld [vmem:[#allocation34 + $0x288] ss:$16 sps:$4 sm:$0xff]   ;;  %v11742_v3 = vld [vmem:[#allocation34 + $0x12c] ss:$16 sps:$4 sm:$0xff]  }
0x1123   :  { %9200 = vmatpush1.bf16.msra.mxu0 %v11659_v23  ;;  %9231 = vmatprep.mubr.bf16.mxu0 %v12974_v24  ;;  %v11685_v24 = vld [vmem:[#allocation34 + $0x26c] ss:$16 sps:$4 sm:$0xff]  }
0x1124   :  { %9160 = vmatprep.subr.bf16.mxu1 %v11664_v55  ;;  %9201 = vmatprep.subr.bf16.mxu0 %v11667_v21  ;;  %v11745_v23 = vld [vmem:[#allocation34 + $0x32c] ss:$16 sps:$4 sm:$0xff]   ;;  %v11740_v55 = vld [vmem:[#allocation34 + $0x128] ss:$16 sps:$4 sm:$0xff]  }
0x1125   :  { %v11743_v21 = vld [vmem:[#allocation34 + $0x328] ss:$16 sps:$4 sm:$0xff]  }
0x1126   :  { %9161 = vmatpush1.bf16.msra.mxu1 %v11662_v11  ;;  %v11748_v11 = vld [vmem:[#allocation34 + $0x10c] ss:$16 sps:$4 sm:$0xff]  }
0x1127   :  { %9202 = vmatpush1.bf16.msra.mxu0 %v11665_v5  ;;  %9162 = vmatprep.subr.bf16.mxu1 %v11670_v20  ;;  %v11751_v5 = vld [vmem:[#allocation34 + $0x30c] ss:$16 sps:$4 sm:$0xff]   ;;  %v11746_v20 = vld [vmem:[#allocation34 + $0x108] ss:$16 sps:$4 sm:$0xff]  }
0x1128   :  { %9203 = vmatprep.subr.bf16.mxu0 %v11673_v12  ;;  %v11749_v12 = vld [vmem:[#allocation34 + $0x308] ss:$16 sps:$4 sm:$0xff]  }
0x112a   :  { %9163 = vmatpush1.bf16.msra.mxu1 %v11668_v56  ;;  %v11754_v56 = vld [vmem:[#allocation34 + $0x4ec] ss:$16 sps:$4 sm:$0xff]  }
0x112b   :  { %9204 = vmatpush1.bf16.msra.mxu0 %v11671_v54  ;;  %9164 = vmatprep.subr.bf16.mxu1 %v11676_v1  ;;  %v11757_v54 = vld [vmem:[#allocation34 + $0x6ec] ss:$16 sps:$4 sm:$0xff]   ;;  %v11752_v1 = vld [vmem:[#allocation34 + $0x4e8] ss:$16 sps:$4 sm:$0xff]  }
0x112c   :  { %9205 = vmatprep.subr.bf16.mxu0 %v11679_v13  ;;  %v11755_v13 = vld [vmem:[#allocation34 + $0x6e8] ss:$16 sps:$4 sm:$0xff]  }
0x112e   :  { %9165 = vmatpush1.bf16.msra.mxu1 %v11674_v14  ;;  %v11760_v14 = vld [vmem:[#allocation34 + $0x4cc] ss:$16 sps:$4 sm:$0xff]  }
0x112f   :  { %9206 = vmatpush1.bf16.msra.mxu0 %v11677_v22  ;;  %9166 = vmatprep.subr.bf16.mxu1 %v11682_v17  ;;  %v11763_v22 = vld [vmem:[#allocation34 + $0x6cc] ss:$16 sps:$4 sm:$0xff]   ;;  %v11758_v17 = vld [vmem:[#allocation34 + $0x4c8] ss:$16 sps:$4 sm:$0xff]  }
0x1130   :  { %9207 = vmatprep.subr.bf16.mxu0 %v11685_v24  ;;  %v11761_v24 = vld [vmem:[#allocation34 + $0x6c8] ss:$16 sps:$4 sm:$0xff]  }
0x1132   :  { %9167 = vmatpush1.bf16.msra.mxu1 %v11680_v15  ;;  %v11766_v15 = vld [vmem:[#allocation34 + $0x4ac] ss:$16 sps:$4 sm:$0xff]  }
0x1133   :  { %9208 = vmatpush1.bf16.msra.mxu0 %v11683_v16  ;;  %9168 = vmatprep.subr.bf16.mxu1 %v11688_v18  ;;  %v11769_v16 = vld [vmem:[#allocation34 + $0x6ac] ss:$16 sps:$4 sm:$0xff]   ;;  %v11764_v18 = vld [vmem:[#allocation34 + $0x4a8] ss:$16 sps:$4 sm:$0xff]  }
0x1134   :  { %9209 = vmatprep.subr.bf16.mxu0 %v11691_v19  ;;  %v11772_v19 = vld [vmem:[#allocation34 + $0x48c] ss:$16 sps:$4 sm:$0xff]  }
0x1136   :  { %9169 = vmatpush1.bf16.msra.mxu1 %v11686_v58  ;;  %v11770_v58 = vld [vmem:[#allocation34 + $0x488] ss:$16 sps:$4 sm:$0xff]  }
0x1137   :  { %9210 = vmatpush1.bf16.msra.mxu0 %v11689_v4  ;;  %9170 = vmatprep.subr.bf16.mxu1 %v11694_v28  ;;  %v11778_v4 = vld [vmem:[#allocation34 + $0x46c] ss:$16 sps:$4 sm:$0xff]  }
0x1138   :  { %9211 = vmatprep.subr.bf16.mxu0 %v11697_v29  ;;  %v11781_v28 = vld [vmem:[#allocation34 + $0x66c] ss:$16 sps:$4 sm:$0xff]   ;;  %v11779_v29 = vld [vmem:[#allocation34 + $0x668] ss:$16 sps:$4 sm:$0xff]  }
0x113a   :  { %9171 = vmatpush1.bf16.msra.mxu1 %v11692_v32  ;;  %v11784_v32 = vld [vmem:[#allocation34 + $0x44c] ss:$16 sps:$4 sm:$0xff]  }
0x113b   :  { %9212 = vmatpush1.bf16.msra.mxu0 %v11695_v39  ;;  %9172 = vmatprep.subr.bf16.mxu1 %v11700_v41  ;;  %v11787_v39 = vld [vmem:[#allocation34 + $0x64c] ss:$16 sps:$4 sm:$0xff]   ;;  %v11782_v41 = vld [vmem:[#allocation34 + $0x448] ss:$16 sps:$4 sm:$0xff]  }
0x113c   :  { %9213 = vmatprep.subr.bf16.mxu0 %v11703_v44  ;;  %v11785_v44 = vld [vmem:[#allocation34 + $0x648] ss:$16 sps:$4 sm:$0xff]  }
0x113e   :  { %9173 = vmatpush1.bf16.msra.mxu1 %v11698_v10  ;;  %v11790_v10 = vld [vmem:[#allocation34 + $0x42c] ss:$16 sps:$4 sm:$0xff]  }
0x113f   :  { %9214 = vmatpush1.bf16.msra.mxu0 %v11701_v45  ;;  %9174 = vmatprep.subr.bf16.mxu1 %v11706_v46  ;;  %v11793_v45 = vld [vmem:[#allocation34 + $0x62c] ss:$16 sps:$4 sm:$0xff]   ;;  %v11788_v46 = vld [vmem:[#allocation34 + $0x428] ss:$16 sps:$4 sm:$0xff]  }
0x1140   :  { %9215 = vmatprep.subr.bf16.mxu0 %v11709_v47  ;;  %v11791_v47 = vld [vmem:[#allocation34 + $0x628] ss:$16 sps:$4 sm:$0xff]  }
0x1142   :  { %9175 = vmatpush2.bf16.msra.mxu1 %v11704_v42  ;;  %v11796_v42 = vld [vmem:[#allocation34 + $0x40c] ss:$16 sps:$4 sm:$0xff]  }
0x1143   :  { %9216 = vmatpush2.bf16.msra.mxu0 %v11707_v48  ;;  %9176 = vmatprep.subr.bf16.mxu1 %v11712_v49  ;;  %v11799_v48 = vld [vmem:[#allocation34 + $0x60c] ss:$16 sps:$4 sm:$0xff]   ;;  %v11794_v49 = vld [vmem:[#allocation34 + $0x408] ss:$16 sps:$4 sm:$0xff]  }
0x1144   :  { %9217 = vmatprep.subr.bf16.mxu0 %v11715_v50  ;;  %v11797_v50 = vld [vmem:[#allocation34 + $0x608] ss:$16 sps:$4 sm:$0xff]  }
0x1146   :  { %9177 = vmatpush2.bf16.msra.mxu1 %v11710_v30  ;;  %v11802_v30 = vld [vmem:[#allocation34 + $0x5ec] ss:$16 sps:$4 sm:$0xff]  }
0x1147   :  { %9218 = vmatpush2.bf16.msra.mxu0 %v11713_v51  ;;  %9178 = vmatprep.subr.bf16.mxu1 %v11718_v52  ;;  %v11805_v51 = vld [vmem:[#allocation34 + $0x7ec] ss:$16 sps:$4 sm:$0xff]   ;;  %v11800_v52 = vld [vmem:[#allocation34 + $0x5e8] ss:$16 sps:$4 sm:$0xff]  }
0x1148   :  { %9219 = vmatprep.subr.bf16.mxu0 %v11721_v60  ;;  %v11803_v60 = vld [vmem:[#allocation34 + $0x7e8] ss:$16 sps:$4 sm:$0xff]  }
0x114a   :  { %9179 = vmatpush2.bf16.msra.mxu1 %v11716_v61  ;;  %v11808_v61 = vld [vmem:[#allocation34 + $0x5cc] ss:$16 sps:$4 sm:$0xff]  }
0x114b   :  { %9220 = vmatpush2.bf16.msra.mxu0 %v11719_v62  ;;  %9180 = vmatprep.subr.bf16.mxu1 %v11724_v63  ;;  %v11811_v62 = vld [vmem:[#allocation34 + $0x7cc] ss:$16 sps:$4 sm:$0xff]   ;;  %v11806_v63 = vld [vmem:[#allocation34 + $0x5c8] ss:$16 sps:$4 sm:$0xff]  }
0x114c   :  { %9221 = vmatprep.subr.bf16.mxu0 %v11727_v2  ;;  %v11809_v2 = vld [vmem:[#allocation34 + $0x7c8] ss:$16 sps:$4 sm:$0xff]  }
0x114e   :  { %9181 = vmatpush2.bf16.msra.mxu1 %v11722_v6  ;;  %v11814_v6 = vld [vmem:[#allocation34 + $0x5ac] ss:$16 sps:$4 sm:$0xff]  }
0x114f   :  { %9222 = vmatpush2.bf16.msra.mxu0 %v11725_v34  ;;  %9182 = vmatprep.subr.bf16.mxu1 %v11730_v7  ;;  %v11817_v34 = vld [vmem:[#allocation34 + $0x7ac] ss:$16 sps:$4 sm:$0xff]   ;;  %v11812_v7 = vld [vmem:[#allocation34 + $0x5a8] ss:$16 sps:$4 sm:$0xff]  }
0x1150   :  { %9223 = vmatprep.subr.bf16.mxu0 %v11733_v36  ;;  %v11815_v36 = vld [vmem:[#allocation34 + $0x7a8] ss:$16 sps:$4 sm:$0xff]  }
0x1152   :  { %9183 = vmatpush2.bf16.msra.mxu1 %v11728_v31  ;;  %v11820_v31 = vld [vmem:[#allocation34 + $0x58c] ss:$16 sps:$4 sm:$0xff]  }
0x1153   :  { %9224 = vmatpush2.bf16.msra.mxu0 %v11731_v8  ;;  %9184 = vmatprep.subr.bf16.mxu1 %v11736_v35  ;;  %v11823_v8 = vld [vmem:[#allocation34 + $0x78c] ss:$16 sps:$4 sm:$0xff]   ;;  %v11818_v35 = vld [vmem:[#allocation34 + $0x588] ss:$16 sps:$4 sm:$0xff]  }
0x1154   :  { %9225 = vmatprep.subr.bf16.mxu0 %v11739_v59  ;;  %v11821_v59 = vld [vmem:[#allocation34 + $0x788] ss:$16 sps:$4 sm:$0xff]  }
0x1156   :  { %9185 = vmatpush2.bf16.msra.mxu1 %v11734_v9  ;;  %v11826_v9 = vld [vmem:[#allocation34 + $0x56c] ss:$16 sps:$4 sm:$0xff]  }
0x1157   :  { %9226 = vmatpush2.bf16.msra.mxu0 %v11737_v40  ;;  %9186 = vmatprep.subr.bf16.mxu1 %v11742_v3  ;;  %v11829_v40 = vld [vmem:[#allocation34 + $0x76c] ss:$16 sps:$4 sm:$0xff]   ;;  %v11824_v3 = vld [vmem:[#allocation34 + $0x568] ss:$16 sps:$4 sm:$0xff]  }
0x1158   :  { %9227 = vmatprep.subr.bf16.mxu0 %v11745_v23  ;;  %v11827_v23 = vld [vmem:[#allocation34 + $0x768] ss:$16 sps:$4 sm:$0xff]  }
0x115a   :  { %9187 = vmatpush2.bf16.msra.mxu1 %v11740_v55  ;;  %v11832_v55 = vld [vmem:[#allocation34 + $0x54c] ss:$16 sps:$4 sm:$0xff]  }
0x115b   :  { %9228 = vmatpush2.bf16.msra.mxu0 %v11743_v21  ;;  %9188 = vmatprep.subr.bf16.mxu1 %v11748_v11  ;;  %v11835_v21 = vld [vmem:[#allocation34 + $0x74c] ss:$16 sps:$4 sm:$0xff]   ;;  %v11830_v11 = vld [vmem:[#allocation34 + $0x548] ss:$16 sps:$4 sm:$0xff]  }
0x115c   :  { %9229 = vmatprep.subr.bf16.mxu0 %v11751_v5  ;;  %v11833_v5 = vld [vmem:[#allocation34 + $0x748] ss:$16 sps:$4 sm:$0xff]  }
0x115e   :  { %9189 = vmatpush2.bf16.msra.mxu1 %v11746_v20  ;;  %v11838_v20 = vld [vmem:[#allocation34 + $0x52c] ss:$16 sps:$4 sm:$0xff]  }
0x115f   :  { %9230 = vmatpush2.bf16.msra.mxu0 %v11749_v12  ;;  %9240 = vmatprep.subr.bf16.mxu1 %v11754_v56  ;;  %v11841_v12 = vld [vmem:[#allocation34 + $0x72c] ss:$16 sps:$4 sm:$0xff]   ;;  %v11836_v56 = vld [vmem:[#allocation34 + $0x528] ss:$16 sps:$4 sm:$0xff]  }
0x1160   :  { %9281 = vmatprep.subr.bf16.mxu0 %v11757_v54  ;;  %v11839_v54 = vld [vmem:[#allocation34 + $0x728] ss:$16 sps:$4 sm:$0xff]  }
0x1161   :  { %9191 = vmatmul.mubr.bf16.vlgmr.msra.gmra.mxu1 %v12976_v26  ;;  %v11767_v26 = vld [vmem:[#allocation34 + $0x6a8] ss:$16 sps:$4 sm:$0xff]  }
0x1162   :  { %9232 = vmatmul.mubr.bf16.vlgmr.msra.gmra.mxu0 %v12978_v27  ;;  %9241 = vmatpush1.bf16.msra.mxu1 %v11752_v1  ;;  %v11775_v27 = vld [vmem:[#allocation34 + $0x68c] ss:$16 sps:$4 sm:$0xff]  }
0x1163   :  { %9272 = vmatprep.mubr.bf16.mxu1 %v13000_v25  ;;  %9282 = vmatpush1.bf16.msra.mxu0 %v11755_v13  ;;  %v11773_v25 = vld [vmem:[#allocation34 + $0x688] ss:$16 sps:$4 sm:$0xff]   ;;  %v11844_v1 = vld [vmem:[#allocation34 + $0x50c] ss:$16 sps:$4 sm:$0xff]  }
0x1164   :  { %9313 = vmatprep.mubr.bf16.mxu0 %v13002_v57  ;;  %9242 = vmatprep.subr.bf16.mxu1 %v11760_v14  ;;  %v11776_v57 = vld [vmem:[#allocation34 + $0x468] ss:$16 sps:$4 sm:$0xff]   ;;  %v11847_v13 = vld [vmem:[#allocation34 + $0x70c] ss:$16 sps:$4 sm:$0xff]  }
0x1165   :  { %9283 = vmatprep.subr.bf16.mxu0 %v11763_v22  ;;  %v11842_v14 = vld [vmem:[#allocation34 + $0x508] ss:$16 sps:$4 sm:$0xff]  }
0x1166   :  { %9243 = vmatpush1.bf16.msra.mxu1 %v11758_v17  ;;  %v11845_v22 = vld [vmem:[#allocation34 + $0x708] ss:$16 sps:$4 sm:$0xff]   ;;  %v11848_v17 = vld [vmem:[#allocation37 + $0x78] sm:$0xff]  }
0x1167   :  { %9284 = vmatpush1.bf16.msra.mxu0 %v11761_v24  ;;  %9244 = vmatprep.subr.bf16.mxu1 %v11766_v15  ;;  %v11849_v24 = vld [vmem:[#allocation37 + $0x38] sm:$0xff]   ;;  %v11850_v15 = vld [vmem:[#allocation37 + $0x70] sm:$0xff]  }
0x1168   :  { %9285 = vmatprep.subr.bf16.mxu0 %v11769_v16 }
0x116a   :  { %9245 = vmatpush1.bf16.msra.mxu1 %v11764_v18 }
0x116b   :  { %9286 = vmatpush1.bf16.msra.mxu0 %v11767_v26  ;;  %9246 = vmatprep.subr.bf16.mxu1 %v11772_v19  ;;  %v11851_v26 = vld [vmem:[#allocation37 + $0x30] sm:$0xff]  }
0x116c   :  { %9287 = vmatprep.subr.bf16.mxu0 %v11775_v27 }
0x116e   :  { %9247 = vmatpush1.bf16.msra.mxu1 %v11770_v58  ;;  %v11852_v58 = vld [vmem:[#allocation37 + $0x68] sm:$0xff]  }
0x116f   :  { %9288 = vmatpush1.bf16.msra.mxu0 %v11773_v25  ;;  %9248 = vmatprep.subr.bf16.mxu1 %v11778_v4 }
0x1170   :  { %9289 = vmatprep.subr.bf16.mxu0 %v11781_v28  ;;  %v11853_v28 = vld [vmem:[#allocation37 + $0x28] sm:$0xff]  }
0x1172   :  { %9249 = vmatpush1.bf16.msra.mxu1 %v11776_v57 }
0x1173   :  { %9290 = vmatpush1.bf16.msra.mxu0 %v11779_v29  ;;  %9250 = vmatprep.subr.bf16.mxu1 %v11784_v32  ;;  %v11854_v32 = vld [vmem:[#allocation37 + $0x60] sm:$0xff]  }
0x1174   :  { %9291 = vmatprep.subr.bf16.mxu0 %v11787_v39  ;;  %v11864_v39 = vld [vmem:[#allocation37 + $0xf8] sm:$0xff]  }
0x1176   :  { %9251 = vmatpush1.bf16.msra.mxu1 %v11782_v41  ;;  %v11866_v41 = vld [vmem:[#allocation37 + $0xf0] sm:$0xff]  }
0x1177   :  { %9292 = vmatpush1.bf16.msra.mxu0 %v11785_v44  ;;  %9252 = vmatprep.subr.bf16.mxu1 %v11790_v10  ;;  %v11855_v44 = vld [vmem:[#allocation37 + $0x20] sm:$0xff]   ;;  %v11867_v10 = vld [vmem:[#allocation37 + $0xb0] sm:$0xff]  }
0x1178   :  { %9293 = vmatprep.subr.bf16.mxu0 %v11793_v45  ;;  %v11868_v45 = vld [vmem:[#allocation37 + $0xe8] sm:$0xff]  }
0x117a   :  { %9253 = vmatpush1.bf16.msra.mxu1 %v11788_v46  ;;  %v11857_v46 = vld [vmem:[#allocation37 + $0x18] sm:$0xff]  }
0x117b   :  { %9294 = vmatpush1.bf16.msra.mxu0 %v11791_v47  ;;  %9254 = vmatprep.subr.bf16.mxu1 %v11796_v42  ;;  %v11858_v47 = vld [vmem:[#allocation37 + $0x50] sm:$0xff]   ;;  %v11869_v42 = vld [vmem:[#allocation37 + $0xa8] sm:$0xff]  }
0x117c   :  { %9295 = vmatprep.subr.bf16.mxu0 %v11799_v48  ;;  %v11870_v48 = vld [vmem:[#allocation37 + $0xe0] sm:$0xff]  }
0x117e   :  { %9255 = vmatpush1.bf16.msra.mxu1 %v11794_v49  ;;  %v11859_v49 = vld [vmem:[#allocation37 + $0x10] sm:$0xff]  }
0x117f   :  { %9296 = vmatpush1.bf16.msra.mxu0 %v11797_v50  ;;  %9256 = vmatprep.subr.bf16.mxu1 %v11802_v30  ;;  %v11860_v50 = vld [vmem:[#allocation37 + $0x48] sm:$0xff]   ;;  %v11871_v30 = vld [vmem:[#allocation37 + $0xa0] sm:$0xff]  }
0x1180   :  { %9297 = vmatprep.subr.bf16.mxu0 %v11805_v51  ;;  %v11872_v51 = vld [vmem:[#allocation37 + $0xd8] sm:$0xff]  }
0x1182   :  { %9257 = vmatpush2.bf16.msra.mxu1 %v11800_v52  ;;  %v11861_v52 = vld [vmem:[#allocation37 + $0x8] sm:$0xff]  }
0x1183   :  { %9298 = vmatpush2.bf16.msra.mxu0 %v11803_v60  ;;  %9258 = vmatprep.subr.bf16.mxu1 %v11808_v61  ;;  %v11862_v60 = vld [vmem:[#allocation37 + $0x40] sm:$0xff]   ;;  %v11873_v61 = vld [vmem:[#allocation37 + $0x98] sm:$0xff]  }
0x1184   :  { %9299 = vmatprep.subr.bf16.mxu0 %v11811_v62  ;;  %v11863_v62 = vld [vmem:[#allocation37] sm:$0xff]  }
0x1186   :  { %9259 = vmatpush2.bf16.msra.mxu1 %v11806_v63  ;;  %v7692_v63 = vld [vmem:[#allocation36] sm:$0xf] }
0x1187   :  { %9300 = vmatpush2.bf16.msra.mxu0 %v11809_v2  ;;  %9260 = vmatprep.subr.bf16.mxu1 %v11814_v6  ;;  %v7697_v2 = vrot.slane %v7692_v63, %v12755_v38  ;;  %v7701_v6 = vrot.slane %v7692_v63, %v12752_v37  ;;  %v11876_v38 = vld [vmem:[#allocation37 + $0xc8] sm:$0xff]  }
0x1188   :  { %9301 = vmatprep.subr.bf16.mxu0 %v11817_v34  ;;  %v11877_v37 = vld [vmem:[#allocation37 + $0x88] sm:$0xff]  }
0x118a   :  { %9261 = vmatpush2.bf16.msra.mxu1 %v11812_v7 }
0x118b   :  { %9302 = vmatpush2.bf16.msra.mxu0 %v11815_v36  ;;  %9262 = vmatprep.subr.bf16.mxu1 %v11820_v31 }
0x118c   :  { %9303 = vmatprep.subr.bf16.mxu0 %v11823_v8 }
0x118e   :  { %9263 = vmatpush2.bf16.msra.mxu1 %v11818_v35  ;;  %v11874_v35 = vld [vmem:[#allocation37 + $0xd0] sm:$0xff]  }
0x118f   :  { %9304 = vmatpush2.bf16.msra.mxu0 %v11821_v59  ;;  %9264 = vmatprep.subr.bf16.mxu1 %v11826_v9 }
0x1190   :  { %9305 = vmatprep.subr.bf16.mxu0 %v11829_v40  ;;  %v11875_v40 = vld [vmem:[#allocation37 + $0x90] sm:$0xff]  }
0x1192   :  { %9265 = vmatpush2.bf16.msra.mxu1 %v11824_v3 }
0x1193   :  { %9306 = vmatpush2.bf16.msra.mxu0 %v11827_v23  ;;  %9266 = vmatprep.subr.bf16.mxu1 %v11832_v55 }
0x1194   :  { %9307 = vmatprep.subr.bf16.mxu0 %v11835_v21 }
0x1196   :  { %9267 = vmatpush2.bf16.msra.mxu1 %v11830_v11 }
0x1197   :  { %9308 = vmatpush2.bf16.msra.mxu0 %v11833_v5  ;;  %9268 = vmatprep.subr.bf16.mxu1 %v11838_v20 }
0x1198   :  { %9309 = vmatprep.subr.bf16.mxu0 %v11841_v12 }
0x119a   :  { %9269 = vmatpush2.bf16.msra.mxu1 %v11836_v56 }
0x119b   :  { %9310 = vmatpush2.bf16.msra.mxu0 %v11839_v54  ;;  %9270 = vmatprep.subr.bf16.mxu1 %v11844_v1 }
0x119c   :  { %9311 = vmatprep.subr.bf16.mxu0 %v11847_v13  ;;  %v11878_v13 = vld [vmem:[#allocation37 + $0xc0] sm:$0xff]  }
0x119e   :  { %9271 = vmatpush2.bf16.msra.mxu1 %v11842_v14 }
0x119f   :  { %9312 = vmatpush2.bf16.msra.mxu0 %v11845_v22  ;;  %10974 = vmatprep.subr.bf16.mxu1 %v11848_v17  ;;  %v11879_v22 = vld [vmem:[#allocation37 + $0x80] sm:$0xff]  }
0x11a0   :  { %10996 = vmatprep.subr.bf16.mxu0 %v11864_v39 }
0x11a1   :  { %9273 = vmatmul.mubr.bf16.vlgmr.msra.gmra.mxu1 %v13008_v0  ;;  %v9028_v16 = vpop.f32.mrf.mxu1  ;;  %v9069_v18 = vpop.f32.mrf.mxu0  ;;  %v11865_v0 = vld [vmem:[#allocation37 + $0xb8] sm:$0xff]  }
0x11a2   :  { %9314 = vmatmul.mubr.bf16.vlgmr.msra.gmra.mxu0 %v13010_v53  ;;  %10975 = vmatpush3.bf16.msra.mxu1 %v11849_v24  ;;  %v11856_v53 = vld [vmem:[#allocation37 + $0x58] sm:$0xff]   ;;  %v9029_v34 = vadd.f32 %v9028_v16, %v7697_v2 }
0x11a3   :  { %v9030_v19 = vpop.f32.mrf.mxu1  ;;  %v9071_v27 = vpop.f32.mrf.mxu0  ;;  %10976 = vmatprep.subr.bf16.mxu1 %v11850_v15  ;;  %10997 = vmatpush3.bf16.msra.mxu0 %v11865_v0 }
0x11a4   :  { %10998 = vmatprep.subr.bf16.mxu0 %v11866_v41  ;;  %v9031_v7 = vadd.f32 %v9030_v19, %v7701_v6  ;;  %v9070_v36 = vadd.f32 %v9069_v18, %v9029_v34 }
0x11a5   :  { %v9032_v25 = vpop.f32.mrf.mxu1  ;;  %v9073_v4 = vpop.f32.mrf.mxu0 }
0x11a6   :  { %10977 = vmatpush3.bf16.msra.mxu1 %v11851_v26  ;;  %v9072_v59 = vadd.f32 %v9071_v27, %v9031_v7  ;;  %v7705_v25 = vrot.slane %v7692_v63, %v12772_v33  ;;  %v7709_v4 = vrot.slane %v7692_v63, %v12815_v43  ;;  %v10691_v63 = vld [vmem:[#allocation39] ss:$0 sm:$0xff] }
0x11a7   :  { %v9033_v57 = vpop.f32.mrf.mxu1  ;;  %v9074_v29 = vpop.f32.mrf.mxu0  ;;  %10978 = vmatprep.subr.bf16.mxu1 %v11852_v58  ;;  %10999 = vmatpush3.bf16.msra.mxu0 %v11867_v10 }
0x11a8   :  { %11000 = vmatprep.subr.bf16.mxu0 %v11868_v45 }
0x11aa   :  { %10979 = vmatpush3.bf16.msra.mxu1 %v11853_v28 }
0x11ab   :  { %10980 = vmatprep.subr.bf16.mxu1 %v11854_v32  ;;  %11001 = vmatpush3.bf16.msra.mxu0 %v11869_v42 }
0x11ac   :  { %11002 = vmatprep.subr.bf16.mxu0 %v11870_v48 }
0x11ae   :  { %10981 = vmatpush3.bf16.msra.mxu1 %v11855_v44 }
0x11af   :  { %10982 = vmatprep.subr.bf16.mxu1 %v11856_v53  ;;  %11003 = vmatpush3.bf16.msra.mxu0 %v11871_v30 }
0x11b0   :  { %11004 = vmatprep.subr.bf16.mxu0 %v11872_v51 }
0x11b2   :  { %10983 = vmatpush3.bf16.msra.mxu1 %v11857_v46 }
0x11b3   :  { %10984 = vmatprep.subr.bf16.mxu1 %v11858_v47  ;;  %11005 = vmatpush3.bf16.msra.mxu0 %v11873_v61 }
0x11b4   :  { %11006 = vmatprep.subr.bf16.mxu0 %v11874_v35 }
0x11b6   :  { %10985 = vmatpush3.bf16.msra.mxu1 %v11859_v49 }
0x11b7   :  { %10986 = vmatprep.subr.bf16.mxu1 %v11860_v50  ;;  %11007 = vmatpush3.bf16.msra.mxu0 %v11875_v40 }
0x11b8   :  { %11008 = vmatprep.subr.bf16.mxu0 %v11876_v38 }
0x11ba   :  { %10987 = vmatpush3.bf16.msra.mxu1 %v11861_v52 }
0x11bb   :  { %10988 = vmatprep.subr.bf16.mxu1 %v11862_v60  ;;  %11009 = vmatpush3.bf16.msra.mxu0 %v11877_v37 }
0x11bc   :  { %11010 = vmatprep.subr.bf16.mxu0 %v11878_v13 }
0x11be   :  { %10989 = vmatpush3.bf16.msra.mxu1 %v11863_v62 }
0x11bf   :  { %11011 = vmatpush3.bf16.msra.mxu0 %v11879_v22 }
0x11e1   :  { %v9110_v31 = vpop.f32.mrf.mxu1  ;;  %v9151_v8 = vpop.f32.mrf.mxu0 }
0x11e2   :  { %v9111_v9 = vadd.f32 %v9110_v31, %v9070_v36 }
0x11e3   :  { %v9112_v3 = vpop.f32.mrf.mxu1  ;;  %v9153_v23 = vpop.f32.mrf.mxu0 }
0x11e4   :  { %v9152_v55 = vadd.f32 %v9151_v8, %v9111_v9  ;;  %v9113_v21 = vadd.f32 %v9112_v3, %v9072_v59 }
0x11e5   :  { %v9114_v11 = vpop.f32.mrf.mxu1  ;;  %v9155_v5 = vpop.f32.mrf.mxu0 }
0x11e6   :  { %v9154_v20 = vadd.f32 %v9153_v23, %v9113_v21  ;;  %v9322_v12 = vmax.f32 %v9152_v55, 0.0 }
0x11e7   :  { %v9115_v56 = vpop.f32.mrf.mxu1  ;;  %v9156_v54 = vpop.f32.mrf.mxu0 }
0x11e8   :  { %v9323_v1 = vmax.f32 %v9154_v20, 0.0  ;;  %v9326_v17 = vpack.c.bf16 %v9322_v12, %v9322_v12 }
0x11ea   :  { %v9327_v14 = vpack.c.bf16 %v9323_v1, %v9323_v1 }
0x11ec   :  { %9625 = vmatprep.mubr.bf16.mxu1 %v9327_v14 }
0x11ed   :  { %9626 = vmatmul.mubr.bf16.vlgmr.msra.gmra.mxu1 %v9326_v17 }
0x1221   :  { %v9192_v24 = vpop.f32.mrf.mxu1 }
0x1222   :  { %v9233_v15 = vpop.f32.mrf.mxu0  ;;  %v9193_v28 = vadd.f32 %v9192_v24, %v7705_v25 }
0x1223   :  { %v9194_v16 = vpop.f32.mrf.mxu1 }
0x1224   :  { %v9235_v18 = vpop.f32.mrf.mxu0  ;;  %v9195_v57 = vadd.f32 %v9194_v16, %v7709_v4  ;;  %v9234_v29 = vadd.f32 %v9233_v15, %v9193_v28 }
0x1225   :  { %v9196_v26 = vpop.f32.mrf.mxu1 }
0x1226   :  { %v9237_v19 = vpop.f32.mrf.mxu0  ;;  %v9236_v39 = vadd.f32 %v9235_v18, %v9195_v57 }
0x1227   :  { %v9197_v27 = vpop.f32.mrf.mxu1 }
0x1228   :  { %v9238_v58 = vpop.f32.mrf.mxu0 }
0x1261   :  { %v9274_v32 = vpop.f32.mrf.mxu1 }
0x1262   :  { %v9275_v0 = vadd.f32 %v9274_v32, %v9234_v29  ;;  %v9315_v41 = vpop.f32.mrf.mxu0 }
0x1263   :  { %v9276_v44 = vpop.f32.mrf.mxu1 }
0x1264   :  { %v9316_v53 = vadd.f32 %v9315_v41, %v9275_v0  ;;  %v9277_v10 = vadd.f32 %v9276_v44, %v9236_v39  ;;  %v9317_v45 = vpop.f32.mrf.mxu0 }
0x1265   :  { %v9278_v46 = vpop.f32.mrf.mxu1 }
0x1266   :  { %v9318_v47 = vadd.f32 %v9317_v45, %v9277_v10  ;;  %v9319_v42 = vpop.f32.mrf.mxu0  ;;  %v9324_v48 = vmax.f32 %v9316_v53, 0.0 }
0x1267   :  { %v9279_v49 = vpop.f32.mrf.mxu1 }
0x1268   :  { %v9325_v50 = vmax.f32 %v9318_v47, 0.0  ;;  %v9320_v33 = vpop.f32.mrf.mxu0  ;;  %v9328_v43 = vpack.c.bf16 %v9324_v48, %v9324_v48 }
0x126a   :  { %v9329_v30 = vpack.c.bf16 %v9325_v50, %v9325_v50 }
0x126c   :  { %9665 = vmatprep.mubr.bf16.mxu0 %v9329_v30 }
0x126d   :  { %9666 = vmatmul.mubr.bf16.vlgmr.msra.gmra.mxu0 %v9328_v43 }
0x12ad   :  { %v10990_v51 = vpop.f32.mrf.mxu1 }
0x12af   :  { %v10991_v52 = vpop.f32.mrf.mxu1 }
0x12b0   :  { %v10992_v60 = vadd.f32 %v10991_v52, %v10990_v51 }
0x12b1   :  { %v10993_v61 = vpop.f32.mrf.mxu1 }
0x12b2   :  { %v9628_v34 = vadd.f32 %v10992_v60, %v10691_v63 }
0x12b3   :  { %v10994_v62 = vpop.f32.mrf.mxu1 }
0x132d   :  { %v11012_v2 = vpop.f32.mrf.mxu0 }
0x132f   :  { %v11013_v6 = vpop.f32.mrf.mxu0 }
0x1330   :  { %v11014_v7 = vadd.f32 %v11013_v6, %v11012_v2 }
0x1331   :  { %v11015_v36 = vpop.f32.mrf.mxu0 }
0x1332   :  { %v9668_v31 = vadd.f32 %v11014_v7, %v9628_v34 }
0x1333   :  { %v11016_v8 = vpop.f32.mrf.mxu0 }
0x1334   :  { %9673 = vst [vmem:[%s12651_s12] sm:$0x3] %v9668_v31 }
0x1335   :  { %9678 = vsyncpa [#allocation3], 1 }
0x1336   :  { %9679 = vsyncpa [#allocation5], 1 }
0x1337   :  { %9680 = vsyncpa [#allocation8], 1 }
0x1338   :  { %9681 = vsyncpa [#allocation11], 1 }
0x1339   :  { %9682 = vsyncpa [#allocation14], 1 }
0x133a   :  { %9683 = vsyncpa [#allocation17], 1 }
0x133b   :  { %9684 = vsyncpa [#allocation20], 1 }
0x133c   :  { %9685 = vsyncpa [#allocation23], 1 }
0x133d   :  { %9686 = vsyncpa [#allocation26], 1 }
0x133e   :  { %9687 = vsyncpa [#allocation29], 1 }
0x133f   :  { %9688 = vsyncpa [#allocation32], 1 }
0x1340   :  { %9689 = vsyncpa [#allocation35], 1 }
0x1341   :  { %9690 = vsyncpa [#allocation38], 1 }

</bundles_post_ra>
